<compile_context>
chip_gen: v5e
topology: v5e:2x2
jax: 0.10.0
libtpu: 0.0.40
codegen_flags: <defaults>
</compile_context>

<pallas_src>
import functools
import math

import jax
import jax.numpy as jnp
from jax.experimental import pallas as pl
from jax.experimental.pallas import tpu as pltpu


# ----------------------------- Pallas kernel ---------------------------------


def _log2feats_kernel(
    seq_ref, seqc_ref, aux_ref, pos_ref,
    gate_ref, wqkv_ref, bqkv_ref, outw_ref,
    l1w_ref, l1b_ref, l2w_ref, decw_ref, bias_ref,
    o_ref,
    *, seq_len,
):
    R, D = seq_ref.shape                  # R = block_b * seq_len rows of the flattened batch
    T = seq_len
    Bb = R // T
    cdt = gate_ref.dtype                  # MXU operand dtype: float32 or bfloat16
    approx_recip = bool(cdt == jnp.bfloat16)

    # packed (1, D) vectors: biases / layernorm params / numeric gate column (all f32)
    bias = bias_ref[...]
    outb, l2b = bias[0:1], bias[1:2]
    ln1g, ln1b = bias[2:3], bias[3:4]
    ln2g, ln2b = bias[4:5], bias[5:6]
    dec_b, w_num = bias[6:7], bias[7:8]

    aux = aux_ref[...]                    # (R, 3) f32: [price, timeline mask, short mask]
    xn, tlm, shm = aux[:, 0:1], aux[:, 1:2], aux[:, 2:3]

    # --- gating mix (softmax hoisted host-side), positional add, padding mask ---
    gate = gate_ref[...]                  # (2D, D) pre-transposed, pre-normalized
    h = (jnp.dot(seq_ref[...], gate[:D], preferred_element_type=jnp.float32)
         + jnp.dot(seqc_ref[...], gate[D:], preferred_element_type=jnp.float32)
         + xn * w_num)                    # (R, D) f32
    # in-kernel broadcast of the (T, D) positional table over the Bb sequences of this block
    h = (h.reshape(Bb, T, D) + pos_ref[...][None]).reshape(R, D)
    h = h * tlm

    def layernorm(x, g, b):
        mu = jnp.mean(x, axis=-1, keepdims=True)
        xc = x - mu
        var = jnp.mean(xc * xc, axis=-1, keepdims=True)
        return xc * jax.lax.rsqrt(var + 1e-5) * g + b

    row = jax.lax.broadcasted_iota(jnp.int32, (T, T), 0)
    col = jax.lax.broadcasted_iota(jnp.int32, (T, T), 1)
    allowed = (col <= row)[None]          # (1, T, T) causal mask

    wqkv, bqkv = wqkv_ref[...], bqkv_ref[...]
    outw = outw_ref[...]
    l1w, l1b = l1w_ref[...], l1b_ref[...]
    l2w = l2w_ref[...]

    def encoder_layer(x):                 # x: (R, D) f32
        # fused Q/K/V projection: single (R, D) @ (D, 3D) MXU pass.
        # NOTE: the 1/sqrt(D) attention scale is pre-folded into the Q columns host-side.
        qkv = jnp.dot(x.astype(cdt), wqkv, preferred_element_type=jnp.float32) + bqkv
        q = qkv[:, :D].reshape(Bb, T, D).astype(cdt)
        k = qkv[:, D:2 * D].reshape(Bb, T, D).astype(cdt)
        v = qkv[:, 2 * D:].reshape(Bb, T, D).astype(cdt)
        s = jnp.einsum("bqd,bkd->bqk", q, k, preferred_element_type=jnp.float32)
        s = jnp.where(allowed, s, -1e30)
        s = s - jnp.max(s, axis=-1, keepdims=True)
        p = jnp.exp(s)
        p = p * pl.reciprocal(jnp.sum(p, axis=-1, keepdims=True), approx=approx_recip)
        a = jnp.einsum("bqk,bkd->bqd", p.astype(cdt), v,
                       preferred_element_type=jnp.float32).reshape(R, D)
        a = jnp.dot(a.astype(cdt), outw, preferred_element_type=jnp.float32) + outb
        x1 = layernorm(x + a, ln1g, ln1b)
        f = jnp.dot(x1.astype(cdt), l1w, preferred_element_type=jnp.float32) + l1b
        f = jnp.maximum(f, 0.0)
        f = jnp.dot(f.astype(cdt), l2w, preferred_element_type=jnp.float32) + l2b
        return layernorm(x1 + f, ln2g, ln2b)

    h1 = encoder_layer(h)                 # first transformer pass
    h2 = encoder_layer(h1 * shm)          # second pass on category-masked features

    # decoder Linear(2D -> D) as two dots on the stacked transposed weight (no concat)
    decw = decw_ref[...]
    o_ref[...] = (jnp.dot(h1.astype(cdt), decw[:D], preferred_element_type=jnp.float32)
                  + jnp.dot(h2.astype(cdt), decw[D:], preferred_element_type=jnp.float32)
                  + dec_b)


# ------------------------------ host-side helpers -----------------------------


def _tpu_kind():
    try:
        return jax.devices()[0].device_kind.lower()
    except Exception:
        return ""


def _is_big_vmem_chip():
    # v5e / v6e have 128 MiB VMEM and a single TensorCore; v7x (and unknown) treated as
    # the tighter 64 MiB / 2-TensorCore configuration.
    kind = _tpu_kind()
    return ("v5" in kind) or ("v6" in kind)


def _default_block_b(B, T):
    if _is_big_vmem_chip():
        target_rows = 512           # large blocks: amortize step overhead, fill MXU M dim
        prefer_two_steps = False
    else:
        target_rows = 256           # v7x: 64 MiB VMEM per TC bounds R more tightly
        prefer_two_steps = True     # keep >= 2 grid steps so both TensorCores get work
    bb = max(1, min(B, max(1, target_rows // T)))
    if prefer_two_steps and B > 1 and -(-B // bb) < 2:
        bb = -(-B // 2)
    return bb


def _vmem_limit_bytes(R, T, Bb, D, dff, cbytes):
    # grid-resident weights (single VMEM buffer each after pl.Buffered(1))
    weights = (2 * D * D + D * 3 * D + D * D + D * dff + dff * D + 2 * D * D) * cbytes
    weights += (3 * D + dff + 8 * D + T * D) * 4      # f32 biases / packed vectors / positions
    # per-step activation blocks, double-buffered by the pipeline
    acts = 2 * (2 * R * D * cbytes        # seq, seqc
                + R * 128 * 4             # aux, lane-padded to 128
                + R * D * 4)              # output block
    # in-kernel f32 intermediates (fused QKV, scores + probs, FFN hidden, residuals)
    inter = (R * 3 * D + 2 * Bb * T * T + R * dff + 6 * R * D) * 4
    need = int(1.5 * (weights + acts + inter)) + (4 << 20)
    cap = (100 << 20) if _is_big_vmem_chip() else (56 << 20)
    return int(max(32 << 20, min(need, cap)))


def prepare_weights(params, compute_dtype=jnp.float32):
    """One-time weight prep (softmax / transposes / fusions / casts); cache across calls."""
    D = params["item_emb"].shape[1]
    cdt = compute_dtype
    inv_sqrt_d = 1.0 / math.sqrt(D)

    gate_sm = jax.nn.softmax(params["gate_w"], axis=-1)             # (D, 2D+1)
    gate_t = jnp.concatenate([gate_sm[:, :D].T, gate_sm[:, D:2 * D].T], axis=0).astype(cdt)
    w_num_t = gate_sm[:, 2 * D:].T                                  # (1, D), stays f32
    # fold the 1/sqrt(D) attention scale into the Q projection (zero in-kernel cost)
    wqkv_t = jnp.concatenate(
        [params["wq"] * inv_sqrt_d, params["wk"], params["wv"]], axis=0).T.astype(cdt)
    bqkv = jnp.concatenate(
        [params["bq"] * inv_sqrt_d, params["bk"], params["bv"]], axis=1)  # (1, 3D) f32
    outw_t = params["outw"].T.astype(cdt)                           # (D, D)
    l1w_t = params["l1w"].T.astype(cdt)                             # (D, dff)
    l2w_t = params["l2w"].T.astype(cdt)                             # (dff, D)
    decw_t = jnp.concatenate([params["dec_w1"].T, params["dec_w2"].T], axis=0).astype(cdt)
    bias_pack = jnp.concatenate(
        [params["outb"], params["l2b"], params["ln1g"], params["ln1b"],
         params["ln2g"], params["ln2b"], params["dec_b"], w_num_t], axis=0)  # (8, D) f32

    return {
        "compute_dtype": cdt, "D": D, "dff": params["l1w"].shape[0],
        "gate_t": gate_t, "wqkv_t": wqkv_t, "bqkv": bqkv, "outw_t": outw_t,
        "l1w_t": l1w_t, "l1b": params["l1b"], "l2w_t": l2w_t,
        "decw_t": decw_t, "bias_pack": bias_pack,
    }


# ------------------------------ wrapper ---------------------------------------


def log2feats_pallas(params, x, xc, xn, *, prep=None, block_b=None,
                     compute_dtype=jnp.float32):
    if prep is None:
        prep = prepare_weights(params, compute_dtype)
    cdt = prep["compute_dtype"]
    B, T = x.shape
    D, dff = prep["D"], prep["dff"]
    sqrt_d = math.sqrt(D)

    if block_b is None:
        block_b = _default_block_b(B, T)
    Bb = min(block_b, B)

    # pad batch to a multiple of the block size (padded rows use the padding token 0)
    B_pad = -(-B // Bb) * Bb
    if B_pad != B:
        pad = B_pad - B
        x = jnp.pad(x, ((0, pad), (0, 0)))
        xc = jnp.pad(xc, ((0, pad), (0, 0)))
        xn = jnp.pad(xn, ((0, pad), (0, 0)))

    R = Bb * T                 # rows per grid step
    n_rows = B_pad * T

    # TODO(synk): embedding-table gathers (nn.Embedding) are done in JAX glue; an in-kernel
    # DMA gather via scalar-prefetched token ids would remove one HBM round-trip of (B*T, D).
    seq = (params["item_emb"][x] * sqrt_d).astype(cdt).reshape(n_rows, D)
    seqc = (params["cat_emb"][xc] * sqrt_d).astype(cdt).reshape(n_rows, D)
    aux = jnp.stack(
        [xn.astype(jnp.float32),
         (x != 0).astype(jnp.float32),
         (xc != xc[:, -1:]).astype(jnp.float32)],
        axis=-1).reshape(n_rows, 3)
    pos = params["pos_emb"][:T].astype(jnp.float32)        # (T, D), broadcast in-kernel

    kernel = functools.partial(_log2feats_kernel, seq_len=T)
    out_shape = jax.ShapeDtypeStruct((n_rows, D), jnp.float32)
    compiler_params = pltpu.CompilerParams(
        dimension_semantics=("parallel",),
        vmem_limit_bytes=_vmem_limit_bytes(R, T, Bb, D, dff, jnp.dtype(cdt).itemsize),
    )

    def _build_in_specs(single_buffer_weights):
        act_spec = lambda w: pl.BlockSpec((R, w), lambda b: (b, 0))
        if single_buffer_weights:
            # grid-invariant weights: constant index_map + a single VMEM buffer
            inv_spec = lambda shape: pl.BlockSpec(
                shape, lambda b: (0, 0), pipeline_mode=pl.Buffered(1))
        else:
            inv_spec = lambda shape: pl.BlockSpec(shape, lambda b: (0, 0))
        return [
            act_spec(D), act_spec(D), act_spec(3),
            inv_spec((T, D)),              # positional table (broadcast in-kernel)
            inv_spec((2 * D, D)),          # gate weights (item | category), transposed
            inv_spec((D, 3 * D)),          # fused QKV weight, transposed (Q pre-scaled)
            inv_spec((1, 3 * D)),          # fused QKV bias (Q pre-scaled)
            inv_spec((D, D)),              # attention out-proj weight, transposed
            inv_spec((D, dff)),            # FFN linear1 weight, transposed
            inv_spec((1, dff)),            # FFN linear1 bias
            inv_spec((dff, D)),            # FFN linear2 weight, transposed
            inv_spec((2 * D, D)),          # decoder weight (h1 rows | h2 rows), transposed
            inv_spec((8, D)),              # packed biases / layernorm params / numeric gate
        ]

    def _run(single_buffer_weights):
        grid_spec = pltpu.PrefetchScalarGridSpec(
            num_scalar_prefetch=0,
            grid=(B_pad // Bb,),
            in_specs=_build_in_specs(single_buffer_weights),
            out_specs=pl.BlockSpec((R, D), lambda b: (b, 0)),
        )
        return pl.pallas_call(
            kernel,
            out_shape=out_shape,
            grid_spec=grid_spec,
            compiler_params=compiler_params,
        )(seq, seqc, aux, pos,
          prep["gate_t"], prep["wqkv_t"], prep["bqkv"], prep["outw_t"],
          prep["l1w_t"], prep["l1b"], prep["l2w_t"], prep["decw_t"], prep["bias_pack"])

    try:
        out = _run(True)        # single-buffered resident weights (halves weight VMEM)
    except Exception:           # fallback for Pallas builds without BlockSpec.pipeline_mode
        out = _run(False)

    return out.reshape(B_pad, T, D)[:B]


def forward(params, x, y_pos, y_neg, xc, xn, *, prep=None, block_b=None,
            compute_dtype=jnp.float32):
    """Matches TransformerModel.forward -> (log_feats, pos_embs, neg_embs)."""
    log_feats = log2feats_pallas(params, x, xc, xn, prep=prep, block_b=block_b,
                                 compute_dtype=compute_dtype)
    pos_embs = params["item_emb"][y_pos]
    neg_embs = params["item_emb"][y_neg]
    return log_feats, pos_embs, neg_embs


# --------------------------- pure-JAX reference --------------------------------


def _ln_ref(x, g, b, eps=1e-5):
    mu = x.mean(-1, keepdims=True)
    var = ((x - mu) ** 2).mean(-1, keepdims=True)
    return (x - mu) / jnp.sqrt(var + eps) * g + b


def _encoder_layer_ref(x, p):
    B, T, D = x.shape
    q = x @ p["wq"].T + p["bq"]
    k = x @ p["wk"].T + p["bk"]
    v = x @ p["wv"].T + p["bv"]
    s = jnp.einsum("btd,bsd->bts", q, k) / math.sqrt(D)
    mask = jnp.tril(jnp.ones((T, T), bool))
    s = jnp.where(mask[None], s, -1e30)
    a = jax.nn.softmax(s, axis=-1)
    o = jnp.einsum("bts,bsd->btd", a, v) @ p["outw"].T + p["outb"]
    x1 = _ln_ref(x + o, p["ln1g"], p["ln1b"])
    f = jnp.maximum(x1 @ p["l1w"].T + p["l1b"], 0.0) @ p["l2w"].T + p["l2b"]
    return _ln_ref(x1 + f, p["ln2g"], p["ln2b"])


def log2feats_ref(params, x, xc, xn):
    B, T = x.shape
    D = params["item_emb"].shape[1]
    seq = params["item_emb"][x] * math.sqrt(D)
    seqc = params["cat_emb"][xc] * math.sqrt(D)
    gw = jax.nn.softmax(params["gate_w"], axis=-1)
    cat = jnp.concatenate([seq, seqc, xn[..., None]], axis=-1)
    h = cat @ gw.T
    h = h + params["pos_emb"][:T][None]
    h = h * (x != 0)[..., None]
    h1 = _encoder_layer_ref(h, params)
    h2 = _encoder_layer_ref(h1 * (xc != xc[:, -1:])[..., None], params)
    dec_w = jnp.concatenate([params["dec_w1"], params["dec_w2"]], axis=1)
    return jnp.concatenate([h1, h2], -1) @ dec_w.T + params["dec_b"]


# ------------------------------- params ----------------------------------------


def init_params(key, vocab, vocab_cat, D, max_len, dff):
    ks = jax.random.split(key, 24)
    s = 0.1
    p = {
        # embeddings: padding_idx=0 -> row 0 zeroed
        "item_emb": (jax.random.normal(ks[0], (vocab, D), jnp.float32)).at[0].set(0.0),
        "cat_emb": (jax.random.normal(ks[1], (vocab_cat, D), jnp.float32)).at[0].set(0.0),
        "pos_emb": jax.random.normal(ks[2], (max_len, D), jnp.float32),
        "gate_w": jax.random.uniform(ks[3], (D, 2 * D + 1), jnp.float32),  # torch.rand
        # transformer encoder layer (single head): in_proj split into q/k/v
        "wq": jax.random.normal(ks[4], (D, D), jnp.float32) * s,
        "wk": jax.random.normal(ks[5], (D, D), jnp.float32) * s,
        "wv": jax.random.normal(ks[6], (D, D), jnp.float32) * s,
        "bq": jax.random.normal(ks[7], (1, D), jnp.float32) * s,
        "bk": jax.random.normal(ks[8], (1, D), jnp.float32) * s,
        "bv": jax.random.normal(ks[9], (1, D), jnp.float32) * s,
        "outw": jax.random.normal(ks[10], (D, D), jnp.float32) * s,
        "outb": jax.random.normal(ks[11], (1, D), jnp.float32) * s,
        "l1w": jax.random.normal(ks[12], (dff, D), jnp.float32) * s,
        "l1b": jax.random.normal(ks[13], (1, dff), jnp.float32) * s,
        "l2w": jax.random.normal(ks[14], (D, dff), jnp.float32) * s,
        "l2b": jax.random.normal(ks[15], (1, D), jnp.float32) * s,
        "ln1g": jnp.ones((1, D), jnp.float32),
        "ln1b": jnp.zeros((1, D), jnp.float32),
        "ln2g": jnp.ones((1, D), jnp.float32),
        "ln2b": jnp.zeros((1, D), jnp.float32),
        # decoder Linear(2D, D), weight split along its input dim
        "dec_w1": jax.random.normal(ks[16], (D, D), jnp.float32) * s,
        "dec_w2": jax.random.normal(ks[17], (D, D), jnp.float32) * s,
        "dec_b": jax.random.normal(ks[18], (1, D), jnp.float32) * s,
    }
    return p


# --------------------------------- main -----------------------------------------


if __name__ == "__main__":
    B, T, D = 8, 8, 32          # small shapes: batch=8, seq=8, hidden=32
    dff = 64                    # small FFN width (PyTorch default is 2048)
    Bb = 4                      # sequences per grid step -> grid=(2,): even count (v7x 2 TCs)
    vocab, vocab_cat, max_len = 50, 20, 25

    key = jax.random.PRNGKey(0)
    kp, kx, kxc, kyp, kyn, kxn = jax.random.split(key, 6)

    params = init_params(kp, vocab, vocab_cat, D, max_len, dff)

    x = jax.random.randint(kx, (B, T), 1, vocab, dtype=jnp.int32)
    x = x.at[0, 0].set(0)                                  # exercise padding mask
    xc = jax.random.randint(kxc, (B, T), 1, vocab_cat, dtype=jnp.int32)
    y_pos = jax.random.randint(kyp, (B, T), 1, vocab, dtype=jnp.int32)
    y_neg = jax.random.randint(kyn, (B, T), 1, vocab, dtype=jnp.int32)
    xn = jax.random.uniform(kxn, (B, T), jnp.float32)      # price feature

    ref = log2feats_ref(params, x, xc, xn)

    # exact-math (f32 matmul) run + tight correctness check; weight prep hoisted/cached
    prep_f32 = prepare_weights(params, jnp.float32)
    log_feats, pos_embs, neg_embs = forward(params, x, y_pos, y_neg, xc, xn,
                                            prep=prep_f32, block_b=Bb)
    jax.block_until_ready((log_feats, pos_embs, neg_embs))
    assert log_feats.shape == (B, T, D)
    assert pos_embs.shape == (B, T, D) and neg_embs.shape == (B, T, D)
    assert jnp.allclose(log_feats, ref, atol=2e-4, rtol=2e-4), "f32 mismatch vs reference"

    # bf16-matmul run (MXU fast path on all generations; f32 accumulation) — aggregate check
    prep_bf16 = prepare_weights(params, jnp.bfloat16)
    log_feats_bf16 = log2feats_pallas(params, x, xc, xn, prep=prep_bf16, block_b=Bb)
    jax.block_until_ready(log_feats_bf16)
    rel_l2 = jnp.linalg.norm(log_feats_bf16 - ref) / jnp.linalg.norm(ref)
    assert rel_l2 < 0.1, f"bf16 path diverged from reference (rel L2 {rel_l2})"

    print("KERNEL_OK")
</pallas_src>

<mosaic_0001>
module attributes {stable_mosaic.version = 11 : i64} {
  func.func @_log2feats_kernel(%arg0: i32, %arg1: memref<32x32xf32, #tpu.memory_space<vmem>>, %arg2: memref<32x32xf32, #tpu.memory_space<vmem>>, %arg3: memref<32x3xf32, #tpu.memory_space<vmem>>, %arg4: memref<8x32xf32, #tpu.memory_space<vmem>>, %arg5: memref<64x32xf32, #tpu.memory_space<vmem>>, %arg6: memref<32x96xf32, #tpu.memory_space<vmem>>, %arg7: memref<1x96xf32, #tpu.memory_space<vmem>>, %arg8: memref<32x32xf32, #tpu.memory_space<vmem>>, %arg9: memref<32x64xf32, #tpu.memory_space<vmem>>, %arg10: memref<1x64xf32, #tpu.memory_space<vmem>>, %arg11: memref<64x32xf32, #tpu.memory_space<vmem>>, %arg12: memref<64x32xf32, #tpu.memory_space<vmem>>, %arg13: memref<8x32xf32, #tpu.memory_space<vmem>>, %arg14: memref<32x32xf32, #tpu.memory_space<vmem>>) attributes {dimension_semantics = [#tpu.dimension_semantics<parallel>], iteration_bounds = array<i64: 2>, scalar_prefetch = 0 : i64, scratch_operands = 0 : i64, tpu.core_type = #tpu.core_type<tc>, window_params = [{transform_indices = @transform_0, window_bounds = array<i64: 32, 32>}, {transform_indices = @transform_1, window_bounds = array<i64: 32, 32>}, {transform_indices = @transform_2, window_bounds = array<i64: 32, 3>}, {pipeline_mode = #tpu.pipeline_mode<synchronous>, transform_indices = @transform_3, window_bounds = array<i64: 8, 32>}, {pipeline_mode = #tpu.pipeline_mode<synchronous>, transform_indices = @transform_4, window_bounds = array<i64: 64, 32>}, {pipeline_mode = #tpu.pipeline_mode<synchronous>, transform_indices = @transform_5, window_bounds = array<i64: 32, 96>}, {pipeline_mode = #tpu.pipeline_mode<synchronous>, transform_indices = @transform_6, window_bounds = array<i64: 1, 96>}, {pipeline_mode = #tpu.pipeline_mode<synchronous>, transform_indices = @transform_7, window_bounds = array<i64: 32, 32>}, {pipeline_mode = #tpu.pipeline_mode<synchronous>, transform_indices = @transform_8, window_bounds = array<i64: 32, 64>}, {pipeline_mode = #tpu.pipeline_mode<synchronous>, transform_indices = @transform_9, window_bounds = array<i64: 1, 64>}, {pipeline_mode = #tpu.pipeline_mode<synchronous>, transform_indices = @transform_10, window_bounds = array<i64: 64, 32>}, {pipeline_mode = #tpu.pipeline_mode<synchronous>, transform_indices = @transform_11, window_bounds = array<i64: 64, 32>}, {pipeline_mode = #tpu.pipeline_mode<synchronous>, transform_indices = @transform_12, window_bounds = array<i64: 8, 32>}, {transform_indices = @transform_13, window_bounds = array<i64: 32, 32>}]} {
    %c0 = arith.constant 0 : index
    %c0_0 = arith.constant 0 : index
    %0 = vector.load %arg13[%c0, %c0_0] : memref<8x32xf32, #tpu.memory_space<vmem>>, vector<8x32xf32>
    %1 = vector.extract_strided_slice %0 {offsets = [0, 0], sizes = [1, 32], strides = [1, 1]} : vector<8x32xf32> to vector<1x32xf32>
    %2 = vector.extract_strided_slice %0 {offsets = [1, 0], sizes = [1, 32], strides = [1, 1]} : vector<8x32xf32> to vector<1x32xf32>
    %3 = vector.extract_strided_slice %0 {offsets = [2, 0], sizes = [1, 32], strides = [1, 1]} : vector<8x32xf32> to vector<1x32xf32>
    %4 = vector.extract_strided_slice %0 {offsets = [3, 0], sizes = [1, 32], strides = [1, 1]} : vector<8x32xf32> to vector<1x32xf32>
    %5 = vector.extract_strided_slice %0 {offsets = [4, 0], sizes = [1, 32], strides = [1, 1]} : vector<8x32xf32> to vector<1x32xf32>
    %6 = vector.extract_strided_slice %0 {offsets = [5, 0], sizes = [1, 32], strides = [1, 1]} : vector<8x32xf32> to vector<1x32xf32>
    %7 = vector.extract_strided_slice %0 {offsets = [6, 0], sizes = [1, 32], strides = [1, 1]} : vector<8x32xf32> to vector<1x32xf32>
    %8 = vector.extract_strided_slice %0 {offsets = [7, 0], sizes = [1, 32], strides = [1, 1]} : vector<8x32xf32> to vector<1x32xf32>
    %c0_1 = arith.constant 0 : index
    %c0_2 = arith.constant 0 : index
    %9 = vector.load %arg3[%c0_1, %c0_2] : memref<32x3xf32, #tpu.memory_space<vmem>>, vector<32x3xf32>
    %10 = vector.extract_strided_slice %9 {offsets = [0, 0], sizes = [32, 1], strides = [1, 1]} : vector<32x3xf32> to vector<32x1xf32>
    %11 = vector.extract_strided_slice %9 {offsets = [0, 1], sizes = [32, 1], strides = [1, 1]} : vector<32x3xf32> to vector<32x1xf32>
    %12 = vector.extract_strided_slice %9 {offsets = [0, 2], sizes = [32, 1], strides = [1, 1]} : vector<32x3xf32> to vector<32x1xf32>
    %c0_3 = arith.constant 0 : index
    %c0_4 = arith.constant 0 : index
    %13 = vector.load %arg5[%c0_3, %c0_4] : memref<64x32xf32, #tpu.memory_space<vmem>>, vector<64x32xf32>
    %c0_5 = arith.constant 0 : index
    %c0_6 = arith.constant 0 : index
    %14 = vector.load %arg1[%c0_5, %c0_6] : memref<32x32xf32, #tpu.memory_space<vmem>>, vector<32x32xf32>
    %15 = vector.extract_strided_slice %13 {offsets = [0, 0], sizes = [32, 32], strides = [1, 1]} : vector<64x32xf32> to vector<32x32xf32>
    %cst = arith.constant dense<0.000000e+00> : vector<32x32xf32>
    %16 = tpu.matmul %14, %15, %cst {dimension_numbers = #tpu.dot_dimension_numbers<[1], [0], [0], [1], [0, 0, 1, 1], [], []>} : vector<32x32xf32>, vector<32x32xf32>, vector<32x32xf32> -> vector<32x32xf32>
    %c0_7 = arith.constant 0 : index
    %c0_8 = arith.constant 0 : index
    %17 = vector.load %arg2[%c0_7, %c0_8] : memref<32x32xf32, #tpu.memory_space<vmem>>, vector<32x32xf32>
    %18 = vector.extract_strided_slice %13 {offsets = [32, 0], sizes = [32, 32], strides = [1, 1]} : vector<64x32xf32> to vector<32x32xf32>
    %cst_9 = arith.constant dense<0.000000e+00> : vector<32x32xf32>
    %19 = tpu.matmul %17, %18, %cst_9 {dimension_numbers = #tpu.dot_dimension_numbers<[1], [0], [0], [1], [0, 0, 1, 1], [], []>} : vector<32x32xf32>, vector<32x32xf32>, vector<32x32xf32> -> vector<32x32xf32>
    %20 = arith.addf %16, %19 : vector<32x32xf32>
    %21 = vector.broadcast %10 : vector<32x1xf32> to vector<32x32xf32>
    %22 = vector.broadcast %8 : vector<1x32xf32> to vector<32x32xf32>
    %23 = arith.mulf %21, %22 : vector<32x32xf32>
    %24 = arith.addf %20, %23 : vector<32x32xf32>
    %25 = vector.shape_cast %24 : vector<32x32xf32> to vector<4x8x32xf32>
    %c0_10 = arith.constant 0 : index
    %c0_11 = arith.constant 0 : index
    %26 = vector.load %arg4[%c0_10, %c0_11] : memref<8x32xf32, #tpu.memory_space<vmem>>, vector<8x32xf32>
    %27 = vector.shape_cast %26 : vector<8x32xf32> to vector<1x8x32xf32>
    %28 = vector.broadcast %27 : vector<1x8x32xf32> to vector<4x8x32xf32>
    %29 = arith.addf %25, %28 : vector<4x8x32xf32>
    %30 = vector.shape_cast %29 : vector<4x8x32xf32> to vector<32x32xf32>
    %31 = vector.broadcast %11 : vector<32x1xf32> to vector<32x32xf32>
    %32 = arith.mulf %30, %31 : vector<32x32xf32>
    %33 = tpu.iota {dimensions = array<i32: 0>} : vector<8x8xi32>
    %34 = tpu.iota {dimensions = array<i32: 1>} : vector<8x8xi32>
    %35 = arith.cmpi sle, %34, %33 : vector<8x8xi32>
    %36 = vector.shape_cast %35 : vector<8x8xi1> to vector<1x8x8xi1>
    %c0_12 = arith.constant 0 : index
    %c0_13 = arith.constant 0 : index
    %37 = vector.load %arg6[%c0_12, %c0_13] : memref<32x96xf32, #tpu.memory_space<vmem>>, vector<32x96xf32>
    %c0_14 = arith.constant 0 : index
    %c0_15 = arith.constant 0 : index
    %38 = vector.load %arg7[%c0_14, %c0_15] : memref<1x96xf32, #tpu.memory_space<vmem>>, vector<1x96xf32>
    %c0_16 = arith.constant 0 : index
    %c0_17 = arith.constant 0 : index
    %39 = vector.load %arg8[%c0_16, %c0_17] : memref<32x32xf32, #tpu.memory_space<vmem>>, vector<32x32xf32>
    %c0_18 = arith.constant 0 : index
    %c0_19 = arith.constant 0 : index
    %40 = vector.load %arg9[%c0_18, %c0_19] : memref<32x64xf32, #tpu.memory_space<vmem>>, vector<32x64xf32>
    %c0_20 = arith.constant 0 : index
    %c0_21 = arith.constant 0 : index
    %41 = vector.load %arg10[%c0_20, %c0_21] : memref<1x64xf32, #tpu.memory_space<vmem>>, vector<1x64xf32>
    %c0_22 = arith.constant 0 : index
    %c0_23 = arith.constant 0 : index
    %42 = vector.load %arg11[%c0_22, %c0_23] : memref<64x32xf32, #tpu.memory_space<vmem>>, vector<64x32xf32>
    %cst_24 = arith.constant dense<0.000000e+00> : vector<32x96xf32>
    %43 = tpu.matmul %32, %37, %cst_24 {dimension_numbers = #tpu.dot_dimension_numbers<[1], [0], [0], [1], [0, 0, 1, 1], [], []>} : vector<32x32xf32>, vector<32x96xf32>, vector<32x96xf32> -> vector<32x96xf32>
    %44 = vector.broadcast %38 : vector<1x96xf32> to vector<32x96xf32>
    %45 = arith.addf %43, %44 : vector<32x96xf32>
    %46 = vector.extract_strided_slice %45 {offsets = [0, 0], sizes = [32, 32], strides = [1, 1]} : vector<32x96xf32> to vector<32x32xf32>
    %47 = vector.shape_cast %46 : vector<32x32xf32> to vector<4x8x32xf32>
    %48 = vector.extract_strided_slice %45 {offsets = [0, 32], sizes = [32, 32], strides = [1, 1]} : vector<32x96xf32> to vector<32x32xf32>
    %49 = vector.shape_cast %48 : vector<32x32xf32> to vector<4x8x32xf32>
    %50 = vector.extract_strided_slice %45 {offsets = [0, 64], sizes = [32, 32], strides = [1, 1]} : vector<32x96xf32> to vector<32x32xf32>
    %51 = vector.shape_cast %50 : vector<32x32xf32> to vector<4x8x32xf32>
    "tpu.trace_start"() <{level = 10 : i32, message = "bqd,bkd->bqk"}> : () -> ()
    %cst_25 = arith.constant dense<0.000000e+00> : vector<4x8x8xf32>
    %52 = tpu.matmul %47, %49, %cst_25 {dimension_numbers = #tpu.dot_dimension_numbers<[2], [2], [1], [1], [0, 0, 0, 1, 1, 1], [0], [0]>} : vector<4x8x32xf32>, vector<4x8x32xf32>, vector<4x8x8xf32> -> vector<4x8x8xf32>
    %cst_26 = arith.constant -1.000000e+30 : f32
    "tpu.trace_stop"() : () -> ()
    %53 = vector.shape_cast %36 : vector<1x8x8xi1> to vector<1x8x8xi1>
    %54 = vector.broadcast %53 : vector<1x8x8xi1> to vector<4x8x8xi1>
    %55 = vector.broadcast %cst_26 : f32 to vector<4x8x8xf32>
    %56 = arith.select %54, %52, %55 : vector<4x8x8xi1>, vector<4x8x8xf32>
    %cst_27 = arith.constant dense<0xFF800000> : vector<4x8xf32>
    %57 = vector.multi_reduction <maximumf>, %56, %cst_27 [2] : vector<4x8x8xf32> to vector<4x8xf32>
    %58 = vector.shape_cast %57 : vector<4x8xf32> to vector<4x8x1xf32>
    %59 = vector.broadcast %58 : vector<4x8x1xf32> to vector<4x8x8xf32>
    %60 = arith.subf %56, %59 : vector<4x8x8xf32>
    %61 = math.exp %60 : vector<4x8x8xf32>
    %cst_28 = arith.constant dense<0.000000e+00> : vector<4x8xf32>
    %62 = vector.multi_reduction <add>, %61, %cst_28 [2] : vector<4x8x8xf32> to vector<4x8xf32>
    %63 = vector.shape_cast %62 : vector<4x8xf32> to vector<4x8x1xf32>
    %64 = tpu.reciprocal %63 : vector<4x8x1xf32> -> vector<4x8x1xf32>
    %65 = vector.broadcast %64 : vector<4x8x1xf32> to vector<4x8x8xf32>
    %66 = arith.mulf %61, %65 : vector<4x8x8xf32>
    "tpu.trace_start"() <{level = 10 : i32, message = "bqk,bkd->bqd"}> : () -> ()
    %cst_29 = arith.constant dense<0.000000e+00> : vector<4x8x32xf32>
    %67 = tpu.matmul %66, %51, %cst_29 {dimension_numbers = #tpu.dot_dimension_numbers<[2], [1], [1], [2], [0, 0, 0, 1, 1, 2], [0], [0]>} : vector<4x8x8xf32>, vector<4x8x32xf32>, vector<4x8x32xf32> -> vector<4x8x32xf32>
    "tpu.trace_stop"() : () -> ()
    %68 = vector.shape_cast %67 : vector<4x8x32xf32> to vector<32x32xf32>
    %cst_30 = arith.constant dense<0.000000e+00> : vector<32x32xf32>
    %69 = tpu.matmul %68, %39, %cst_30 {dimension_numbers = #tpu.dot_dimension_numbers<[1], [0], [0], [1], [0, 0, 1, 1], [], []>} : vector<32x32xf32>, vector<32x32xf32>, vector<32x32xf32> -> vector<32x32xf32>
    %70 = vector.broadcast %1 : vector<1x32xf32> to vector<32x32xf32>
    %71 = arith.addf %69, %70 : vector<32x32xf32>
    %72 = arith.addf %32, %71 : vector<32x32xf32>
    %cst_31 = arith.constant dense<0.000000e+00> : vector<32xf32>
    %73 = vector.multi_reduction <add>, %72, %cst_31 [1] : vector<32x32xf32> to vector<32xf32>
    %74 = vector.shape_cast %73 : vector<32xf32> to vector<32x1xf32>
    %cst_32 = arith.constant 3.200000e+01 : f32
    %75 = vector.broadcast %cst_32 : f32 to vector<32x1xf32>
    %76 = arith.divf %74, %75 : vector<32x1xf32>
    %77 = vector.broadcast %76 : vector<32x1xf32> to vector<32x32xf32>
    %78 = arith.subf %72, %77 : vector<32x32xf32>
    %79 = arith.mulf %78, %78 : vector<32x32xf32>
    %cst_33 = arith.constant dense<0.000000e+00> : vector<32xf32>
    %80 = vector.multi_reduction <add>, %79, %cst_33 [1] : vector<32x32xf32> to vector<32xf32>
    %81 = vector.shape_cast %80 : vector<32xf32> to vector<32x1xf32>
    %cst_34 = arith.constant 3.200000e+01 : f32
    %82 = vector.broadcast %cst_34 : f32 to vector<32x1xf32>
    %83 = arith.divf %81, %82 : vector<32x1xf32>
    %cst_35 = arith.constant 9.99999974E-6 : f32
    %84 = vector.broadcast %cst_35 : f32 to vector<32x1xf32>
    %85 = arith.addf %83, %84 : vector<32x1xf32>
    %86 = math.rsqrt %85 : vector<32x1xf32>
    %87 = vector.broadcast %86 : vector<32x1xf32> to vector<32x32xf32>
    %88 = arith.mulf %78, %87 : vector<32x32xf32>
    %89 = vector.broadcast %3 : vector<1x32xf32> to vector<32x32xf32>
    %90 = arith.mulf %88, %89 : vector<32x32xf32>
    %91 = vector.broadcast %4 : vector<1x32xf32> to vector<32x32xf32>
    %92 = arith.addf %90, %91 : vector<32x32xf32>
    %cst_36 = arith.constant dense<0.000000e+00> : vector<32x64xf32>
    %93 = tpu.matmul %92, %40, %cst_36 {dimension_numbers = #tpu.dot_dimension_numbers<[1], [0], [0], [1], [0, 0, 1, 1], [], []>} : vector<32x32xf32>, vector<32x64xf32>, vector<32x64xf32> -> vector<32x64xf32>
    %94 = vector.broadcast %41 : vector<1x64xf32> to vector<32x64xf32>
    %95 = arith.addf %93, %94 : vector<32x64xf32>
    %cst_37 = arith.constant 0.000000e+00 : f32
    %96 = vector.broadcast %cst_37 : f32 to vector<32x64xf32>
    %97 = arith.maximumf %95, %96 : vector<32x64xf32>
    %cst_38 = arith.constant dense<0.000000e+00> : vector<32x32xf32>
    %98 = tpu.matmul %97, %42, %cst_38 {dimension_numbers = #tpu.dot_dimension_numbers<[1], [0], [0], [1], [0, 0, 1, 1], [], []>} : vector<32x64xf32>, vector<64x32xf32>, vector<32x32xf32> -> vector<32x32xf32>
    %99 = vector.broadcast %2 : vector<1x32xf32> to vector<32x32xf32>
    %100 = arith.addf %98, %99 : vector<32x32xf32>
    %101 = arith.addf %92, %100 : vector<32x32xf32>
    %cst_39 = arith.constant dense<0.000000e+00> : vector<32xf32>
    %102 = vector.multi_reduction <add>, %101, %cst_39 [1] : vector<32x32xf32> to vector<32xf32>
    %103 = vector.shape_cast %102 : vector<32xf32> to vector<32x1xf32>
    %cst_40 = arith.constant 3.200000e+01 : f32
    %104 = vector.broadcast %cst_40 : f32 to vector<32x1xf32>
    %105 = arith.divf %103, %104 : vector<32x1xf32>
    %106 = vector.broadcast %105 : vector<32x1xf32> to vector<32x32xf32>
    %107 = arith.subf %101, %106 : vector<32x32xf32>
    %108 = arith.mulf %107, %107 : vector<32x32xf32>
    %cst_41 = arith.constant dense<0.000000e+00> : vector<32xf32>
    %109 = vector.multi_reduction <add>, %108, %cst_41 [1] : vector<32x32xf32> to vector<32xf32>
    %110 = vector.shape_cast %109 : vector<32xf32> to vector<32x1xf32>
    %cst_42 = arith.constant 3.200000e+01 : f32
    %111 = vector.broadcast %cst_42 : f32 to vector<32x1xf32>
    %112 = arith.divf %110, %111 : vector<32x1xf32>
    %cst_43 = arith.constant 9.99999974E-6 : f32
    %113 = vector.broadcast %cst_43 : f32 to vector<32x1xf32>
    %114 = arith.addf %112, %113 : vector<32x1xf32>
    %115 = math.rsqrt %114 : vector<32x1xf32>
    %116 = vector.broadcast %115 : vector<32x1xf32> to vector<32x32xf32>
    %117 = arith.mulf %107, %116 : vector<32x32xf32>
    %118 = vector.broadcast %5 : vector<1x32xf32> to vector<32x32xf32>
    %119 = arith.mulf %117, %118 : vector<32x32xf32>
    %120 = vector.broadcast %6 : vector<1x32xf32> to vector<32x32xf32>
    %121 = arith.addf %119, %120 : vector<32x32xf32>
    %122 = vector.broadcast %12 : vector<32x1xf32> to vector<32x32xf32>
    %123 = arith.mulf %121, %122 : vector<32x32xf32>
    %cst_44 = arith.constant dense<0.000000e+00> : vector<32x96xf32>
    %124 = tpu.matmul %123, %37, %cst_44 {dimension_numbers = #tpu.dot_dimension_numbers<[1], [0], [0], [1], [0, 0, 1, 1], [], []>} : vector<32x32xf32>, vector<32x96xf32>, vector<32x96xf32> -> vector<32x96xf32>
    %125 = vector.broadcast %38 : vector<1x96xf32> to vector<32x96xf32>
    %126 = arith.addf %124, %125 : vector<32x96xf32>
    %127 = vector.extract_strided_slice %126 {offsets = [0, 0], sizes = [32, 32], strides = [1, 1]} : vector<32x96xf32> to vector<32x32xf32>
    %128 = vector.shape_cast %127 : vector<32x32xf32> to vector<4x8x32xf32>
    %129 = vector.extract_strided_slice %126 {offsets = [0, 32], sizes = [32, 32], strides = [1, 1]} : vector<32x96xf32> to vector<32x32xf32>
    %130 = vector.shape_cast %129 : vector<32x32xf32> to vector<4x8x32xf32>
    %131 = vector.extract_strided_slice %126 {offsets = [0, 64], sizes = [32, 32], strides = [1, 1]} : vector<32x96xf32> to vector<32x32xf32>
    %132 = vector.shape_cast %131 : vector<32x32xf32> to vector<4x8x32xf32>
    "tpu.trace_start"() <{level = 10 : i32, message = "bqd,bkd->bqk"}> : () -> ()
    %cst_45 = arith.constant dense<0.000000e+00> : vector<4x8x8xf32>
    %133 = tpu.matmul %128, %130, %cst_45 {dimension_numbers = #tpu.dot_dimension_numbers<[2], [2], [1], [1], [0, 0, 0, 1, 1, 1], [0], [0]>} : vector<4x8x32xf32>, vector<4x8x32xf32>, vector<4x8x8xf32> -> vector<4x8x8xf32>
    %cst_46 = arith.constant -1.000000e+30 : f32
    "tpu.trace_stop"() : () -> ()
    %134 = vector.shape_cast %36 : vector<1x8x8xi1> to vector<1x8x8xi1>
    %135 = vector.broadcast %134 : vector<1x8x8xi1> to vector<4x8x8xi1>
    %136 = vector.broadcast %cst_46 : f32 to vector<4x8x8xf32>
    %137 = arith.select %135, %133, %136 : vector<4x8x8xi1>, vector<4x8x8xf32>
    %cst_47 = arith.constant dense<0xFF800000> : vector<4x8xf32>
    %138 = vector.multi_reduction <maximumf>, %137, %cst_47 [2] : vector<4x8x8xf32> to vector<4x8xf32>
    %139 = vector.shape_cast %138 : vector<4x8xf32> to vector<4x8x1xf32>
    %140 = vector.broadcast %139 : vector<4x8x1xf32> to vector<4x8x8xf32>
    %141 = arith.subf %137, %140 : vector<4x8x8xf32>
    %142 = math.exp %141 : vector<4x8x8xf32>
    %cst_48 = arith.constant dense<0.000000e+00> : vector<4x8xf32>
    %143 = vector.multi_reduction <add>, %142, %cst_48 [2] : vector<4x8x8xf32> to vector<4x8xf32>
    %144 = vector.shape_cast %143 : vector<4x8xf32> to vector<4x8x1xf32>
    %145 = tpu.reciprocal %144 : vector<4x8x1xf32> -> vector<4x8x1xf32>
    %146 = vector.broadcast %145 : vector<4x8x1xf32> to vector<4x8x8xf32>
    %147 = arith.mulf %142, %146 : vector<4x8x8xf32>
    "tpu.trace_start"() <{level = 10 : i32, message = "bqk,bkd->bqd"}> : () -> ()
    %cst_49 = arith.constant dense<0.000000e+00> : vector<4x8x32xf32>
    %148 = tpu.matmul %147, %132, %cst_49 {dimension_numbers = #tpu.dot_dimension_numbers<[2], [1], [1], [2], [0, 0, 0, 1, 1, 2], [0], [0]>} : vector<4x8x8xf32>, vector<4x8x32xf32>, vector<4x8x32xf32> -> vector<4x8x32xf32>
    "tpu.trace_stop"() : () -> ()
    %149 = vector.shape_cast %148 : vector<4x8x32xf32> to vector<32x32xf32>
    %cst_50 = arith.constant dense<0.000000e+00> : vector<32x32xf32>
    %150 = tpu.matmul %149, %39, %cst_50 {dimension_numbers = #tpu.dot_dimension_numbers<[1], [0], [0], [1], [0, 0, 1, 1], [], []>} : vector<32x32xf32>, vector<32x32xf32>, vector<32x32xf32> -> vector<32x32xf32>
    %151 = vector.broadcast %1 : vector<1x32xf32> to vector<32x32xf32>
    %152 = arith.addf %150, %151 : vector<32x32xf32>
    %153 = arith.addf %123, %152 : vector<32x32xf32>
    %cst_51 = arith.constant dense<0.000000e+00> : vector<32xf32>
    %154 = vector.multi_reduction <add>, %153, %cst_51 [1] : vector<32x32xf32> to vector<32xf32>
    %155 = vector.shape_cast %154 : vector<32xf32> to vector<32x1xf32>
    %cst_52 = arith.constant 3.200000e+01 : f32
    %156 = vector.broadcast %cst_52 : f32 to vector<32x1xf32>
    %157 = arith.divf %155, %156 : vector<32x1xf32>
    %158 = vector.broadcast %157 : vector<32x1xf32> to vector<32x32xf32>
    %159 = arith.subf %153, %158 : vector<32x32xf32>
    %160 = arith.mulf %159, %159 : vector<32x32xf32>
    %cst_53 = arith.constant dense<0.000000e+00> : vector<32xf32>
    %161 = vector.multi_reduction <add>, %160, %cst_53 [1] : vector<32x32xf32> to vector<32xf32>
    %162 = vector.shape_cast %161 : vector<32xf32> to vector<32x1xf32>
    %cst_54 = arith.constant 3.200000e+01 : f32
    %163 = vector.broadcast %cst_54 : f32 to vector<32x1xf32>
    %164 = arith.divf %162, %163 : vector<32x1xf32>
    %cst_55 = arith.constant 9.99999974E-6 : f32
    %165 = vector.broadcast %cst_55 : f32 to vector<32x1xf32>
    %166 = arith.addf %164, %165 : vector<32x1xf32>
    %167 = math.rsqrt %166 : vector<32x1xf32>
    %168 = vector.broadcast %167 : vector<32x1xf32> to vector<32x32xf32>
    %169 = arith.mulf %159, %168 : vector<32x32xf32>
    %170 = vector.broadcast %3 : vector<1x32xf32> to vector<32x32xf32>
    %171 = arith.mulf %169, %170 : vector<32x32xf32>
    %172 = vector.broadcast %4 : vector<1x32xf32> to vector<32x32xf32>
    %173 = arith.addf %171, %172 : vector<32x32xf32>
    %cst_56 = arith.constant dense<0.000000e+00> : vector<32x64xf32>
    %174 = tpu.matmul %173, %40, %cst_56 {dimension_numbers = #tpu.dot_dimension_numbers<[1], [0], [0], [1], [0, 0, 1, 1], [], []>} : vector<32x32xf32>, vector<32x64xf32>, vector<32x64xf32> -> vector<32x64xf32>
    %175 = vector.broadcast %41 : vector<1x64xf32> to vector<32x64xf32>
    %176 = arith.addf %174, %175 : vector<32x64xf32>
    %cst_57 = arith.constant 0.000000e+00 : f32
    %177 = vector.broadcast %cst_57 : f32 to vector<32x64xf32>
    %178 = arith.maximumf %176, %177 : vector<32x64xf32>
    %cst_58 = arith.constant dense<0.000000e+00> : vector<32x32xf32>
    %179 = tpu.matmul %178, %42, %cst_58 {dimension_numbers = #tpu.dot_dimension_numbers<[1], [0], [0], [1], [0, 0, 1, 1], [], []>} : vector<32x64xf32>, vector<64x32xf32>, vector<32x32xf32> -> vector<32x32xf32>
    %180 = vector.broadcast %2 : vector<1x32xf32> to vector<32x32xf32>
    %181 = arith.addf %179, %180 : vector<32x32xf32>
    %182 = arith.addf %173, %181 : vector<32x32xf32>
    %cst_59 = arith.constant dense<0.000000e+00> : vector<32xf32>
    %183 = vector.multi_reduction <add>, %182, %cst_59 [1] : vector<32x32xf32> to vector<32xf32>
    %184 = vector.shape_cast %183 : vector<32xf32> to vector<32x1xf32>
    %cst_60 = arith.constant 3.200000e+01 : f32
    %185 = vector.broadcast %cst_60 : f32 to vector<32x1xf32>
    %186 = arith.divf %184, %185 : vector<32x1xf32>
    %187 = vector.broadcast %186 : vector<32x1xf32> to vector<32x32xf32>
    %188 = arith.subf %182, %187 : vector<32x32xf32>
    %189 = arith.mulf %188, %188 : vector<32x32xf32>
    %cst_61 = arith.constant dense<0.000000e+00> : vector<32xf32>
    %190 = vector.multi_reduction <add>, %189, %cst_61 [1] : vector<32x32xf32> to vector<32xf32>
    %191 = vector.shape_cast %190 : vector<32xf32> to vector<32x1xf32>
    %cst_62 = arith.constant 3.200000e+01 : f32
    %192 = vector.broadcast %cst_62 : f32 to vector<32x1xf32>
    %193 = arith.divf %191, %192 : vector<32x1xf32>
    %cst_63 = arith.constant 9.99999974E-6 : f32
    %194 = vector.broadcast %cst_63 : f32 to vector<32x1xf32>
    %195 = arith.addf %193, %194 : vector<32x1xf32>
    %196 = math.rsqrt %195 : vector<32x1xf32>
    %197 = vector.broadcast %196 : vector<32x1xf32> to vector<32x32xf32>
    %198 = arith.mulf %188, %197 : vector<32x32xf32>
    %199 = vector.broadcast %5 : vector<1x32xf32> to vector<32x32xf32>
    %200 = arith.mulf %198, %199 : vector<32x32xf32>
    %201 = vector.broadcast %6 : vector<1x32xf32> to vector<32x32xf32>
    %202 = arith.addf %200, %201 : vector<32x32xf32>
    %c0_64 = arith.constant 0 : index
    %c0_65 = arith.constant 0 : index
    %203 = vector.load %arg12[%c0_64, %c0_65] : memref<64x32xf32, #tpu.memory_space<vmem>>, vector<64x32xf32>
    %204 = vector.extract_strided_slice %203 {offsets = [0, 0], sizes = [32, 32], strides = [1, 1]} : vector<64x32xf32> to vector<32x32xf32>
    %cst_66 = arith.constant dense<0.000000e+00> : vector<32x32xf32>
    %205 = tpu.matmul %121, %204, %cst_66 {dimension_numbers = #tpu.dot_dimension_numbers<[1], [0], [0], [1], [0, 0, 1, 1], [], []>} : vector<32x32xf32>, vector<32x32xf32>, vector<32x32xf32> -> vector<32x32xf32>
    %206 = vector.extract_strided_slice %203 {offsets = [32, 0], sizes = [32, 32], strides = [1, 1]} : vector<64x32xf32> to vector<32x32xf32>
    %cst_67 = arith.constant dense<0.000000e+00> : vector<32x32xf32>
    %207 = tpu.matmul %202, %206, %cst_67 {dimension_numbers = #tpu.dot_dimension_numbers<[1], [0], [0], [1], [0, 0, 1, 1], [], []>} : vector<32x32xf32>, vector<32x32xf32>, vector<32x32xf32> -> vector<32x32xf32>
    %208 = arith.addf %205, %207 : vector<32x32xf32>
    %209 = vector.broadcast %7 : vector<1x32xf32> to vector<32x32xf32>
    %210 = arith.addf %208, %209 : vector<32x32xf32>
    %c0_68 = arith.constant 0 : index
    %c0_69 = arith.constant 0 : index
    %211 = vector.load %arg14[%c0_68, %c0_69] : memref<32x32xf32, #tpu.memory_space<vmem>>, vector<32x32xf32>
    tpu.vector_store %arg14[%c0_68, %c0_69], %210 {strides = array<i32>} : memref<32x32xf32, #tpu.memory_space<vmem>>, vector<32x32xf32>,
    return
  }
  func.func @transform_0(%arg0: i32) -> (i32, i32) {
    %c0_i32 = arith.constant 0 : i32
    %c0_i32_0 = arith.constant 0 : i32
    return %arg0, %c0_i32 : i32, i32
  }
  func.func @transform_1(%arg0: i32) -> (i32, i32) {
    %c0_i32 = arith.constant 0 : i32
    %c0_i32_0 = arith.constant 0 : i32
    return %arg0, %c0_i32 : i32, i32
  }
  func.func @transform_2(%arg0: i32) -> (i32, i32) {
    %c0_i32 = arith.constant 0 : i32
    %c0_i32_0 = arith.constant 0 : i32
    return %arg0, %c0_i32 : i32, i32
  }
  func.func @transform_3(%arg0: i32) -> (i32, i32) {
    %c0_i32 = arith.constant 0 : i32
    %c0_i32_0 = arith.constant 0 : i32
    %c0_i32_1 = arith.constant 0 : i32
    return %c0_i32, %c0_i32_0 : i32, i32
  }
  func.func @transform_4(%arg0: i32) -> (i32, i32) {
    %c0_i32 = arith.constant 0 : i32
    %c0_i32_0 = arith.constant 0 : i32
    %c0_i32_1 = arith.constant 0 : i32
    return %c0_i32, %c0_i32_0 : i32, i32
  }
  func.func @transform_5(%arg0: i32) -> (i32, i32) {
    %c0_i32 = arith.constant 0 : i32
    %c0_i32_0 = arith.constant 0 : i32
    %c0_i32_1 = arith.constant 0 : i32
    return %c0_i32, %c0_i32_0 : i32, i32
  }
  func.func @transform_6(%arg0: i32) -> (i32, i32) {
    %c0_i32 = arith.constant 0 : i32
    %c0_i32_0 = arith.constant 0 : i32
    %c0_i32_1 = arith.constant 0 : i32
    return %c0_i32, %c0_i32_0 : i32, i32
  }
  func.func @transform_7(%arg0: i32) -> (i32, i32) {
    %c0_i32 = arith.constant 0 : i32
    %c0_i32_0 = arith.constant 0 : i32
    %c0_i32_1 = arith.constant 0 : i32
    return %c0_i32, %c0_i32_0 : i32, i32
  }
  func.func @transform_8(%arg0: i32) -> (i32, i32) {
    %c0_i32 = arith.constant 0 : i32
    %c0_i32_0 = arith.constant 0 : i32
    %c0_i32_1 = arith.constant 0 : i32
    return %c0_i32, %c0_i32_0 : i32, i32
  }
  func.func @transform_9(%arg0: i32) -> (i32, i32) {
    %c0_i32 = arith.constant 0 : i32
    %c0_i32_0 = arith.constant 0 : i32
    %c0_i32_1 = arith.constant 0 : i32
    return %c0_i32, %c0_i32_0 : i32, i32
  }
  func.func @transform_10(%arg0: i32) -> (i32, i32) {
    %c0_i32 = arith.constant 0 : i32
    %c0_i32_0 = arith.constant 0 : i32
    %c0_i32_1 = arith.constant 0 : i32
    return %c0_i32, %c0_i32_0 : i32, i32
  }
  func.func @transform_11(%arg0: i32) -> (i32, i32) {
    %c0_i32 = arith.constant 0 : i32
    %c0_i32_0 = arith.constant 0 : i32
    %c0_i32_1 = arith.constant 0 : i32
    return %c0_i32, %c0_i32_0 : i32, i32
  }
  func.func @transform_12(%arg0: i32) -> (i32, i32) {
    %c0_i32 = arith.constant 0 : i32
    %c0_i32_0 = arith.constant 0 : i32
    %c0_i32_1 = arith.constant 0 : i32
    return %c0_i32, %c0_i32_0 : i32, i32
  }
  func.func @transform_13(%arg0: i32) -> (i32, i32) {
    %c0_i32 = arith.constant 0 : i32
    %c0_i32_0 = arith.constant 0 : i32
    return %arg0, %c0_i32 : i32, i32
  }
}

module attributes {stable_mosaic.version = 11 : i64} {
  func.func @_log2feats_kernel(%arg0: i32, %arg1: memref<32x32xf32, #tpu.memory_space<vmem>>, %arg2: memref<32x32xf32, #tpu.memory_space<vmem>>, %arg3: memref<32x3xf32, #tpu.memory_space<vmem>>, %arg4: memref<8x32xf32, #tpu.memory_space<vmem>>, %arg5: memref<64x32xf32, #tpu.memory_space<vmem>>, %arg6: memref<32x96xf32, #tpu.memory_space<vmem>>, %arg7: memref<1x96xf32, #tpu.memory_space<vmem>>, %arg8: memref<32x32xf32, #tpu.memory_space<vmem>>, %arg9: memref<32x64xf32, #tpu.memory_space<vmem>>, %arg10: memref<1x64xf32, #tpu.memory_space<vmem>>, %arg11: memref<64x32xf32, #tpu.memory_space<vmem>>, %arg12: memref<64x32xf32, #tpu.memory_space<vmem>>, %arg13: memref<8x32xf32, #tpu.memory_space<vmem>>, %arg14: memref<32x32xf32, #tpu.memory_space<vmem>>) attributes {dimension_semantics = [#tpu.dimension_semantics<parallel>], iteration_bounds = array<i64: 2>, scalar_prefetch = 0 : i64, scratch_operands = 0 : i64, tpu.core_type = #tpu.core_type<tc>, window_params = [{transform_indices = @transform_0, window_bounds = array<i64: 32, 32>}, {transform_indices = @transform_1, window_bounds = array<i64: 32, 32>}, {transform_indices = @transform_2, window_bounds = array<i64: 32, 3>}, {pipeline_mode = #tpu.pipeline_mode<synchronous>, transform_indices = @transform_3, window_bounds = array<i64: 8, 32>}, {pipeline_mode = #tpu.pipeline_mode<synchronous>, transform_indices = @transform_4, window_bounds = array<i64: 64, 32>}, {pipeline_mode = #tpu.pipeline_mode<synchronous>, transform_indices = @transform_5, window_bounds = array<i64: 32, 96>}, {pipeline_mode = #tpu.pipeline_mode<synchronous>, transform_indices = @transform_6, window_bounds = array<i64: 1, 96>}, {pipeline_mode = #tpu.pipeline_mode<synchronous>, transform_indices = @transform_7, window_bounds = array<i64: 32, 32>}, {pipeline_mode = #tpu.pipeline_mode<synchronous>, transform_indices = @transform_8, window_bounds = array<i64: 32, 64>}, {pipeline_mode = #tpu.pipeline_mode<synchronous>, transform_indices = @transform_9, window_bounds = array<i64: 1, 64>}, {pipeline_mode = #tpu.pipeline_mode<synchronous>, transform_indices = @transform_10, window_bounds = array<i64: 64, 32>}, {pipeline_mode = #tpu.pipeline_mode<synchronous>, transform_indices = @transform_11, window_bounds = array<i64: 64, 32>}, {pipeline_mode = #tpu.pipeline_mode<synchronous>, transform_indices = @transform_12, window_bounds = array<i64: 8, 32>}, {transform_indices = @transform_13, window_bounds = array<i64: 32, 32>}]} {
    %c0 = arith.constant 0 : index
    %c0_0 = arith.constant 0 : index
    %0 = vector.load %arg13[%c0, %c0_0] : memref<8x32xf32, #tpu.memory_space<vmem>>, vector<8x32xf32>
    %1 = vector.extract_strided_slice %0 {offsets = [0, 0], sizes = [1, 32], strides = [1, 1]} : vector<8x32xf32> to vector<1x32xf32>
    %2 = vector.extract_strided_slice %0 {offsets = [1, 0], sizes = [1, 32], strides = [1, 1]} : vector<8x32xf32> to vector<1x32xf32>
    %3 = vector.extract_strided_slice %0 {offsets = [2, 0], sizes = [1, 32], strides = [1, 1]} : vector<8x32xf32> to vector<1x32xf32>
    %4 = vector.extract_strided_slice %0 {offsets = [3, 0], sizes = [1, 32], strides = [1, 1]} : vector<8x32xf32> to vector<1x32xf32>
    %5 = vector.extract_strided_slice %0 {offsets = [4, 0], sizes = [1, 32], strides = [1, 1]} : vector<8x32xf32> to vector<1x32xf32>
    %6 = vector.extract_strided_slice %0 {offsets = [5, 0], sizes = [1, 32], strides = [1, 1]} : vector<8x32xf32> to vector<1x32xf32>
    %7 = vector.extract_strided_slice %0 {offsets = [6, 0], sizes = [1, 32], strides = [1, 1]} : vector<8x32xf32> to vector<1x32xf32>
    %8 = vector.extract_strided_slice %0 {offsets = [7, 0], sizes = [1, 32], strides = [1, 1]} : vector<8x32xf32> to vector<1x32xf32>
    %c0_1 = arith.constant 0 : index
    %c0_2 = arith.constant 0 : index
    %9 = vector.load %arg3[%c0_1, %c0_2] : memref<32x3xf32, #tpu.memory_space<vmem>>, vector<32x3xf32>
    %10 = vector.extract_strided_slice %9 {offsets = [0, 0], sizes = [32, 1], strides = [1, 1]} : vector<32x3xf32> to vector<32x1xf32>
    %11 = vector.extract_strided_slice %9 {offsets = [0, 1], sizes = [32, 1], strides = [1, 1]} : vector<32x3xf32> to vector<32x1xf32>
    %12 = vector.extract_strided_slice %9 {offsets = [0, 2], sizes = [32, 1], strides = [1, 1]} : vector<32x3xf32> to vector<32x1xf32>
    %c0_3 = arith.constant 0 : index
    %c0_4 = arith.constant 0 : index
    %13 = vector.load %arg5[%c0_3, %c0_4] : memref<64x32xf32, #tpu.memory_space<vmem>>, vector<64x32xf32>
    %c0_5 = arith.constant 0 : index
    %c0_6 = arith.constant 0 : index
    %14 = vector.load %arg1[%c0_5, %c0_6] : memref<32x32xf32, #tpu.memory_space<vmem>>, vector<32x32xf32>
    %15 = vector.extract_strided_slice %13 {offsets = [0, 0], sizes = [32, 32], strides = [1, 1]} : vector<64x32xf32> to vector<32x32xf32>
    %cst = arith.constant dense<0.000000e+00> : vector<32x32xf32>
    %16 = tpu.matmul %14, %15, %cst {dimension_numbers = #tpu.dot_dimension_numbers<[1], [0], [0], [1], [0, 0, 1, 1], [], []>} : vector<32x32xf32>, vector<32x32xf32>, vector<32x32xf32> -> vector<32x32xf32>
    %c0_7 = arith.constant 0 : index
    %c0_8 = arith.constant 0 : index
    %17 = vector.load %arg2[%c0_7, %c0_8] : memref<32x32xf32, #tpu.memory_space<vmem>>, vector<32x32xf32>
    %18 = vector.extract_strided_slice %13 {offsets = [32, 0], sizes = [32, 32], strides = [1, 1]} : vector<64x32xf32> to vector<32x32xf32>
    %cst_9 = arith.constant dense<0.000000e+00> : vector<32x32xf32>
    %19 = tpu.matmul %17, %18, %cst_9 {dimension_numbers = #tpu.dot_dimension_numbers<[1], [0], [0], [1], [0, 0, 1, 1], [], []>} : vector<32x32xf32>, vector<32x32xf32>, vector<32x32xf32> -> vector<32x32xf32>
    %20 = arith.addf %16, %19 : vector<32x32xf32>
    %21 = vector.broadcast %10 : vector<32x1xf32> to vector<32x32xf32>
    %22 = vector.broadcast %8 : vector<1x32xf32> to vector<32x32xf32>
    %23 = arith.mulf %21, %22 : vector<32x32xf32>
    %24 = arith.addf %20, %23 : vector<32x32xf32>
    %25 = vector.shape_cast %24 : vector<32x32xf32> to vector<4x8x32xf32>
    %c0_10 = arith.constant 0 : index
    %c0_11 = arith.constant 0 : index
    %26 = vector.load %arg4[%c0_10, %c0_11] : memref<8x32xf32, #tpu.memory_space<vmem>>, vector<8x32xf32>
    %27 = vector.shape_cast %26 : vector<8x32xf32> to vector<1x8x32xf32>
    %28 = vector.broadcast %27 : vector<1x8x32xf32> to vector<4x8x32xf32>
    %29 = arith.addf %25, %28 : vector<4x8x32xf32>
    %30 = vector.shape_cast %29 : vector<4x8x32xf32> to vector<32x32xf32>
    %31 = vector.broadcast %11 : vector<32x1xf32> to vector<32x32xf32>
    %32 = arith.mulf %30, %31 : vector<32x32xf32>
    %33 = tpu.iota {dimensions = array<i32: 0>} : vector<8x8xi32>
    %34 = tpu.iota {dimensions = array<i32: 1>} : vector<8x8xi32>
    %35 = arith.cmpi sle, %34, %33 : vector<8x8xi32>
    %36 = vector.shape_cast %35 : vector<8x8xi1> to vector<1x8x8xi1>
    %c0_12 = arith.constant 0 : index
    %c0_13 = arith.constant 0 : index
    %37 = vector.load %arg6[%c0_12, %c0_13] : memref<32x96xf32, #tpu.memory_space<vmem>>, vector<32x96xf32>
    %c0_14 = arith.constant 0 : index
    %c0_15 = arith.constant 0 : index
    %38 = vector.load %arg7[%c0_14, %c0_15] : memref<1x96xf32, #tpu.memory_space<vmem>>, vector<1x96xf32>
    %c0_16 = arith.constant 0 : index
    %c0_17 = arith.constant 0 : index
    %39 = vector.load %arg8[%c0_16, %c0_17] : memref<32x32xf32, #tpu.memory_space<vmem>>, vector<32x32xf32>
    %c0_18 = arith.constant 0 : index
    %c0_19 = arith.constant 0 : index
    %40 = vector.load %arg9[%c0_18, %c0_19] : memref<32x64xf32, #tpu.memory_space<vmem>>, vector<32x64xf32>
    %c0_20 = arith.constant 0 : index
    %c0_21 = arith.constant 0 : index
    %41 = vector.load %arg10[%c0_20, %c0_21] : memref<1x64xf32, #tpu.memory_space<vmem>>, vector<1x64xf32>
    %c0_22 = arith.constant 0 : index
    %c0_23 = arith.constant 0 : index
    %42 = vector.load %arg11[%c0_22, %c0_23] : memref<64x32xf32, #tpu.memory_space<vmem>>, vector<64x32xf32>
    %cst_24 = arith.constant dense<0.000000e+00> : vector<32x96xf32>
    %43 = tpu.matmul %32, %37, %cst_24 {dimension_numbers = #tpu.dot_dimension_numbers<[1], [0], [0], [1], [0, 0, 1, 1], [], []>} : vector<32x32xf32>, vector<32x96xf32>, vector<32x96xf32> -> vector<32x96xf32>
    %44 = vector.broadcast %38 : vector<1x96xf32> to vector<32x96xf32>
    %45 = arith.addf %43, %44 : vector<32x96xf32>
    %46 = vector.extract_strided_slice %45 {offsets = [0, 0], sizes = [32, 32], strides = [1, 1]} : vector<32x96xf32> to vector<32x32xf32>
    %47 = vector.shape_cast %46 : vector<32x32xf32> to vector<4x8x32xf32>
    %48 = vector.extract_strided_slice %45 {offsets = [0, 32], sizes = [32, 32], strides = [1, 1]} : vector<32x96xf32> to vector<32x32xf32>
    %49 = vector.shape_cast %48 : vector<32x32xf32> to vector<4x8x32xf32>
    %50 = vector.extract_strided_slice %45 {offsets = [0, 64], sizes = [32, 32], strides = [1, 1]} : vector<32x96xf32> to vector<32x32xf32>
    %51 = vector.shape_cast %50 : vector<32x32xf32> to vector<4x8x32xf32>
    "tpu.trace_start"() <{level = 10 : i32, message = "bqd,bkd->bqk"}> : () -> ()
    %cst_25 = arith.constant dense<0.000000e+00> : vector<4x8x8xf32>
    %52 = tpu.matmul %47, %49, %cst_25 {dimension_numbers = #tpu.dot_dimension_numbers<[2], [2], [1], [1], [0, 0, 0, 1, 1, 1], [0], [0]>} : vector<4x8x32xf32>, vector<4x8x32xf32>, vector<4x8x8xf32> -> vector<4x8x8xf32>
    %cst_26 = arith.constant -1.000000e+30 : f32
    "tpu.trace_stop"() : () -> ()
    %53 = vector.shape_cast %36 : vector<1x8x8xi1> to vector<1x8x8xi1>
    %54 = vector.broadcast %53 : vector<1x8x8xi1> to vector<4x8x8xi1>
    %55 = vector.broadcast %cst_26 : f32 to vector<4x8x8xf32>
    %56 = arith.select %54, %52, %55 : vector<4x8x8xi1>, vector<4x8x8xf32>
    %cst_27 = arith.constant dense<0xFF800000> : vector<4x8xf32>
    %57 = vector.multi_reduction <maximumf>, %56, %cst_27 [2] : vector<4x8x8xf32> to vector<4x8xf32>
    %58 = vector.shape_cast %57 : vector<4x8xf32> to vector<4x8x1xf32>
    %59 = vector.broadcast %58 : vector<4x8x1xf32> to vector<4x8x8xf32>
    %60 = arith.subf %56, %59 : vector<4x8x8xf32>
    %61 = math.exp %60 : vector<4x8x8xf32>
    %cst_28 = arith.constant dense<0.000000e+00> : vector<4x8xf32>
    %62 = vector.multi_reduction <add>, %61, %cst_28 [2] : vector<4x8x8xf32> to vector<4x8xf32>
    %63 = vector.shape_cast %62 : vector<4x8xf32> to vector<4x8x1xf32>
    %64 = tpu.reciprocal %63 : vector<4x8x1xf32> -> vector<4x8x1xf32>
    %65 = vector.broadcast %64 : vector<4x8x1xf32> to vector<4x8x8xf32>
    %66 = arith.mulf %61, %65 : vector<4x8x8xf32>
    "tpu.trace_start"() <{level = 10 : i32, message = "bqk,bkd->bqd"}> : () -> ()
    %cst_29 = arith.constant dense<0.000000e+00> : vector<4x8x32xf32>
    %67 = tpu.matmul %66, %51, %cst_29 {dimension_numbers = #tpu.dot_dimension_numbers<[2], [1], [1], [2], [0, 0, 0, 1, 1, 2], [0], [0]>} : vector<4x8x8xf32>, vector<4x8x32xf32>, vector<4x8x32xf32> -> vector<4x8x32xf32>
    "tpu.trace_stop"() : () -> ()
    %68 = vector.shape_cast %67 : vector<4x8x32xf32> to vector<32x32xf32>
    %cst_30 = arith.constant dense<0.000000e+00> : vector<32x32xf32>
    %69 = tpu.matmul %68, %39, %cst_30 {dimension_numbers = #tpu.dot_dimension_numbers<[1], [0], [0], [1], [0, 0, 1, 1], [], []>} : vector<32x32xf32>, vector<32x32xf32>, vector<32x32xf32> -> vector<32x32xf32>
    %70 = vector.broadcast %1 : vector<1x32xf32> to vector<32x32xf32>
    %71 = arith.addf %69, %70 : vector<32x32xf32>
    %72 = arith.addf %32, %71 : vector<32x32xf32>
    %cst_31 = arith.constant dense<0.000000e+00> : vector<32xf32>
    %73 = vector.multi_reduction <add>, %72, %cst_31 [1] : vector<32x32xf32> to vector<32xf32>
    %74 = vector.shape_cast %73 : vector<32xf32> to vector<32x1xf32>
    %cst_32 = arith.constant 3.200000e+01 : f32
    %75 = vector.broadcast %cst_32 : f32 to vector<32x1xf32>
    %76 = arith.divf %74, %75 : vector<32x1xf32>
    %77 = vector.broadcast %76 : vector<32x1xf32> to vector<32x32xf32>
    %78 = arith.subf %72, %77 : vector<32x32xf32>
    %79 = arith.mulf %78, %78 : vector<32x32xf32>
    %cst_33 = arith.constant dense<0.000000e+00> : vector<32xf32>
    %80 = vector.multi_reduction <add>, %79, %cst_33 [1] : vector<32x32xf32> to vector<32xf32>
    %81 = vector.shape_cast %80 : vector<32xf32> to vector<32x1xf32>
    %cst_34 = arith.constant 3.200000e+01 : f32
    %82 = vector.broadcast %cst_34 : f32 to vector<32x1xf32>
    %83 = arith.divf %81, %82 : vector<32x1xf32>
    %cst_35 = arith.constant 9.99999974E-6 : f32
    %84 = vector.broadcast %cst_35 : f32 to vector<32x1xf32>
    %85 = arith.addf %83, %84 : vector<32x1xf32>
    %86 = math.rsqrt %85 : vector<32x1xf32>
    %87 = vector.broadcast %86 : vector<32x1xf32> to vector<32x32xf32>
    %88 = arith.mulf %78, %87 : vector<32x32xf32>
    %89 = vector.broadcast %3 : vector<1x32xf32> to vector<32x32xf32>
    %90 = arith.mulf %88, %89 : vector<32x32xf32>
    %91 = vector.broadcast %4 : vector<1x32xf32> to vector<32x32xf32>
    %92 = arith.addf %90, %91 : vector<32x32xf32>
    %cst_36 = arith.constant dense<0.000000e+00> : vector<32x64xf32>
    %93 = tpu.matmul %92, %40, %cst_36 {dimension_numbers = #tpu.dot_dimension_numbers<[1], [0], [0], [1], [0, 0, 1, 1], [], []>} : vector<32x32xf32>, vector<32x64xf32>, vector<32x64xf32> -> vector<32x64xf32>
    %94 = vector.broadcast %41 : vector<1x64xf32> to vector<32x64xf32>
    %95 = arith.addf %93, %94 : vector<32x64xf32>
    %cst_37 = arith.constant 0.000000e+00 : f32
    %96 = vector.broadcast %cst_37 : f32 to vector<32x64xf32>
    %97 = arith.maximumf %95, %96 : vector<32x64xf32>
    %cst_38 = arith.constant dense<0.000000e+00> : vector<32x32xf32>
    %98 = tpu.matmul %97, %42, %cst_38 {dimension_numbers = #tpu.dot_dimension_numbers<[1], [0], [0], [1], [0, 0, 1, 1], [], []>} : vector<32x64xf32>, vector<64x32xf32>, vector<32x32xf32> -> vector<32x32xf32>
    %99 = vector.broadcast %2 : vector<1x32xf32> to vector<32x32xf32>
    %100 = arith.addf %98, %99 : vector<32x32xf32>
    %101 = arith.addf %92, %100 : vector<32x32xf32>
    %cst_39 = arith.constant dense<0.000000e+00> : vector<32xf32>
    %102 = vector.multi_reduction <add>, %101, %cst_39 [1] : vector<32x32xf32> to vector<32xf32>
    %103 = vector.shape_cast %102 : vector<32xf32> to vector<32x1xf32>
    %cst_40 = arith.constant 3.200000e+01 : f32
    %104 = vector.broadcast %cst_40 : f32 to vector<32x1xf32>
    %105 = arith.divf %103, %104 : vector<32x1xf32>
    %106 = vector.broadcast %105 : vector<32x1xf32> to vector<32x32xf32>
    %107 = arith.subf %101, %106 : vector<32x32xf32>
    %108 = arith.mulf %107, %107 : vector<32x32xf32>
    %cst_41 = arith.constant dense<0.000000e+00> : vector<32xf32>
    %109 = vector.multi_reduction <add>, %108, %cst_41 [1] : vector<32x32xf32> to vector<32xf32>
    %110 = vector.shape_cast %109 : vector<32xf32> to vector<32x1xf32>
    %cst_42 = arith.constant 3.200000e+01 : f32
    %111 = vector.broadcast %cst_42 : f32 to vector<32x1xf32>
    %112 = arith.divf %110, %111 : vector<32x1xf32>
    %cst_43 = arith.constant 9.99999974E-6 : f32
    %113 = vector.broadcast %cst_43 : f32 to vector<32x1xf32>
    %114 = arith.addf %112, %113 : vector<32x1xf32>
    %115 = math.rsqrt %114 : vector<32x1xf32>
    %116 = vector.broadcast %115 : vector<32x1xf32> to vector<32x32xf32>
    %117 = arith.mulf %107, %116 : vector<32x32xf32>
    %118 = vector.broadcast %5 : vector<1x32xf32> to vector<32x32xf32>
    %119 = arith.mulf %117, %118 : vector<32x32xf32>
    %120 = vector.broadcast %6 : vector<1x32xf32> to vector<32x32xf32>
    %121 = arith.addf %119, %120 : vector<32x32xf32>
    %122 = vector.broadcast %12 : vector<32x1xf32> to vector<32x32xf32>
    %123 = arith.mulf %121, %122 : vector<32x32xf32>
    %cst_44 = arith.constant dense<0.000000e+00> : vector<32x96xf32>
    %124 = tpu.matmul %123, %37, %cst_44 {dimension_numbers = #tpu.dot_dimension_numbers<[1], [0], [0], [1], [0, 0, 1, 1], [], []>} : vector<32x32xf32>, vector<32x96xf32>, vector<32x96xf32> -> vector<32x96xf32>
    %125 = vector.broadcast %38 : vector<1x96xf32> to vector<32x96xf32>
    %126 = arith.addf %124, %125 : vector<32x96xf32>
    %127 = vector.extract_strided_slice %126 {offsets = [0, 0], sizes = [32, 32], strides = [1, 1]} : vector<32x96xf32> to vector<32x32xf32>
    %128 = vector.shape_cast %127 : vector<32x32xf32> to vector<4x8x32xf32>
    %129 = vector.extract_strided_slice %126 {offsets = [0, 32], sizes = [32, 32], strides = [1, 1]} : vector<32x96xf32> to vector<32x32xf32>
    %130 = vector.shape_cast %129 : vector<32x32xf32> to vector<4x8x32xf32>
    %131 = vector.extract_strided_slice %126 {offsets = [0, 64], sizes = [32, 32], strides = [1, 1]} : vector<32x96xf32> to vector<32x32xf32>
    %132 = vector.shape_cast %131 : vector<32x32xf32> to vector<4x8x32xf32>
    "tpu.trace_start"() <{level = 10 : i32, message = "bqd,bkd->bqk"}> : () -> ()
    %cst_45 = arith.constant dense<0.000000e+00> : vector<4x8x8xf32>
    %133 = tpu.matmul %128, %130, %cst_45 {dimension_numbers = #tpu.dot_dimension_numbers<[2], [2], [1], [1], [0, 0, 0, 1, 1, 1], [0], [0]>} : vector<4x8x32xf32>, vector<4x8x32xf32>, vector<4x8x8xf32> -> vector<4x8x8xf32>
    %cst_46 = arith.constant -1.000000e+30 : f32
    "tpu.trace_stop"() : () -> ()
    %134 = vector.shape_cast %36 : vector<1x8x8xi1> to vector<1x8x8xi1>
    %135 = vector.broadcast %134 : vector<1x8x8xi1> to vector<4x8x8xi1>
    %136 = vector.broadcast %cst_46 : f32 to vector<4x8x8xf32>
    %137 = arith.select %135, %133, %136 : vector<4x8x8xi1>, vector<4x8x8xf32>
    %cst_47 = arith.constant dense<0xFF800000> : vector<4x8xf32>
    %138 = vector.multi_reduction <maximumf>, %137, %cst_47 [2] : vector<4x8x8xf32> to vector<4x8xf32>
    %139 = vector.shape_cast %138 : vector<4x8xf32> to vector<4x8x1xf32>
    %140 = vector.broadcast %139 : vector<4x8x1xf32> to vector<4x8x8xf32>
    %141 = arith.subf %137, %140 : vector<4x8x8xf32>
    %142 = math.exp %141 : vector<4x8x8xf32>
    %cst_48 = arith.constant dense<0.000000e+00> : vector<4x8xf32>
    %143 = vector.multi_reduction <add>, %142, %cst_48 [2] : vector<4x8x8xf32> to vector<4x8xf32>
    %144 = vector.shape_cast %143 : vector<4x8xf32> to vector<4x8x1xf32>
    %145 = tpu.reciprocal %144 : vector<4x8x1xf32> -> vector<4x8x1xf32>
    %146 = vector.broadcast %145 : vector<4x8x1xf32> to vector<4x8x8xf32>
    %147 = arith.mulf %142, %146 : vector<4x8x8xf32>
    "tpu.trace_start"() <{level = 10 : i32, message = "bqk,bkd->bqd"}> : () -> ()
    %cst_49 = arith.constant dense<0.000000e+00> : vector<4x8x32xf32>
    %148 = tpu.matmul %147, %132, %cst_49 {dimension_numbers = #tpu.dot_dimension_numbers<[2], [1], [1], [2], [0, 0, 0, 1, 1, 2], [0], [0]>} : vector<4x8x8xf32>, vector<4x8x32xf32>, vector<4x8x32xf32> -> vector<4x8x32xf32>
    "tpu.trace_stop"() : () -> ()
    %149 = vector.shape_cast %148 : vector<4x8x32xf32> to vector<32x32xf32>
    %cst_50 = arith.constant dense<0.000000e+00> : vector<32x32xf32>
    %150 = tpu.matmul %149, %39, %cst_50 {dimension_numbers = #tpu.dot_dimension_numbers<[1], [0], [0], [1], [0, 0, 1, 1], [], []>} : vector<32x32xf32>, vector<32x32xf32>, vector<32x32xf32> -> vector<32x32xf32>
    %151 = vector.broadcast %1 : vector<1x32xf32> to vector<32x32xf32>
    %152 = arith.addf %150, %151 : vector<32x32xf32>
    %153 = arith.addf %123, %152 : vector<32x32xf32>
    %cst_51 = arith.constant dense<0.000000e+00> : vector<32xf32>
    %154 = vector.multi_reduction <add>, %153, %cst_51 [1] : vector<32x32xf32> to vector<32xf32>
    %155 = vector.shape_cast %154 : vector<32xf32> to vector<32x1xf32>
    %cst_52 = arith.constant 3.200000e+01 : f32
    %156 = vector.broadcast %cst_52 : f32 to vector<32x1xf32>
    %157 = arith.divf %155, %156 : vector<32x1xf32>
    %158 = vector.broadcast %157 : vector<32x1xf32> to vector<32x32xf32>
    %159 = arith.subf %153, %158 : vector<32x32xf32>
    %160 = arith.mulf %159, %159 : vector<32x32xf32>
    %cst_53 = arith.constant dense<0.000000e+00> : vector<32xf32>
    %161 = vector.multi_reduction <add>, %160, %cst_53 [1] : vector<32x32xf32> to vector<32xf32>
    %162 = vector.shape_cast %161 : vector<32xf32> to vector<32x1xf32>
    %cst_54 = arith.constant 3.200000e+01 : f32
    %163 = vector.broadcast %cst_54 : f32 to vector<32x1xf32>
    %164 = arith.divf %162, %163 : vector<32x1xf32>
    %cst_55 = arith.constant 9.99999974E-6 : f32
    %165 = vector.broadcast %cst_55 : f32 to vector<32x1xf32>
    %166 = arith.addf %164, %165 : vector<32x1xf32>
    %167 = math.rsqrt %166 : vector<32x1xf32>
    %168 = vector.broadcast %167 : vector<32x1xf32> to vector<32x32xf32>
    %169 = arith.mulf %159, %168 : vector<32x32xf32>
    %170 = vector.broadcast %3 : vector<1x32xf32> to vector<32x32xf32>
    %171 = arith.mulf %169, %170 : vector<32x32xf32>
    %172 = vector.broadcast %4 : vector<1x32xf32> to vector<32x32xf32>
    %173 = arith.addf %171, %172 : vector<32x32xf32>
    %cst_56 = arith.constant dense<0.000000e+00> : vector<32x64xf32>
    %174 = tpu.matmul %173, %40, %cst_56 {dimension_numbers = #tpu.dot_dimension_numbers<[1], [0], [0], [1], [0, 0, 1, 1], [], []>} : vector<32x32xf32>, vector<32x64xf32>, vector<32x64xf32> -> vector<32x64xf32>
    %175 = vector.broadcast %41 : vector<1x64xf32> to vector<32x64xf32>
    %176 = arith.addf %174, %175 : vector<32x64xf32>
    %cst_57 = arith.constant 0.000000e+00 : f32
    %177 = vector.broadcast %cst_57 : f32 to vector<32x64xf32>
    %178 = arith.maximumf %176, %177 : vector<32x64xf32>
    %cst_58 = arith.constant dense<0.000000e+00> : vector<32x32xf32>
    %179 = tpu.matmul %178, %42, %cst_58 {dimension_numbers = #tpu.dot_dimension_numbers<[1], [0], [0], [1], [0, 0, 1, 1], [], []>} : vector<32x64xf32>, vector<64x32xf32>, vector<32x32xf32> -> vector<32x32xf32>
    %180 = vector.broadcast %2 : vector<1x32xf32> to vector<32x32xf32>
    %181 = arith.addf %179, %180 : vector<32x32xf32>
    %182 = arith.addf %173, %181 : vector<32x32xf32>
    %cst_59 = arith.constant dense<0.000000e+00> : vector<32xf32>
    %183 = vector.multi_reduction <add>, %182, %cst_59 [1] : vector<32x32xf32> to vector<32xf32>
    %184 = vector.shape_cast %183 : vector<32xf32> to vector<32x1xf32>
    %cst_60 = arith.constant 3.200000e+01 : f32
    %185 = vector.broadcast %cst_60 : f32 to vector<32x1xf32>
    %186 = arith.divf %184, %185 : vector<32x1xf32>
    %187 = vector.broadcast %186 : vector<32x1xf32> to vector<32x32xf32>
    %188 = arith.subf %182, %187 : vector<32x32xf32>
    %189 = arith.mulf %188, %188 : vector<32x32xf32>
    %cst_61 = arith.constant dense<0.000000e+00> : vector<32xf32>
    %190 = vector.multi_reduction <add>, %189, %cst_61 [1] : vector<32x32xf32> to vector<32xf32>
    %191 = vector.shape_cast %190 : vector<32xf32> to vector<32x1xf32>
    %cst_62 = arith.constant 3.200000e+01 : f32
    %192 = vector.broadcast %cst_62 : f32 to vector<32x1xf32>
    %193 = arith.divf %191, %192 : vector<32x1xf32>
    %cst_63 = arith.constant 9.99999974E-6 : f32
    %194 = vector.broadcast %cst_63 : f32 to vector<32x1xf32>
    %195 = arith.addf %193, %194 : vector<32x1xf32>
    %196 = math.rsqrt %195 : vector<32x1xf32>
    %197 = vector.broadcast %196 : vector<32x1xf32> to vector<32x32xf32>
    %198 = arith.mulf %188, %197 : vector<32x32xf32>
    %199 = vector.broadcast %5 : vector<1x32xf32> to vector<32x32xf32>
    %200 = arith.mulf %198, %199 : vector<32x32xf32>
    %201 = vector.broadcast %6 : vector<1x32xf32> to vector<32x32xf32>
    %202 = arith.addf %200, %201 : vector<32x32xf32>
    %c0_64 = arith.constant 0 : index
    %c0_65 = arith.constant 0 : index
    %203 = vector.load %arg12[%c0_64, %c0_65] : memref<64x32xf32, #tpu.memory_space<vmem>>, vector<64x32xf32>
    %204 = vector.extract_strided_slice %203 {offsets = [0, 0], sizes = [32, 32], strides = [1, 1]} : vector<64x32xf32> to vector<32x32xf32>
    %cst_66 = arith.constant dense<0.000000e+00> : vector<32x32xf32>
    %205 = tpu.matmul %121, %204, %cst_66 {dimension_numbers = #tpu.dot_dimension_numbers<[1], [0], [0], [1], [0, 0, 1, 1], [], []>} : vector<32x32xf32>, vector<32x32xf32>, vector<32x32xf32> -> vector<32x32xf32>
    %206 = vector.extract_strided_slice %203 {offsets = [32, 0], sizes = [32, 32], strides = [1, 1]} : vector<64x32xf32> to vector<32x32xf32>
    %cst_67 = arith.constant dense<0.000000e+00> : vector<32x32xf32>
    %207 = tpu.matmul %202, %206, %cst_67 {dimension_numbers = #tpu.dot_dimension_numbers<[1], [0], [0], [1], [0, 0, 1, 1], [], []>} : vector<32x32xf32>, vector<32x32xf32>, vector<32x32xf32> -> vector<32x32xf32>
    %208 = arith.addf %205, %207 : vector<32x32xf32>
    %209 = vector.broadcast %7 : vector<1x32xf32> to vector<32x32xf32>
    %210 = arith.addf %208, %209 : vector<32x32xf32>
    %c0_68 = arith.constant 0 : index
    %c0_69 = arith.constant 0 : index
    %211 = vector.load %arg14[%c0_68, %c0_69] : memref<32x32xf32, #tpu.memory_space<vmem>>, vector<32x32xf32>
    tpu.vector_store %arg14[%c0_68, %c0_69], %210 {strides = array<i32>} : memref<32x32xf32, #tpu.memory_space<vmem>>, vector<32x32xf32>,
    return
  }
  func.func @transform_0(%arg0: i32) -> (i32, i32) {
    %c0_i32 = arith.constant 0 : i32
    %c0_i32_0 = arith.constant 0 : i32
    return %arg0, %c0_i32 : i32, i32
  }
  func.func @transform_1(%arg0: i32) -> (i32, i32) {
    %c0_i32 = arith.constant 0 : i32
    %c0_i32_0 = arith.constant 0 : i32
    return %arg0, %c0_i32 : i32, i32
  }
  func.func @transform_2(%arg0: i32) -> (i32, i32) {
    %c0_i32 = arith.constant 0 : i32
    %c0_i32_0 = arith.constant 0 : i32
    return %arg0, %c0_i32 : i32, i32
  }
  func.func @transform_3(%arg0: i32) -> (i32, i32) {
    %c0_i32 = arith.constant 0 : i32
    %c0_i32_0 = arith.constant 0 : i32
    %c0_i32_1 = arith.constant 0 : i32
    return %c0_i32, %c0_i32_0 : i32, i32
  }
  func.func @transform_4(%arg0: i32) -> (i32, i32) {
    %c0_i32 = arith.constant 0 : i32
    %c0_i32_0 = arith.constant 0 : i32
    %c0_i32_1 = arith.constant 0 : i32
    return %c0_i32, %c0_i32_0 : i32, i32
  }
  func.func @transform_5(%arg0: i32) -> (i32, i32) {
    %c0_i32 = arith.constant 0 : i32
    %c0_i32_0 = arith.constant 0 : i32
    %c0_i32_1 = arith.constant 0 : i32
    return %c0_i32, %c0_i32_0 : i32, i32
  }
  func.func @transform_6(%arg0: i32) -> (i32, i32) {
    %c0_i32 = arith.constant 0 : i32
    %c0_i32_0 = arith.constant 0 : i32
    %c0_i32_1 = arith.constant 0 : i32
    return %c0_i32, %c0_i32_0 : i32, i32
  }
  func.func @transform_7(%arg0: i32) -> (i32, i32) {
    %c0_i32 = arith.constant 0 : i32
    %c0_i32_0 = arith.constant 0 : i32
    %c0_i32_1 = arith.constant 0 : i32
    return %c0_i32, %c0_i32_0 : i32, i32
  }
  func.func @transform_8(%arg0: i32) -> (i32, i32) {
    %c0_i32 = arith.constant 0 : i32
    %c0_i32_0 = arith.constant 0 : i32
    %c0_i32_1 = arith.constant 0 : i32
    return %c0_i32, %c0_i32_0 : i32, i32
  }
  func.func @transform_9(%arg0: i32) -> (i32, i32) {
    %c0_i32 = arith.constant 0 : i32
    %c0_i32_0 = arith.constant 0 : i32
    %c0_i32_1 = arith.constant 0 : i32
    return %c0_i32, %c0_i32_0 : i32, i32
  }
  func.func @transform_10(%arg0: i32) -> (i32, i32) {
    %c0_i32 = arith.constant 0 : i32
    %c0_i32_0 = arith.constant 0 : i32
    %c0_i32_1 = arith.constant 0 : i32
    return %c0_i32, %c0_i32_0 : i32, i32
  }
  func.func @transform_11(%arg0: i32) -> (i32, i32) {
    %c0_i32 = arith.constant 0 : i32
    %c0_i32_0 = arith.constant 0 : i32
    %c0_i32_1 = arith.constant 0 : i32
    return %c0_i32, %c0_i32_0 : i32, i32
  }
  func.func @transform_12(%arg0: i32) -> (i32, i32) {
    %c0_i32 = arith.constant 0 : i32
    %c0_i32_0 = arith.constant 0 : i32
    %c0_i32_1 = arith.constant 0 : i32
    return %c0_i32, %c0_i32_0 : i32, i32
  }
  func.func @transform_13(%arg0: i32) -> (i32, i32) {
    %c0_i32 = arith.constant 0 : i32
    %c0_i32_0 = arith.constant 0 : i32
    return %arg0, %c0_i32 : i32, i32
  }
}

</mosaic_0001>

<bundles_post_ra>
// kernel: tpu_custom_call.1
= control target key start
LH: loop header
LB: loop body
LE: loop exit
PB: predicated region body
PF: predicated region fallthrough
CT: control target
= control target key end

     0   :  { %s2533_s25 = smov 0   ;;  %s3238_s0 = inlined_call_operand.vmem [shape: f32[64,32], index: 0, kind: input, shape index: {}]   ;;  %s3239_s1 = inlined_call_operand.vmem [shape: f32[64,32], index: 1, kind: input, shape index: {}]   ;;  %s3240_s2 = inlined_call_operand.vmem [shape: f32[64,3], index: 2, kind: input, shape index: {}]   ;;  %s3241_s3 = inlined_call_operand.vmem [shape: f32[8,32], index: 3, kind: input, shape index: {}]   ;;  %s3242_s4 = inlined_call_operand.vmem [shape: f32[64,32], index: 4, kind: input, shape index: {}]   ;;  %s3243_s5 = inlined_call_operand.vmem [shape: f32[32,96], index: 5, kind: input, shape index: {}]   ;;  %s3244_s6 = inlined_call_operand.vmem [shape: f32[1,96], index: 6, kind: input, shape index: {}]   ;;  %s3245_s7 = inlined_call_operand.vmem [shape: f32[32,32], index: 7, kind: input, shape index: {}]   ;;  %s3246_s8 = inlined_call_operand.vmem [shape: f32[32,64], index: 8, kind: input, shape index: {}]   ;;  %s3247_s9 = inlined_call_operand.vmem [shape: f32[1,64], index: 9, kind: input, shape index: {}]   ;;  %s3248_s10 = inlined_call_operand.vmem [shape: f32[64,32], index: 10, kind: input, shape index: {}]   ;;  %s3249_s11 = inlined_call_operand.vmem [shape: f32[64,32], index: 11, kind: input, shape index: {}]   ;;  %s3250_s12 = inlined_call_operand.vmem [shape: f32[8,32], index: 12, kind: input, shape index: {}]   ;;  %s3251_s13 = inlined_call_operand.vmem [shape: f32[64,32], index: 13, kind: output, shape index: {}]  }
   0x1 LB: > { %s2255_s26 = sadd.s32 4294967295, %s2455_s25   ;;  %p2259_p0 = scmp.ge.s32.totalorder %s2455_s25, 1  ;;  %s2455_s25 = sphi %s2533_s25, %s23_s25  }
   0x2   : > { %p410_p1 = scmp.lt.s32.totalorder %s2455_s25, 3 }
   0x4   : > { %p411_p2 = pnand %p2259_p0, %p410_p1 }
   0x5   : > { %s2260_s14 = sshll.u32 (!%p411_p2), %s2255_s26, 2 }
   0x6   : > { %414 = sbr.rel (%p411_p2) target bundleno = 3764 (0xeb4), region = 72  ;;  %p465_p3 = scmp.lt.s32.totalorder (!%p411_p2), %s2260_s14, 7 }
   0xb   : > { %v500_v0 = vld [vmem:[%s3242_s4 + $0x38] sm:$0xff]  ;;  %v499_v1 = vld [vmem:[%s3242_s4 + $0x30] sm:$0xff]  ;;  %v498_v2 = vld [vmem:[%s3242_s4 + $0x28] sm:$0xff]  ;;  %v2457_v3 = vmov 0   ;;  %s3259_s14 = smov (!%p465_p3, %s2260_s14), 7  ;;  %vm509_vm0 = vcmask 261120  }
   0xc   : > { %2342 = vmatpush.msra.mxu1 %v500_v0  ;;  %534 = vmatpush.msra.mxu0 %v500_v0  ;;  %v497_v4 = vld [vmem:[%s3242_s4 + $0x20] sm:$0xff]  ;;  %s2553_s19 = sshll.u32 %s3259_s14, 3  ;;  %v496_v5 = vld [vmem:[%s3242_s4 + $0x18] sm:$0xff]  ;;  %v495_v8 = vld [vmem:[%s3242_s4 + $0x10] sm:$0xff]  ;;  %v2458_v16 = vmov 1   ;;  %vm831_vm2 = vcmask 64512  }
   0xd   : > { %2360 = vset.pattern.permute.xlu0 %v2457_v3  ;;  %2362 = vset.pattern.permute.xlu1 %v2457_v3  ;;  %s474_s22 = scalar_lea.vmem %s3239_s1, %s2553_s19  ;;  %s480_s28 = scalar_lea.vmem %s3240_s2, %s2553_s19  ;;  %v494_v11 = vld [vmem:[%s3242_s4 + $0x8] sm:$0xff]  ;;  %v493_v12 = vld [vmem:[%s3242_s4] sm:$0xff]  ;;  %v2606_v22 = vld [vmem:[%s3243_s5 + $0x18] sm:$0xff] }
   0xe   : > { %2343 = vmatpush.msra.mxu1 %v499_v1  ;;  %535 = vmatpush.msra.mxu0 %v499_v1  ;;  %v507_v6 = vld [vmem:[%s474_s22 + $0x10] sm:$0xff]  ;;  %v505_v7 = vld [vmem:[%s474_s22] sm:$0xff]  ;;  %v2574_v10 = vld [vmem:[%s480_s28 + $0x8] sm:$0xff]  ;;  %s468_s21 = scalar_lea.vmem %s3238_s0, %s2553_s19  ;;  %s486_s18 = scalar_lea.vmem %s3251_s13, %s2553_s19 }
   0xf   : > { %2364 = vset.pattern.permute.xlu2 %v2457_v3  ;;  %v2571_v9 = vld [vmem:[%s480_s28] sm:$0xff]  ;;  %599 = vperm.xlu1 %2362, %v2574_v10   ;;  %v508_v13 = vld [vmem:[%s474_s22 + $0x18] sm:$0xff]  ;;  %v506_v14 = vld [vmem:[%s474_s22 + $0x8] sm:$0xff]  ;;  %s2460_s22 = smov 64  }
  0x10   : > { %2344 = vmatpush.msra.mxu1 %v498_v2  ;;  %536 = vmatpush.msra.mxu0 %v498_v2  ;;  %v2585_v15 = vld [vmem:[%s480_s28 + $0x10] sm:$0xff]  ;;  %v501_v17 = vld [vmem:[%s468_s21] sm:$0xff]  ;;  %v2595_v18 = vld [vmem:[%s480_s28 + $0x18] sm:$0xff] }
  0x11   : > { %594 = vperm.xlu0 %2360, %v2571_v9   ;;  %604 = vperm.xlu2 %2364, %v2585_v15   ;;  %v502_v19 = vld [vmem:[%s468_s21 + $0x8] sm:$0xff]  ;;  %v503_v20 = vld [vmem:[%s468_s21 + $0x10] sm:$0xff]  ;;  %v504_v21 = vld [vmem:[%s468_s21 + $0x18] sm:$0xff]  ;;  %s2459_s21 = smov 96  }
  0x12   : > { %2345 = vmatpush.msra.mxu1 %v497_v4  ;;  %537 = vmatpush.msra.mxu0 %v497_v4  ;;  %v2612_v23 = vld [vmem:[%s3243_s5 + $0x10] sm:$0xff]  ;;  %v2617_v24 = vld [vmem:[%s3243_s5 + $0x8] sm:$0xff]  ;;  %v2624_v25 = vld [vmem:[%s3243_s5] sm:$0xff] }
  0x13   : > { %2270 = vmatmul.msk.f32.vlgmr.msra.gmra.mxu1 %vm509_vm0, %v507_v6  ;;  %2268 = vmatmul.msk.f32.vlgmr.msra.gmra.mxu0 %vm509_vm0, %v505_v7  ;;  %v2630_v28 = vld [vmem:[%s3250_s12] sm:$0xff] }
  0x14   : > { %575 = vmatpush.msrb.mxu1 %v496_v5  ;;  %700 = vmatpush.msra.mxu2 %v2606_v22  ;;  %v612_v31 = vperm.slane %v2630_v28, 7  ;;  %v621_v36 = vld [vmem:[%s3241_s3] sm:$0xff] }
  0x15   : > { %v2655_v1 = vld [vmem:[%s3244_s6] ss:$0 sm:$0xff] }
  0x16   : > { %576 = vmatpush.msrb.mxu1 %v495_v8  ;;  %701 = vmatpush.msra.mxu2 %v2612_v23 }
  0x17   : > { %2363 = vset.pattern.permute.xlu1 %v2458_v16 }
  0x18   : > { %577 = vmatpush.msrb.mxu1 %v494_v11  ;;  %631 = vperm.xlu1 %2363, %v2574_v10  }
  0x19   : > { %2361 = vset.pattern.permute.xlu0 %v2458_v16  ;;  %2365 = vset.pattern.permute.xlu2 %v2458_v16 }
  0x1a   : > { %578 = vmatpush.msrb.mxu1 %v493_v12  ;;  %627 = vperm.xlu0 %2361, %v2571_v9  }
  0x1b   : > { %2271 = vmatmul.msk.f32.gmra.mxu1 %vm509_vm0, %v508_v13  ;;  %2269 = vmatmul.msk.f32.gmra.mxu0 %vm509_vm0, %v506_v14 }
  0x1c   : > { %635 = vperm.xlu2 %2365, %v2585_v15   ;;  %702 = vmatpush.msra.mxu2 %v2617_v24 }
  0x1e   : > { %703 = vmatpush.msra.mxu2 %v2624_v25 }
  0x20   : > { %2366 = vset.pattern.permute.xlu1 %v2457_v3 }
  0x21   : > { %609 = vperm.xlu1 %2366, %v2595_v18  }
  0x23   : > { %2272 = vmatmul.msk.f32.vlgmr.msrb.gmra.mxu1 %vm509_vm0, %v501_v17  ;;  %v646_v17 = vlaneseq }
  0x24   : > { %639 = vperm.xlu2 %2365, %v2595_v18  }
  0x2b   : > { %2273 = vmatmul.msk.f32.gmra.mxu1 %vm509_vm0, %v502_v19  ;;  %v647_v19 = vshrl.u32 %v646_v17, 7 }
  0x33   : > { %2274 = vmatmul.msk.f32.gmra.mxu1 %vm509_vm0, %v503_v20  ;;  %v649_v20 = vand.u32 127, %v646_v17 }
  0x35   : > { %vm2685_vm1 = vcmp.le.s32.totalorder %v649_v20, %v647_v19 }
  0x3b   : > { %2275 = vmatmul.msk.f32.gmra.mxu1 %vm509_vm0, %v504_v21 }
  0x6b   : > { %v605_v43 = vpop.permute.xlu2 %604 }
  0x6c   : > { %v615_v49 = vmul.f32 %v612_v31, %v605_v43 }
  0x76   : > { %v636_v53 = vpop.permute.xlu2 %635 }
  0x7e   : > { %v640_v62 = vpop.permute.xlu2 %639 }
  0x81   : > { %v600_v35 = vpop.permute.xlu1 %599 }
  0x82   : > { %v614_v44 = vmul.f32 %v612_v31, %v600_v35 }
  0x83   : > { %v595_v29 = vpop.permute.xlu0 %594 }
  0x84   : > { %v613_v33 = vmul.f32 %v612_v31, %v595_v29 }
  0x8a   : > { %v632_v47 = vpop.permute.xlu1 %631 }
  0x8c   : > { %v628_v38 = vpop.permute.xlu0 %627 }
  0x90   : > { %v545_v26 = vpop.f32.mrf.mxu1  ;;  %v539_v30 = vpop.f32.mrf.mxu0 }
  0x93   : > { %v610_v55 = vpop.permute.xlu1 %609 }
  0x94   : > { %v616_v58 = vmul.f32 %v612_v31, %v610_v55 }
  0x98   : > { %v548_v27 = vpop.f32.mrf.mxu1  ;;  %v542_v40 = vpop.f32.mrf.mxu0 }
  0xa0   : > { %v580_v32 = vpop.f32.mrf.mxu1 }
  0xa1   : > { %v581_v34 = vadd.f32 %v580_v32, %v539_v30 }
  0xa3   : > { %v617_v37 = vadd.f32 %v613_v33, %v581_v34 }
  0xa5   : > { %v622_v39 = vadd.f32 %v621_v36, %v617_v37 }
  0xa7   : > { %v2636_v41 = vmul.f32 %v628_v38, %v622_v39 }
  0xa8   : > { %v583_v42 = vpop.f32.mrf.mxu1 }
  0xa9   : > { %v584_v45 = vadd.f32 %v583_v42, %v542_v40  ;;  %2276 = vmatmul.msk.f32.vlgmr.msra.gmra.mxu2 %vm509_vm0, %v2636_v41 }
  0xab   : > { %v618_v46 = vadd.f32 %v614_v44, %v584_v45 }
  0xad   : > { %v623_v48 = vadd.f32 %v621_v36, %v618_v46 }
  0xaf   : > { %v2640_v50 = vmul.f32 %v632_v47, %v623_v48 }
  0xb0   : > { %v586_v51 = vpop.f32.mrf.mxu1 }
  0xb1   : > { %v587_v52 = vadd.f32 %v586_v51, %v545_v26  ;;  %2277 = vmatmul.msk.f32.gmra.mxu2 %vm509_vm0, %v2640_v50 }
  0xb3   : > { %v619_v54 = vadd.f32 %v615_v49, %v587_v52 }
  0xb5   : > { %v624_v56 = vadd.f32 %v621_v36, %v619_v54 }
  0xb7   : > { %v2644_v57 = vmul.f32 %v636_v53, %v624_v56 }
  0xb8   : > { %v589_v59 = vpop.f32.mrf.mxu1 }
  0xb9   : > { %v590_v60 = vadd.f32 %v589_v59, %v548_v27  ;;  %2278 = vmatmul.msk.f32.gmra.mxu2 %vm509_vm0, %v2644_v57 }
  0xbb   : > { %v620_v61 = vadd.f32 %v616_v58, %v590_v60 }
  0xbd   : > { %v625_v63 = vadd.f32 %v621_v36, %v620_v61 }
  0xbf   : > { %v2648_v0 = vmul.f32 %v640_v62, %v625_v63 }
  0xc1   : > { %2279 = vmatmul.msk.f32.gmra.mxu2 %vm509_vm0, %v2648_v0 }
 0x12c   : > { %v705_v2 = vpop.f32.mrf.mxu2 }
 0x12d   : > { %v706_v3 = vadd.f32 %v2655_v1, %v705_v2 }
 0x12f   : > { %718 = vrot.lane.b32.xlu0 %v706_v3, %s2459_s21 }
 0x134   : > { %v708_v4 = vpop.f32.mrf.mxu2 }
 0x135   : > { %v2660_v5 = vadd.f32 %v2655_v1, %v708_v4 }
 0x137   : > { %745 = vrot.lane.b32.xlu1 %v2660_v5, %s2459_s21 }
 0x13c   : > { %v711_v6 = vpop.f32.mrf.mxu2 }
 0x13d   : > { %v2665_v7 = vadd.f32 %v2655_v1, %v711_v6 }
 0x13f   : > { %772 = vrot.lane.b32.xlu2 %v2665_v7, %s2459_s21 }
 0x144   : > { %v714_v8 = vpop.f32.mrf.mxu2 }
 0x145   : > { %v2670_v11 = vadd.f32 %v2655_v1, %v714_v8 }
 0x147   : > { %799 = vrot.lane.b32.xlu0 %v2670_v11, %s2459_s21  ;;  %v2367_v63 = vpack.i.bf16 %v2670_v11, %v2665_v7 }
 0x199   : > { %v773_v14 = vpop.permute.xlu2 %772 }
 0x1a1   : > { %v719_v12 = vpop.permute.xlu0 %718 }
 0x1a2   : > { %2280 = vmatpush.xpose.msk.msra.mxu3 %vm509_vm0, %v719_v12 }
 0x1a5   : > { %2281 = vmatmul.msk.f32.vlgmr.msra.gmra.mxu3 %vm509_vm0, %v706_v3 }
 0x1a9   : > { %v746_v13 = vpop.permute.xlu1 %745 }
 0x1aa   : > { %2282 = vmatpush.xpose.msk.msrb.mxu3 %vm509_vm0, %v746_v13 }
 0x1ad   : > { %2283 = vmatmul.msk.f32.vlgmr.msrb.gmra.mxu3 %vm509_vm0, %v2660_v5 }
 0x1ae   : > { %2284 = vmatpush.xpose.msk.msra.mxu3 %vm509_vm0, %v773_v14 }
 0x1b5   : > { %2285 = vmatmul.msk.f32.vlgmr.msra.gmra.mxu3 %vm509_vm0, %v2665_v7 }
 0x1b9   : > { %v800_v16 = vpop.permute.xlu0 %799 }
 0x1ba   : > { %2286 = vmatpush.xpose.msk.msrb.mxu3 %vm509_vm0, %v800_v16 }
 0x1bd   : > { %2287 = vmatmul.msk.f32.vlgmr.msrb.gmra.mxu3 %vm509_vm0, %v2670_v11 }
 0x228   : > { %v741_v26 = vpop.f32.mrf.mxu3 }
 0x229   : > { %v827_v27 = vsel %vm2685_vm1, %v741_v26, -1e+30 }
 0x22a   : > { %v832_v29 = vsel %vm831_vm2, %v827_v27, -inf }
 0x22b   : > { %833 = vmax.xlane.f32.xlu1 %v832_v29 }
 0x230   : > { %v768_v30 = vpop.f32.mrf.mxu3 }
 0x231   : > { %v828_v31 = vsel %vm2685_vm1, %v768_v30, -1e+30 }
 0x232   : > { %v835_v32 = vsel %vm831_vm2, %v828_v31, -inf }
 0x233   : > { %836 = vmax.xlane.f32.xlu2 %v835_v32 }
 0x238   : > { %v795_v33 = vpop.f32.mrf.mxu3 }
 0x239   : > { %v829_v34 = vsel %vm2685_vm1, %v795_v33, -1e+30 }
 0x23a   : > { %v838_v35 = vsel %vm831_vm2, %v829_v34, -inf }
 0x23b   : > { %839 = vmax.xlane.f32.xlu0 %v838_v35 }
 0x240   : > { %v822_v36 = vpop.f32.mrf.mxu3 }
 0x241   : > { %v830_v37 = vsel %vm2685_vm1, %v822_v36, -1e+30 }
 0x242   : > { %v841_v38 = vsel %vm831_vm2, %v830_v37, -inf }
 0x243   : > { %842 = vmax.xlane.f32.xlu2 %v841_v38 }
 0x24f   : > { %928 = vrot.lane.b32.xlu0 %v706_v3, %s2460_s22 }
 0x29e   : > { %v834_v39 = vpop.xlane.xlu1 %833 }
 0x29f   : > { %v844_v40 = vsub.f32 %v827_v27, %v834_v39 }
 0x2a1   : > { %v848_v42 = vmul.f32 1.442695, %v844_v40 }
 0x2a3   : > { %2382 = vpow2.f32 %v848_v42 }
 0x2a6   : > { %v837_v43 = vpop.xlane.xlu2 %836 }
 0x2a7   : > { %v845_v44 = vsub.f32 %v828_v31, %v837_v43 }
 0x2a9   : > { %v2383_v45 = vpop.eup %2382  ;;  %v850_v46 = vmul.f32 1.442695, %v845_v44 }
 0x2aa   : > { %v856_v47 = vsel %vm831_vm2, %v2383_v45, 0.0 }
 0x2ab   : > { %2384 = vpow2.f32 %v850_v46  ;;  %857 = vadd.xlane.f32.xlu1 %v856_v47 }
 0x2ae   : > { %v840_v48 = vpop.xlane.xlu0 %839 }
 0x2af   : > { %v846_v49 = vsub.f32 %v829_v34, %v840_v48 }
 0x2b1   : > { %v2703_v51 = vpop.eup %2384  ;;  %v852_v52 = vmul.f32 1.442695, %v846_v49 }
 0x2b2   : > { %v859_v53 = vsel %vm831_vm2, %v2703_v51, 0.0 }
 0x2b3   : > { %2386 = vpow2.f32 %v852_v52  ;;  %860 = vadd.xlane.f32.xlu2 %v859_v53 }
 0x2b6   : > { %v843_v54 = vpop.xlane.xlu2 %842 }
 0x2b7   : > { %v847_v55 = vsub.f32 %v830_v37, %v843_v54 }
 0x2b9   : > { %v2707_v56 = vpop.eup %2386  ;;  %v854_v58 = vmul.f32 1.442695, %v847_v55 }
 0x2ba   : > { %v862_v59 = vsel %vm831_vm2, %v2707_v56, 0.0 }
 0x2bb   : > { %2388 = vpow2.f32 %v854_v58  ;;  %863 = vadd.xlane.f32.xlu1 %v862_v59 }
 0x2c1   : > { %v2711_v60 = vpop.eup %2388  ;;  %v929_v61 = vpop.permute.xlu0 %928 }
 0x2c2   : > { %949 = vmatpush.msra.mxu3 %v929_v61  ;;  %v865_v62 = vsel %vm831_vm2, %v2711_v60, 0.0 }
 0x2c3   : > { %866 = vadd.xlane.f32.xlu2 %v865_v62 }
 0x2d4   : > { %954 = vrot.lane.b32.xlu1 %v2660_v5, %s2460_s22 }
 0x2db   : > { %2368 = vrot.lane.b32.xlu2 %v2367_v63, %s2460_s22 }
 0x31e   : > { %v858_v2 = vpop.xlane.xlu1 %857 }
 0x31f   : > { %2390 = vrcp.f32 %v858_v2  ;;  %v879_v12 = vand.u32 2147483648, %v858_v2  ;;  %v877_v14 = vand.u32 2147483647, %v858_v2  ;;  %vm873_vm4 = vweird.f32 %v858_v2 }
 0x321   : > { %v880_v5 = vor.u32 1.1754944e-38, %v879_v12  ;;  %vm878_vm6 = vcmp.eq.f32.partialorder %v877_v14, 8.507059e+37  ;;  %v2743_v12 = vld [vmem:[%s3245_s7 + $0x10] sm:$0xff] }
 0x325   : > { %v2391_v3 = vpop.eup %2390 }
 0x326   : > { %v869_v4 = vmul.f32 %v2391_v3, %v858_v2  ;;  %v861_v6 = vpop.xlane.xlu2 %860  ;;  %vm874_vm3 = vweird.f32 %v2391_v3 }
 0x327   : > { %2392 = vrcp.f32 %v861_v6  ;;  %vm875_vm5 = vmor %vm873_vm4, %vm874_vm3  ;;  %vm887_vm10 = vweird.f32 %v861_v6  ;;  %v893_v40 = vand.u32 2147483648, %v861_v6  ;;  %v891_v43 = vand.u32 2147483647, %v861_v6 }
 0x328   : > { %v870_v8 = vsub.f32 1.0, %v869_v4 }
 0x329   : > { %v894_v58 = vor.u32 1.1754944e-38, %v893_v40  ;;  %vm892_vm14 = vcmp.eq.f32.partialorder %v891_v43, 8.507059e+37 }
 0x32a   : > { %v871_v13 = vmul.f32 %v2391_v3, %v870_v8  ;;  %v2735_v8 = vld [vmem:[%s3245_s7 + $0x18] sm:$0xff] }
 0x32c   : > { %v872_v16 = vadd.f32 %v2391_v3, %v871_v13 }
 0x32d   : > { %v2393_v17 = vpop.eup %2392 }
 0x32e   : > { %v876_v19 = vsel %vm875_vm5, %v2391_v3, %v872_v16  ;;  %v864_v7 = vpop.xlane.xlu1 %863  ;;  %v883_v20 = vmul.f32 %v2393_v17, %v861_v6  ;;  %vm888_vm8 = vweird.f32 %v2393_v17  ;;  %v2766_v16 = vperm.slane %v2630_v28, 0 }
 0x32f   : > { %v881_v11 = vsel %vm878_vm6, %v880_v5, %v876_v19  ;;  %2394 = vrcp.f32 %v864_v7  ;;  %v907_v34 = vand.u32 2147483648, %v864_v7  ;;  %v905_v36 = vand.u32 2147483647, %v864_v7  ;;  %vm2721_vm13 = vmor %vm887_vm10, %vm888_vm8 }
 0x330   : > { %v924_v26 = vmul.f32 %v2383_v45, %v881_v11  ;;  %v884_v27 = vsub.f32 1.0, %v883_v20  ;;  %vm901_vm9 = vweird.f32 %v864_v7 }
 0x331   : > { %v908_v42 = vor.u32 1.1754944e-38, %v907_v34  ;;  %vm906_vm12 = vcmp.eq.f32.partialorder %v905_v36, 8.507059e+37 }
 0x332   : > { %2288 = vmatmul.msk.f32.vlgmr.msra.gmra.mxu3 %vm831_vm2, %v924_v26  ;;  %v885_v32 = vmul.f32 %v2393_v17, %v884_v27 }
 0x334   : > { %v886_v37 = vadd.f32 %v2393_v17, %v885_v32 }
 0x335   : > { %v2395_v29 = vpop.eup %2394 }
 0x336   : > { %v897_v30 = vmul.f32 %v2395_v29, %v864_v7  ;;  %v867_v31 = vpop.xlane.xlu2 %866  ;;  %vm902_vm7 = vweird.f32 %v2395_v29  ;;  %v890_v53 = vsel %vm2721_vm13, %v2393_v17, %v886_v37 }
 0x337   : > { %2396 = vrcp.f32 %v867_v31  ;;  %vm903_vm11 = vmor %vm901_vm9, %vm902_vm7  ;;  %v921_v59 = vand.u32 2147483648, %v867_v31  ;;  %v919_v62 = vand.u32 2147483647, %v867_v31  ;;  %v895_v63 = vsel %vm892_vm14, %v894_v58, %v890_v53 }
 0x338   : > { %v898_v33 = vsub.f32 1.0, %v897_v30  ;;  %vm915_vm3 = vweird.f32 %v867_v31  ;;  %v925_v4 = vmul.f32 %v2703_v51, %v895_v63  ;;  %v2758_v51 = vld [vmem:[%s3245_s7] sm:$0xff] }
 0x339   : > { %v922_v3 = vor.u32 1.1754944e-38, %v921_v59  ;;  %vm920_vm5 = vcmp.eq.f32.partialorder %v919_v62, 8.507059e+37 }
 0x33a   : > { %v899_v35 = vmul.f32 %v2395_v29, %v898_v33 }
 0x33c   : > { %v900_v38 = vadd.f32 %v2395_v29, %v899_v35 }
 0x33d   : > { %v2397_v39 = vpop.eup %2396 }
 0x33e   : > { %v904_v44 = vsel %vm903_vm11, %v2395_v29, %v900_v38  ;;  %v911_v45 = vmul.f32 %v2397_v39, %v867_v31  ;;  %v2369_v46 = vpop.permute.xlu2 %2368  ;;  %vm916_vm15 = vweird.f32 %v2397_v39 }
 0x33f   : > { %v909_v48 = vsel %vm906_vm12, %v908_v42, %v904_v44  ;;  %v2370_v49 = vunpack.i.l.bf16 %v2369_v46  ;;  %v2371_v52 = vunpack.i.h.bf16 %v2369_v46  ;;  %vm917_vm4 = vmor %vm915_vm3, %vm916_vm15 }
 0x340   : > { %v912_v54 = vsub.f32 1.0, %v911_v45  ;;  %v926_v55 = vmul.f32 %v2707_v56, %v909_v48 }
 0x341   : > { %1001 = vmatpush.msra.mxu1 %v2370_v49  ;;  %1027 = vmatpush.msrb.mxu2 %v2371_v52 }
 0x342   : > { %v913_v61 = vmul.f32 %v2397_v39, %v912_v54  ;;  %2290 = vmatmul.msk.f32.vlgmr.msra.gmra.mxu1 %vm831_vm2, %v926_v55 }
 0x343   : > { %1420 = vmatpush.msra.mxu2 %v2606_v22 }
 0x344   : > { %v914_v2 = vadd.f32 %v2397_v39, %v913_v61 }
 0x345   : > { %1421 = vmatpush.msra.mxu2 %v2612_v23 }
 0x346   : > { %v955_v56 = vpop.permute.xlu1 %954  ;;  %v918_v6 = vsel %vm917_vm4, %v2397_v39, %v914_v2 }
 0x347   : > { %1422 = vmatpush.msra.mxu2 %v2617_v24  ;;  %975 = vmatpush.msrb.mxu3 %v955_v56  ;;  %v923_v22 = vsel %vm920_vm5, %v922_v3, %v918_v6  ;;  %v2751_v24 = vld [vmem:[%s3245_s7 + $0x8] sm:$0xff]  ;;  %v2805_v56 = vld [vmem:[%s3246_s8 + $0x18] sm:$0xff] }
 0x348   : > { %2289 = vmatmul.msk.f32.vlgmr.msrb.gmra.mxu3 %vm831_vm2, %v925_v4  ;;  %v927_v23 = vmul.f32 %v2711_v60, %v923_v22  ;;  %1210 = vmatpush.msrb.mxu0 %v2805_v56  ;;  %v2811_v4 = vld [vmem:[%s3246_s8 + $0x10] sm:$0xff]  ;;  %v2817_v6 = vld [vmem:[%s3246_s8 + $0x8] sm:$0xff]  ;;  %v2823_v22 = vld [vmem:[%s3246_s8] sm:$0xff] }
 0x349   : > { %1423 = vmatpush.msra.mxu2 %v2624_v25  ;;  %1057 = vmatpush.msra.mxu3 %v2735_v8 }
 0x34a   : > { %2291 = vmatmul.msk.f32.vlgmr.msrb.gmra.mxu2 %vm831_vm2, %v927_v23  ;;  %1211 = vmatpush.msrb.mxu0 %v2811_v4 }
 0x34b   : > { %1058 = vmatpush.msra.mxu3 %v2743_v12 }
 0x34c   : > { %1212 = vmatpush.msrb.mxu0 %v2817_v6 }
 0x34d   : > { %1059 = vmatpush.msra.mxu3 %v2751_v24 }
 0x34e   : > { %1213 = vmatpush.msrb.mxu0 %v2823_v22 }
 0x34f   : > { %1060 = vmatpush.msra.mxu3 %v2758_v51 }
 0x3b5   : > { %v951_v25 = vpop.f32.mrf.mxu3 }
 0x3b6   : > { %2292 = vmatmul.msk.f32.vlgmr.msra.gmra.mxu3 %vm509_vm0, %v951_v25 }
 0x3bf   : > { %v1003_v13 = vpop.f32.mrf.mxu1 }
 0x3cb   : > { %v977_v60 = vpop.f32.mrf.mxu3 }
 0x3cc   : > { %2293 = vmatmul.msk.f32.gmra.mxu3 %vm509_vm0, %v977_v60 }
 0x3cd   : > { %v1029_v14 = vpop.f32.mrf.mxu2 }
 0x3d4   : > { %2294 = vmatmul.msk.f32.gmra.mxu3 %vm509_vm0, %v1003_v13 }
 0x3dc   : > { %2295 = vmatmul.msk.f32.gmra.mxu3 %vm509_vm0, %v1029_v14 }
 0x439   : > { %v1062_v17 = vpop.f32.mrf.mxu3 }
 0x43a   : > { %v1063_v5 = vadd.f32 %v1062_v17, %v2766_v16 }
 0x43c   : > { %v1074_v19 = vadd.f32 %v1063_v5, %v2636_v41 }
 0x43e   : > { %v1078_v7 = vsel %vm509_vm0, %v1074_v19, 0.0 }
 0x43f   : > { %1079 = vadd.xlane.f32.xlu0 %v1078_v7 }
 0x44f   : > { %v1065_v11 = vpop.f32.mrf.mxu3 }
 0x450   : > { %v1066_v20 = vadd.f32 %v1065_v11, %v2766_v16  ;;  %v2828_v11 = vperm.slane %v2630_v28, 2 }
 0x452   : > { %v1075_v26 = vadd.f32 %v1066_v20, %v2640_v50  ;;  %v2461_v50 = vmov 32.0  }
 0x453   : > { %2398 = vrcp.f32 %v2461_v50 }
 0x454   : > { %v1081_v27 = vsel %vm509_vm0, %v1075_v26, 0.0 }
 0x455   : > { %1082 = vadd.xlane.f32.xlu1 %v1081_v27 }
 0x457   : > { %v1068_v29 = vpop.f32.mrf.mxu3 }
 0x458   : > { %v1069_v30 = vadd.f32 %v1068_v29, %v2766_v16 }
 0x459   : > { %v2399_v36 = vpop.eup %2398 }
 0x45a   : > { %v1076_v31 = vadd.f32 %v1069_v30, %v2644_v57  ;;  %v1091_v37 = vmul.f32 32.0, %v2399_v36  ;;  %vm1095_vm6 = vweird.f32 %v2399_v36  ;;  %v2832_v30 = vperm.slane %v2630_v28, 3 }
 0x45c   : > { %v1084_v32 = vsel %vm509_vm0, %v1076_v31, 0.0  ;;  %v1092_v38 = vsub.f32 1.0, %v1091_v37  ;;  %v2844_v37 = vld [vmem:[%s3248_s10 + $0x38] sm:$0xff] }
 0x45d   : > { %1085 = vadd.xlane.f32.xlu2 %v1084_v32  ;;  %1253 = vmatpush.msrb.mxu1 %v2844_v37 }
 0x45e   : > { %v1093_v39 = vmul.f32 %v2399_v36, %v1092_v38  ;;  %v2849_v38 = vld [vmem:[%s3248_s10 + $0x30] sm:$0xff] }
 0x45f   : > { %v1071_v41 = vpop.f32.mrf.mxu3  ;;  %1254 = vmatpush.msrb.mxu1 %v2849_v38 }
 0x460   : > { %v1072_v33 = vadd.f32 %v1071_v41, %v2766_v16  ;;  %v1094_v40 = vadd.f32 %v2399_v36, %v1093_v39 }
 0x462   : > { %v1077_v34 = vadd.f32 %v1072_v33, %v2648_v0  ;;  %v2780_v57 = vsel %vm1095_vm6, %v2399_v36, %v1094_v40  ;;  %v2855_v40 = vld [vmem:[%s3248_s10 + $0x28] sm:$0xff]  ;;  %vm1232_vm6 = vcmask 523264  }
 0x463   : > { %1255 = vmatpush.msrb.mxu1 %v2855_v40 }
 0x464   : > { %v1087_v35 = vsel %vm509_vm0, %v1077_v34, 0.0 }
 0x465   : > { %1088 = vadd.xlane.f32.xlu0 %v1087_v35 }
 0x4b2   : > { %v1080_v42 = vpop.xlane.xlu0 %1079 }
 0x4b3   : > { %v1097_v43 = vmul.f32 %v2780_v57, %v1080_v42 }
 0x4b5   : > { %v1101_v44 = vsub.f32 %v1074_v19, %v1097_v43 }
 0x4b7   : > { %v1105_v45 = vmul.f32 %v1101_v44, %v1101_v44 }
 0x4b9   : > { %v1109_v0 = vsel %vm509_vm0, %v1105_v45, 0.0  ;;  %v2862_v45 = vld [vmem:[%s3248_s10 + $0x20] sm:$0xff] }
 0x4ba   : > { %1110 = vadd.xlane.f32.xlu0 %v1109_v0  ;;  %1256 = vmatpush.msrb.mxu1 %v2862_v45 }
 0x4c8   : > { %v1083_v46 = vpop.xlane.xlu1 %1082 }
 0x4c9   : > { %v1098_v47 = vmul.f32 %v2780_v57, %v1083_v46 }
 0x4cb   : > { %v2785_v48 = vsub.f32 %v1075_v26, %v1098_v47 }
 0x4cd   : > { %v1106_v49 = vmul.f32 %v2785_v48, %v2785_v48 }
 0x4cf   : > { %v1112_v52 = vsel %vm509_vm0, %v1106_v49, 0.0  ;;  %v2868_v49 = vld [vmem:[%s3248_s10 + $0x18] sm:$0xff] }
 0x4d0   : > { %v1086_v53 = vpop.xlane.xlu2 %1085  ;;  %1113 = vadd.xlane.f32.xlu1 %v1112_v52  ;;  %1257 = vmatpush.msrb.mxu1 %v2868_v49 }
 0x4d1   : > { %v1099_v54 = vmul.f32 %v2780_v57, %v1086_v53 }
 0x4d3   : > { %v2791_v55 = vsub.f32 %v1076_v31, %v1099_v54 }
 0x4d5   : > { %v1107_v58 = vmul.f32 %v2791_v55, %v2791_v55 }
 0x4d7   : > { %v1115_v59 = vsel %vm509_vm0, %v1107_v58, 0.0 }
 0x4d8   : > { %1116 = vadd.xlane.f32.xlu0 %v1115_v59  ;;  %v1089_v61 = vpop.xlane.xlu0 %1088 }
 0x4d9   : > { %v1100_v62 = vmul.f32 %v2780_v57, %v1089_v61 }
 0x4db   : > { %v2797_v63 = vsub.f32 %v1077_v34, %v1100_v62 }
 0x4dd   : > { %v1108_v2 = vmul.f32 %v2797_v63, %v2797_v63 }
 0x4df   : > { %v1118_v3 = vsel %vm509_vm0, %v1108_v2, 0.0 }
 0x4e0   : > { %1119 = vadd.xlane.f32.xlu2 %v1118_v3 }
 0x52d   : > { %v1111_v23 = vpop.xlane.xlu0 %1110 }
 0x52e   : > { %v1121_v25 = vmul.f32 %v1111_v23, %v2780_v57 }
 0x530   : > { %v1125_v60 = vadd.f32 1e-05, %v1121_v25 }
 0x532   : > { %2400 = vrsqrt.f32 %v1125_v60  ;;  %vm1135_vm8 = vweird.f32 %v1125_v60 }
 0x538   : > { %v2401_v13 = vpop.eup %2400 }
 0x539   : > { %v1130_v14 = vmul.f32 %v2401_v13, %v1125_v60  ;;  %vm1136_vm7 = vweird.f32 %v2401_v13 }
 0x53a   : > { %vm1137_vm9 = vmor %vm1135_vm8, %vm1136_vm7 }
 0x53b   : > { %v1131_v17 = vmul.f32 %v2401_v13, %v1130_v14 }
 0x53d   : > { %v1132_v5 = vmul.f32 0.5, %v1131_v17 }
 0x53f   : > { %v1133_v19 = vsub.f32 1.5, %v1132_v5 }
 0x541   : > { %v1134_v7 = vmul.f32 %v2401_v13, %v1133_v19 }
 0x543   : > { %v1138_v20 = vsel %vm1137_vm9, %v2401_v13, %v1134_v7  ;;  %v1114_v26 = vpop.xlane.xlu1 %1113 }
 0x544   : > { %v1169_v27 = vmul.f32 %v1138_v20, %v1101_v44  ;;  %v1122_v29 = vmul.f32 %v1114_v26, %v2780_v57 }
 0x546   : > { %v1126_v31 = vadd.f32 1e-05, %v1122_v29  ;;  %v1174_v32 = vmul.f32 %v2828_v11, %v1169_v27 }
 0x548   : > { %2402 = vrsqrt.f32 %v1126_v31  ;;  %v2836_v41 = vadd.f32 %v2832_v30, %v1174_v32  ;;  %vm1145_vm11 = vweird.f32 %v1126_v31  ;;  %v2893_v32 = vld [vmem:[%s3248_s10 + $0x8] sm:$0xff] }
 0x54a   : > { %2296 = vmatmul.msk.f32.vlgmr.msrb.gmra.mxu0 %vm509_vm0, %v2836_v41 }
 0x54b   : > { %v1117_v33 = vpop.xlane.xlu0 %1116 }
 0x54c   : > { %v1123_v34 = vmul.f32 %v1117_v33, %v2780_v57  ;;  %v2905_v33 = vld [vmem:[%s3247_s9] ss:$0 sm:$0xff] }
 0x54e   : > { %v2403_v35 = vpop.eup %2402  ;;  %v1127_v50 = vadd.f32 1e-05, %v1123_v34 }
 0x54f   : > { %v1140_v36 = vmul.f32 %v2403_v35, %v1126_v31  ;;  %vm1146_vm10 = vweird.f32 %v2403_v35 }
 0x550   : > { %2404 = vrsqrt.f32 %v1127_v50  ;;  %vm1147_vm12 = vmor %vm1145_vm11, %vm1146_vm10  ;;  %vm1155_vm14 = vweird.f32 %v1127_v50 }
 0x551   : > { %v1141_v39 = vmul.f32 %v2403_v35, %v1140_v36 }
 0x553   : > { %v1142_v42 = vmul.f32 0.5, %v1141_v39  ;;  %v1120_v43 = vpop.xlane.xlu2 %1119 }
 0x554   : > { %v1124_v44 = vmul.f32 %v1120_v43, %v2780_v57 }
 0x555   : > { %v1143_v0 = vsub.f32 1.5, %v1142_v42 }
 0x556   : > { %v2405_v46 = vpop.eup %2404  ;;  %v1128_v47 = vadd.f32 1e-05, %v1124_v44 }
 0x557   : > { %v1144_v52 = vmul.f32 %v2403_v35, %v1143_v0  ;;  %v1150_v53 = vmul.f32 %v2405_v46, %v1127_v50  ;;  %vm1156_vm13 = vweird.f32 %v2405_v46 }
 0x558   : > { %2406 = vrsqrt.f32 %v1128_v47  ;;  %vm1157_vm15 = vmor %vm1155_vm14, %vm1156_vm13  ;;  %vm1165_vm4 = vweird.f32 %v1128_v47 }
 0x559   : > { %v1148_v54 = vsel %vm1147_vm12, %v2403_v35, %v1144_v52  ;;  %v1151_v58 = vmul.f32 %v2405_v46, %v1150_v53  ;;  %v2916_v53 = vperm.slane %v2630_v28, 1 }
 0x55a   : > { %v1170_v59 = vmul.f32 %v1148_v54, %v2785_v48 }
 0x55b   : > { %v1152_v61 = vmul.f32 0.5, %v1151_v58 }
 0x55c   : > { %v1175_v62 = vmul.f32 %v2828_v11, %v1170_v59 }
 0x55d   : > { %v1153_v2 = vsub.f32 1.5, %v1152_v61 }
 0x55e   : > { %v2407_v3 = vpop.eup %2406  ;;  %v1180_v23 = vadd.f32 %v2832_v30, %v1175_v62 }
 0x55f   : > { %v1154_v25 = vmul.f32 %v2405_v46, %v1153_v2  ;;  %v1160_v60 = vmul.f32 %v2407_v3, %v1128_v47  ;;  %vm1166_vm3 = vweird.f32 %v2407_v3 }
 0x560   : > { %2297 = vmatmul.msk.f32.gmra.mxu0 %vm509_vm0, %v1180_v23  ;;  %vm1167_vm5 = vmor %vm1165_vm4, %vm1166_vm3 }
 0x561   : > { %v1158_v13 = vsel %vm1157_vm15, %v2405_v46, %v1154_v25  ;;  %v1161_v14 = vmul.f32 %v2407_v3, %v1160_v60 }
 0x562   : > { %v1171_v17 = vmul.f32 %v1158_v13, %v2791_v55  ;;  %v2887_v55 = vld [vmem:[%s3248_s10 + $0x10] sm:$0xff] }
 0x563   : > { %v1162_v5 = vmul.f32 0.5, %v1161_v14  ;;  %1258 = vmatpush.msrb.mxu1 %v2887_v55 }
 0x564   : > { %v1176_v48 = vmul.f32 %v2828_v11, %v1171_v17 }
 0x565   : > { %v1163_v19 = vsub.f32 1.5, %v1162_v5  ;;  %1259 = vmatpush.msrb.mxu1 %v2893_v32 }
 0x566   : > { %v1181_v7 = vadd.f32 %v2832_v30, %v1176_v48 }
 0x567   : > { %v1164_v20 = vmul.f32 %v2407_v3, %v1163_v19 }
 0x568   : > { %2298 = vmatmul.msk.f32.gmra.mxu0 %vm509_vm0, %v1181_v7 }
 0x569   : > { %v1168_v26 = vsel %vm1167_vm5, %v2407_v3, %v1164_v20 }
 0x56a   : > { %v1172_v27 = vmul.f32 %v1168_v26, %v2797_v63  ;;  %v2899_v63 = vld [vmem:[%s3248_s10] sm:$0xff] }
 0x56b   : > { %1260 = vmatpush.msrb.mxu1 %v2899_v63 }
 0x56c   : > { %v1177_v29 = vmul.f32 %v2828_v11, %v1172_v27 }
 0x56e   : > { %v1182_v31 = vadd.f32 %v2832_v30, %v1177_v29 }
 0x570   : > { %2299 = vmatmul.msk.f32.gmra.mxu0 %vm509_vm0, %v1182_v31 }
 0x5c7   : > { %v1215_v34 = vpop.f32.mrf.mxu0 }
 0x5c8   : > { %v1216_v35 = vadd.f32 %v2905_v33, %v1215_v34  ;;  %v2462_v34 = vmov 2  }
 0x5c9   : > { %2372 = vset.pattern.permute.xlu2 %v2462_v34  ;;  %2373 = vset.pattern.permute.xlu1 %v2462_v34 }
 0x5ca   : > { %v1227_v50 = vmax.f32 %v1216_v35, 0.0  ;;  %2374 = vset.pattern.permute.xlu0 %v2462_v34 }
 0x5cc   : > { %2300 = vmatmul.msk.f32.vlgmr.msrb.gmra.mxu1 %vm1232_vm6, %v1227_v50 }
 0x5dd   : > { %v1218_v36 = vpop.f32.mrf.mxu0 }
 0x5de   : > { %v1219_v39 = vadd.f32 %v2905_v33, %v1218_v36 }
 0x5e0   : > { %v1228_v42 = vmax.f32 %v1219_v39, 0.0 }
 0x5e2   : > { %2301 = vmatmul.msk.f32.gmra.mxu1 %vm1232_vm6, %v1228_v42 }
 0x5e5   : > { %v1221_v43 = vpop.f32.mrf.mxu0 }
 0x5e6   : > { %v1222_v44 = vadd.f32 %v2905_v33, %v1221_v43 }
 0x5e8   : > { %v1229_v0 = vmax.f32 %v1222_v44, 0.0 }
 0x5ea   : > { %2302 = vmatmul.msk.f32.gmra.mxu1 %vm1232_vm6, %v1229_v0 }
 0x5ed   : > { %v1224_v46 = vpop.f32.mrf.mxu0 }
 0x5ee   : > { %v1225_v47 = vadd.f32 %v2905_v33, %v1224_v46 }
 0x5f0   : > { %v1230_v52 = vmax.f32 %v1225_v47, 0.0 }
 0x5f2   : > { %2303 = vmatmul.msk.f32.gmra.mxu1 %vm1232_vm6, %v1230_v52 }
 0x649   : > { %v1262_v54 = vpop.f32.mrf.mxu1 }
 0x64a   : > { %v1263_v58 = vadd.f32 %v1262_v54, %v2916_v53 }
 0x64c   : > { %v1274_v59 = vadd.f32 %v1263_v58, %v2836_v41 }
 0x64e   : > { %v1278_v61 = vsel %vm509_vm0, %v1274_v59, 0.0 }
 0x64f   : > { %1279 = vadd.xlane.f32.xlu1 %v1278_v61 }
 0x65f   : > { %v1265_v62 = vpop.f32.mrf.mxu1 }
 0x660   : > { %v1266_v2 = vadd.f32 %v1265_v62, %v2916_v53 }
 0x662   : > { %v1275_v3 = vadd.f32 %v1266_v2, %v1180_v23 }
 0x664   : > { %v1281_v25 = vsel %vm509_vm0, %v1275_v3, 0.0 }
 0x665   : > { %1282 = vadd.xlane.f32.xlu0 %v1281_v25 }
 0x667   : > { %v1268_v60 = vpop.f32.mrf.mxu1 }
 0x668   : > { %v1269_v13 = vadd.f32 %v1268_v60, %v2916_v53 }
 0x66a   : > { %v1276_v14 = vadd.f32 %v1269_v13, %v1181_v7 }
 0x66c   : > { %v1284_v17 = vsel %vm509_vm0, %v1276_v14, 0.0 }
 0x66d   : > { %1285 = vadd.xlane.f32.xlu2 %v1284_v17 }
 0x66f   : > { %v1271_v5 = vpop.f32.mrf.mxu1 }
 0x670   : > { %v1272_v41 = vadd.f32 %v1271_v5, %v2916_v53 }
 0x672   : > { %v1277_v48 = vadd.f32 %v1272_v41, %v1182_v31  ;;  %v2957_v41 = vperm.slane %v2630_v28, 5 }
 0x674   : > { %v1287_v19 = vsel %vm509_vm0, %v1277_v48, 0.0 }
 0x675   : > { %1288 = vadd.xlane.f32.xlu1 %v1287_v19 }
 0x6c2   : > { %v1280_v20 = vpop.xlane.xlu1 %1279 }
 0x6c3   : > { %v1290_v23 = vmul.f32 %v1280_v20, %v2780_v57 }
 0x6c5   : > { %v1294_v26 = vsub.f32 %v1274_v59, %v1290_v23 }
 0x6c7   : > { %v1298_v27 = vmul.f32 %v1294_v26, %v1294_v26 }
 0x6c9   : > { %v1302_v29 = vsel %vm509_vm0, %v1298_v27, 0.0 }
 0x6ca   : > { %1303 = vadd.xlane.f32.xlu0 %v1302_v29 }
 0x6d8   : > { %v1283_v7 = vpop.xlane.xlu0 %1282 }
 0x6d9   : > { %v1291_v35 = vmul.f32 %v1283_v7, %v2780_v57 }
 0x6db   : > { %v2930_v50 = vsub.f32 %v1275_v3, %v1291_v35 }
 0x6dd   : > { %v1299_v31 = vmul.f32 %v2930_v50, %v2930_v50 }
 0x6df   : > { %v1305_v36 = vsel %vm509_vm0, %v1299_v31, 0.0 }
 0x6e0   : > { %v1286_v39 = vpop.xlane.xlu2 %1285  ;;  %1306 = vadd.xlane.f32.xlu2 %v1305_v36 }
 0x6e1   : > { %v1292_v42 = vmul.f32 %v1286_v39, %v2780_v57 }
 0x6e3   : > { %v2936_v43 = vsub.f32 %v1276_v14, %v1292_v42 }
 0x6e5   : > { %v1300_v44 = vmul.f32 %v2936_v43, %v2936_v43 }
 0x6e7   : > { %v1308_v0 = vsel %vm509_vm0, %v1300_v44, 0.0 }
 0x6e8   : > { %v1289_v46 = vpop.xlane.xlu1 %1288  ;;  %1309 = vadd.xlane.f32.xlu1 %v1308_v0 }
 0x6e9   : > { %v1293_v47 = vmul.f32 %v1289_v46, %v2780_v57 }
 0x6eb   : > { %v2942_v52 = vsub.f32 %v1277_v48, %v1293_v47 }
 0x6ed   : > { %v1301_v54 = vmul.f32 %v2942_v52, %v2942_v52 }
 0x6ef   : > { %v1311_v58 = vsel %vm509_vm0, %v1301_v54, 0.0 }
 0x6f0   : > { %1312 = vadd.xlane.f32.xlu0 %v1311_v58 }
 0x6f8   : > { %1377 = vperm.xlu2 %2372, %v2571_v9   ;;  %v2953_v9 = vperm.slane %v2630_v28, 4 }
 0x700   : > { %1389 = vperm.xlu2 %2372, %v2595_v18  }
 0x701   : > { %1381 = vperm.xlu1 %2373, %v2574_v10  }
 0x704   : > { %1385 = vperm.xlu0 %2374, %v2585_v15  }
 0x73d   : > { %v1304_v59 = vpop.xlane.xlu0 %1303 }
 0x73e   : > { %v1314_v61 = vmul.f32 %v1304_v59, %v2780_v57 }
 0x740   : > { %v1318_v62 = vadd.f32 1e-05, %v1314_v61 }
 0x742   : > { %2408 = vrsqrt.f32 %v1318_v62  ;;  %vm1328_vm8 = vweird.f32 %v1318_v62 }
 0x748   : > { %v2409_v2 = vpop.eup %2408 }
 0x749   : > { %v1323_v3 = vmul.f32 %v2409_v2, %v1318_v62  ;;  %vm1329_vm7 = vweird.f32 %v2409_v2 }
 0x74a   : > { %vm1330_vm9 = vmor %vm1328_vm8, %vm1329_vm7 }
 0x74b   : > { %v1324_v25 = vmul.f32 %v2409_v2, %v1323_v3 }
 0x74d   : > { %v1325_v60 = vmul.f32 0.5, %v1324_v25 }
 0x74f   : > { %v1326_v13 = vsub.f32 1.5, %v1325_v60 }
 0x751   : > { %v1327_v14 = vmul.f32 %v2409_v2, %v1326_v13 }
 0x753   : > { %v1307_v10 = vpop.xlane.xlu2 %1306  ;;  %v1331_v18 = vsel %vm1330_vm9, %v2409_v2, %v1327_v14 }
 0x754   : > { %v1315_v15 = vmul.f32 %v1307_v10, %v2780_v57  ;;  %v1362_v17 = vmul.f32 %v1331_v18, %v1294_v26 }
 0x756   : > { %v1319_v5 = vadd.f32 1e-05, %v1315_v15  ;;  %v1367_v48 = vmul.f32 %v2953_v9, %v1362_v17 }
 0x758   : > { %2410 = vrsqrt.f32 %v1319_v5  ;;  %v2961_v19 = vadd.f32 %v2957_v41, %v1367_v48  ;;  %vm1338_vm11 = vweird.f32 %v1319_v5 }
 0x75b   : > { %v1310_v20 = vpop.xlane.xlu1 %1309  ;;  %v1378_v23 = vpop.permute.xlu2 %1377 }
 0x75c   : > { %v1316_v27 = vmul.f32 %v1310_v20, %v2780_v57  ;;  %v2965_v29 = vmul.f32 %v1378_v23, %v2961_v19 }
 0x75e   : > { %v2411_v34 = vpop.eup %2410  ;;  %v1320_v7 = vadd.f32 1e-05, %v1316_v27  ;;  %2304 = vmatmul.msk.f32.vlgmr.msra.gmra.mxu2 %vm509_vm0, %v2965_v29 }
 0x75f   : > { %v1333_v28 = vmul.f32 %v2411_v34, %v1319_v5  ;;  %vm1339_vm10 = vweird.f32 %v2411_v34 }
 0x760   : > { %2412 = vrsqrt.f32 %v1320_v7  ;;  %vm1340_vm12 = vmor %vm1338_vm11, %vm1339_vm10  ;;  %vm1348_vm14 = vweird.f32 %v1320_v7 }
 0x761   : > { %v1334_v26 = vmul.f32 %v2411_v34, %v1333_v28 }
 0x763   : > { %v1335_v35 = vmul.f32 0.5, %v1334_v26  ;;  %v1313_v31 = vpop.xlane.xlu0 %1312  ;;  %v1390_v26 = vpop.permute.xlu2 %1389 }
 0x764   : > { %v1317_v36 = vmul.f32 %v1313_v31, %v2780_v57 }
 0x765   : > { %v1336_v39 = vsub.f32 1.5, %v1335_v35 }
 0x766   : > { %v2413_v42 = vpop.eup %2412  ;;  %v1321_v44 = vadd.f32 1e-05, %v1317_v36 }
 0x767   : > { %v1337_v0 = vmul.f32 %v2411_v34, %v1336_v39  ;;  %v1343_v46 = vmul.f32 %v2413_v42, %v1320_v7  ;;  %vm1349_vm13 = vweird.f32 %v2413_v42 }
 0x768   : > { %2414 = vrsqrt.f32 %v1321_v44  ;;  %vm1350_vm15 = vmor %vm1348_vm14, %vm1349_vm13  ;;  %vm1358_vm4 = vweird.f32 %v1321_v44 }
 0x769   : > { %v1344_v47 = vmul.f32 %v2413_v42, %v1343_v46  ;;  %v1341_v54 = vsel %vm1340_vm12, %v2411_v34, %v1337_v0 }
 0x76a   : > { %v1363_v58 = vmul.f32 %v1341_v54, %v2930_v50 }
 0x76b   : > { %v1345_v59 = vmul.f32 0.5, %v1344_v47 }
 0x76c   : > { %v1368_v2 = vmul.f32 %v2953_v9, %v1363_v58 }
 0x76d   : > { %v1346_v61 = vsub.f32 1.5, %v1345_v59 }
 0x76e   : > { %v2415_v62 = vpop.eup %2414  ;;  %v2973_v14 = vadd.f32 %v2957_v41, %v1368_v2 }
 0x76f   : > { %v1347_v3 = vmul.f32 %v2413_v42, %v1346_v61  ;;  %v1353_v25 = vmul.f32 %v2415_v62, %v1321_v44  ;;  %vm1359_vm3 = vweird.f32 %v2415_v62 }
 0x770   : > { %vm1360_vm5 = vmor %vm1358_vm4, %vm1359_vm3 }
 0x771   : > { %v1354_v60 = vmul.f32 %v2415_v62, %v1353_v25  ;;  %v1351_v13 = vsel %vm1350_vm15, %v2413_v42, %v1347_v3 }
 0x772   : > { %v1364_v10 = vmul.f32 %v1351_v13, %v2936_v43 }
 0x773   : > { %v1355_v18 = vmul.f32 0.5, %v1354_v60  ;;  %v1382_v15 = vpop.permute.xlu1 %1381 }
 0x774   : > { %v2977_v50 = vmul.f32 %v1382_v15, %v2973_v14  ;;  %v1369_v17 = vmul.f32 %v2953_v9, %v1364_v10 }
 0x775   : > { %v1356_v5 = vsub.f32 1.5, %v1355_v18 }
 0x776   : > { %2305 = vmatmul.msk.f32.gmra.mxu2 %vm509_vm0, %v2977_v50  ;;  %v2983_v20 = vadd.f32 %v2957_v41, %v1369_v17  ;;  %v1386_v43 = vpop.permute.xlu0 %1385 }
 0x777   : > { %v1357_v48 = vmul.f32 %v2415_v62, %v1356_v5 }
 0x778   : > { %v2988_v7 = vmul.f32 %v1386_v43, %v2983_v20 }
 0x779   : > { %v1361_v23 = vsel %vm1360_vm5, %v2415_v62, %v1357_v48 }
 0x77a   : > { %v1365_v27 = vmul.f32 %v1361_v23, %v2942_v52 }
 0x77c   : > { %v1370_v34 = vmul.f32 %v2953_v9, %v1365_v27 }
 0x77e   : > { %2306 = vmatmul.msk.f32.gmra.mxu2 %vm509_vm0, %v2988_v7  ;;  %v2993_v28 = vadd.f32 %v2957_v41, %v1370_v34 }
 0x780   : > { %v2996_v35 = vmul.f32 %v1390_v26, %v2993_v28 }
 0x786   : > { %2307 = vmatmul.msk.f32.gmra.mxu2 %vm509_vm0, %v2996_v35 }
 0x7e1   : > { %v1425_v31 = vpop.f32.mrf.mxu2 }
 0x7e2   : > { %v3001_v52 = vadd.f32 %v2655_v1, %v1425_v31 }
 0x7e4   : > { %1438 = vrot.lane.b32.xlu1 %v3001_v52, %s2459_s21 }
 0x7f9   : > { %v1428_v36 = vpop.f32.mrf.mxu2 }
 0x7fa   : > { %v3006_v39 = vadd.f32 %v2655_v1, %v1428_v36 }
 0x7fc   : > { %1465 = vrot.lane.b32.xlu1 %v3006_v39, %s2459_s21 }
 0x801   : > { %v1431_v42 = vpop.f32.mrf.mxu2 }
 0x802   : > { %v1432_v44 = vadd.f32 %v2655_v1, %v1431_v42 }
 0x804   : > { %1492 = vrot.lane.b32.xlu2 %v1432_v44, %s2459_s21 }
 0x809   : > { %v1434_v0 = vpop.f32.mrf.mxu2 }
 0x80a   : > { %v1435_v46 = vadd.f32 %v2655_v1, %v1434_v0 }
 0x80c   : > { %1519 = vrot.lane.b32.xlu2 %v1435_v46, %s2459_s21 }
 0x856   : > { %v1439_v47 = vpop.permute.xlu1 %1438 }
 0x857   : > { %2308 = vmatpush.xpose.msk.msrb.mxu3 %vm509_vm0, %v1439_v47 }
 0x85a   : > { %2309 = vmatmul.msk.f32.vlgmr.msrb.gmra.mxu3 %vm509_vm0, %v3001_v52 }
 0x85e   : > { %v1493_v54 = vpop.permute.xlu2 %1492 }
 0x85f   : > { %2312 = vmatpush.xpose.msk.msrb.mxu2 %vm509_vm0, %v1493_v54 }
 0x862   : > { %2313 = vmatmul.msk.f32.vlgmr.msrb.gmra.mxu2 %vm509_vm0, %v1432_v44 }
 0x866   : > { %v1520_v58 = vpop.permute.xlu2 %1519 }
 0x867   : > { %2314 = vmatpush.xpose.msk.msra.mxu3 %vm509_vm0, %v1520_v58 }
 0x86a   : > { %2315 = vmatmul.msk.f32.vlgmr.msra.gmra.mxu3 %vm509_vm0, %v1435_v46 }
 0x86e   : > { %v1466_v59 = vpop.permute.xlu1 %1465 }
 0x86f   : > { %2310 = vmatpush.xpose.msk.msra.mxu0 %vm509_vm0, %v1466_v59 }
 0x872   : > { %2311 = vmatmul.msk.f32.vlgmr.msra.gmra.mxu0 %vm509_vm0, %v3006_v39 }
 0x8dd   : > { %v1461_v1 = vpop.f32.mrf.mxu3 }
 0x8de   : > { %v1545_v61 = vsel %vm2685_vm1, %v1461_v1, -1e+30 }
 0x8df   : > { %v1549_v62 = vsel %vm831_vm2, %v1545_v61, -inf }
 0x8e0   : > { %1550 = vmax.xlane.f32.xlu1 %v1549_v62 }
 0x8e5   : > { %v1515_v2 = vpop.f32.mrf.mxu2 }
 0x8e6   : > { %v1547_v3 = vsel %vm2685_vm1, %v1515_v2, -1e+30 }
 0x8e7   : > { %v1555_v25 = vsel %vm831_vm2, %v1547_v3, -inf }
 0x8e8   : > { %1556 = vmax.xlane.f32.xlu2 %v1555_v25 }
 0x8ed   : > { %v1542_v60 = vpop.f32.mrf.mxu3 }
 0x8ee   : > { %v1548_v13 = vsel %vm2685_vm1, %v1542_v60, -1e+30 }
 0x8ef   : > { %v1488_v10 = vpop.f32.mrf.mxu0  ;;  %v1558_v18 = vsel %vm831_vm2, %v1548_v13, -inf }
 0x8f0   : > { %v1546_v15 = vsel %vm2685_vm1, %v1488_v10, -1e+30  ;;  %1559 = vmax.xlane.f32.xlu1 %v1558_v18 }
 0x8f1   : > { %v1552_v17 = vsel %vm831_vm2, %v1546_v15, -inf }
 0x8f2   : > { %1553 = vmax.xlane.f32.xlu0 %v1552_v17 }
 0x953   : > { %v1551_v5 = vpop.xlane.xlu1 %1550 }
 0x954   : > { %v1561_v48 = vsub.f32 %v1545_v61, %v1551_v5 }
 0x956   : > { %v1565_v23 = vmul.f32 1.442695, %v1561_v48 }
 0x958   : > { %2416 = vpow2.f32 %v1565_v23 }
 0x95b   : > { %v1557_v43 = vpop.xlane.xlu2 %1556 }
 0x95c   : > { %v1563_v27 = vsub.f32 %v1547_v3, %v1557_v43  ;;  %v2375_v3 = vpack.i.bf16 %v1432_v44, %v3006_v39 }
 0x95e   : > { %v3036_v34 = vpop.eup %2416  ;;  %v1569_v26 = vmul.f32 1.442695, %v1563_v27 }
 0x95f   : > { %v1573_v31 = vsel %vm831_vm2, %v3036_v34, 0.0 }
 0x960   : > { %2418 = vpow2.f32 %v1569_v26  ;;  %1574 = vadd.xlane.f32.xlu0 %v1573_v31 }
 0x963   : > { %v1560_v21 = vpop.xlane.xlu1 %1559 }
 0x964   : > { %v1564_v36 = vsub.f32 %v1548_v13, %v1560_v21 }
 0x965   : > { %v1554_v42 = vpop.xlane.xlu0 %1553 }
 0x966   : > { %v3040_v0 = vpop.eup %2418  ;;  %v1571_v47 = vmul.f32 1.442695, %v1564_v36  ;;  %v1562_v54 = vsub.f32 %v1546_v15, %v1554_v42 }
 0x967   : > { %v1579_v58 = vsel %vm831_vm2, %v3040_v0, 0.0 }
 0x968   : > { %2420 = vpow2.f32 %v1571_v47  ;;  %v1567_v59 = vmul.f32 1.442695, %v1562_v54  ;;  %1580 = vadd.xlane.f32.xlu1 %v1579_v58 }
 0x96a   : > { %2422 = vpow2.f32 %v1567_v59 }
 0x96e   : > { %v3044_v1 = vpop.eup %2420 }
 0x96f   : > { %v1582_v61 = vsel %vm831_vm2, %v3044_v1, 0.0 }
 0x970   : > { %v3048_v62 = vpop.eup %2422  ;;  %1583 = vadd.xlane.f32.xlu0 %v1582_v61 }
 0x971   : > { %v1576_v2 = vsel %vm831_vm2, %v3048_v62, 0.0 }
 0x972   : > { %1577 = vadd.xlane.f32.xlu2 %v1576_v2 }
 0x981   : > { %2376 = vrot.lane.b32.xlu1 %v2375_v3, %s2460_s22 }
 0x984   : > { %1723 = vrot.lane.b32.xlu0 %v1435_v46, %s2460_s22 }
 0x98a   : > { %1645 = vrot.lane.b32.xlu2 %v3001_v52, %s2460_s22 }
 0x9d3   : > { %v1575_v25 = vpop.xlane.xlu0 %1574 }
 0x9d4   : > { %2424 = vrcp.f32 %v1575_v25  ;;  %v1596_v44 = vand.u32 2147483648, %v1575_v25  ;;  %vm1590_vm7 = vweird.f32 %v1575_v25  ;;  %v1594_v46 = vand.u32 2147483647, %v1575_v25 }
 0x9d6   : > { %v1597_v26 = vor.u32 1.1754944e-38, %v1596_v44  ;;  %vm1595_vm9 = vcmp.eq.f32.partialorder %v1594_v46, 8.507059e+37 }
 0x9da   : > { %v2425_v60 = vpop.eup %2424 }
 0x9db   : > { %v1586_v13 = vmul.f32 %v2425_v60, %v1575_v25  ;;  %v1581_v10 = vpop.xlane.xlu1 %1580  ;;  %vm1591_vm1 = vweird.f32 %v2425_v60 }
 0x9dc   : > { %2426 = vrcp.f32 %v1581_v10  ;;  %vm1592_vm8 = vmor %vm1590_vm7, %vm1591_vm1  ;;  %v1622_v54 = vand.u32 2147483647, %v1581_v10  ;;  %v1624_v58 = vand.u32 2147483648, %v1581_v10  ;;  %vm1618_vm11 = vweird.f32 %v1581_v10 }
 0x9dd   : > { %v1587_v18 = vsub.f32 1.0, %v1586_v13 }
 0x9de   : > { %vm1623_vm14 = vcmp.eq.f32.partialorder %v1622_v54, 8.507059e+37 }
 0x9df   : > { %v1588_v15 = vmul.f32 %v2425_v60, %v1587_v18 }
 0x9e1   : > { %v1589_v5 = vadd.f32 %v2425_v60, %v1588_v15 }
 0x9e2   : > { %v2427_v17 = vpop.eup %2426 }
 0x9e3   : > { %v1614_v48 = vmul.f32 %v2427_v17, %v1581_v10  ;;  %v1584_v39 = vpop.xlane.xlu0 %1583  ;;  %v1593_v52 = vsel %vm1592_vm8, %v2425_v60, %v1589_v5  ;;  %vm1619_vm10 = vweird.f32 %v2427_v17  ;;  %v1625_v10 = vor.u32 1.1754944e-38, %v1624_v58 }
 0x9e4   : > { %2428 = vrcp.f32 %v1584_v39  ;;  %v1598_v21 = vsel %vm1595_vm9, %v1597_v26, %v1593_v52  ;;  %vm3058_vm12 = vmor %vm1618_vm11, %vm1619_vm10  ;;  %v1636_v60 = vand.u32 2147483647, %v1584_v39  ;;  %v1638_v13 = vand.u32 2147483648, %v1584_v39 }
 0x9e5   : > { %v1615_v23 = vsub.f32 1.0, %v1614_v48  ;;  %v1578_v43 = vpop.xlane.xlu2 %1577  ;;  %v1641_v3 = vmul.f32 %v3036_v34, %v1598_v21  ;;  %vm1632_vm15 = vweird.f32 %v1584_v39 }
 0x9e6   : > { %2430 = vrcp.f32 %v1578_v43  ;;  %v1610_v48 = vand.u32 2147483648, %v1578_v43  ;;  %v1608_v46 = vand.u32 2147483647, %v1578_v43  ;;  %v1639_v52 = vor.u32 1.1754944e-38, %v1638_v13 }
 0x9e7   : > { %v1616_v27 = vmul.f32 %v2427_v17, %v1615_v23  ;;  %vm1637_vm5 = vcmp.eq.f32.partialorder %v1636_v60, 8.507059e+37  ;;  %vm1604_vm1 = vweird.f32 %v1578_v43 }
 0x9e8   : > { %vm1609_vm8 = vcmp.eq.f32.partialorder %v1608_v46, 8.507059e+37 }
 0x9e9   : > { %v1617_v36 = vadd.f32 %v2427_v17, %v1616_v27 }
 0x9ea   : > { %v2429_v31 = vpop.eup %2428 }
 0x9eb   : > { %v1628_v42 = vmul.f32 %v2429_v31, %v1584_v39  ;;  %v1621_v18 = vsel %vm3058_vm12, %v2427_v17, %v1617_v36  ;;  %vm1633_vm13 = vweird.f32 %v2429_v31  ;;  %v1611_v39 = vor.u32 1.1754944e-38, %v1610_v48 }
 0x9ec   : > { %v2431_v47 = vpop.eup %2430  ;;  %v1626_v23 = vsel %vm1623_vm14, %v1625_v10, %v1621_v18  ;;  %vm1634_vm4 = vmor %vm1632_vm15, %vm1633_vm13 }
 0x9ed   : > { %v1629_v59 = vsub.f32 1.0, %v1628_v42  ;;  %v1600_v61 = vmul.f32 %v2431_v47, %v1578_v43  ;;  %v1646_v2 = vpop.permute.xlu2 %1645  ;;  %vm1605_vm3 = vweird.f32 %v2431_v47  ;;  %v1643_v54 = vmul.f32 %v3040_v0, %v1626_v23 }
 0x9ee   : > { %1666 = vmatpush.msrb.mxu0 %v1646_v2  ;;  %vm1606_vm7 = vmor %vm1604_vm1, %vm1605_vm3 }
 0x9ef   : > { %v1630_v15 = vmul.f32 %v2429_v31, %v1629_v59  ;;  %v1601_v5 = vsub.f32 1.0, %v1600_v61  ;;  %2316 = vmatmul.msk.f32.vlgmr.msrb.gmra.mxu0 %vm831_vm2, %v1641_v3 }
 0x9f0   : > { %1773 = vmatpush.msra.mxu0 %v2735_v8 }
 0x9f1   : > { %v1631_v34 = vadd.f32 %v2429_v31, %v1630_v15  ;;  %v1602_v44 = vmul.f32 %v2431_v47, %v1601_v5 }
 0x9f2   : > { %1774 = vmatpush.msra.mxu0 %v2743_v12 }
 0x9f3   : > { %v1635_v17 = vsel %vm1634_vm4, %v2429_v31, %v1631_v34  ;;  %v1603_v27 = vadd.f32 %v2431_v47, %v1602_v44  ;;  %v2377_v26 = vpop.permute.xlu1 %2376 }
 0x9f4   : > { %v1640_v21 = vsel %vm1637_vm5, %v1639_v52, %v1635_v17  ;;  %v2379_v36 = vunpack.i.h.bf16 %v2377_v26  ;;  %v2378_v42 = vunpack.i.l.bf16 %v2377_v26  ;;  %1775 = vmatpush.msra.mxu0 %v2751_v24  ;;  %v2079_v24 = vld [vmem:[%s3249_s11 + $0x18] sm:$0xff] }
 0x9f5   : > { %v1607_v8 = vsel %vm1606_vm7, %v2431_v47, %v1603_v27  ;;  %v1644_v58 = vmul.f32 %v3044_v1, %v1640_v21 }
 0x9f6   : > { %v1612_v59 = vsel %vm1609_vm8, %v1611_v39, %v1607_v8  ;;  %1692 = vmatpush.msra.mxu1 %v2378_v42  ;;  %1718 = vmatpush.msra.mxu2 %v2379_v36  ;;  %v1724_v12 = vpop.permute.xlu0 %1723 }
 0x9f7   : > { %2318 = vmatmul.msk.f32.vlgmr.msra.gmra.mxu2 %vm831_vm2, %v1643_v54  ;;  %1744 = vmatpush.msrb.mxu3 %v1724_v12  ;;  %v1642_v43 = vmul.f32 %v3048_v62, %v1612_v59 }
 0x9f8   : > { %2319 = vmatmul.msk.f32.vlgmr.msrb.gmra.mxu3 %vm831_vm2, %v1644_v58  ;;  %1776 = vmatpush.msra.mxu0 %v2758_v51  ;;  %v2078_v51 = vld [vmem:[%s3249_s11 + $0x10] sm:$0xff] }
 0x9f9   : > { %2317 = vmatmul.msk.f32.vlgmr.msra.gmra.mxu1 %vm831_vm2, %v1642_v43  ;;  %1955 = vmatpush.msrb.mxu2 %v2844_v37 }
 0x9fa   : > { %1914 = vmatpush.msrb.mxu1 %v2805_v56  ;;  %2149 = vmatpush.msrb.mxu0 %v2079_v24  ;;  %v2077_v56 = vld [vmem:[%s3249_s11 + $0x8] sm:$0xff] }
 0x9fb   : > { %1956 = vmatpush.msrb.mxu2 %v2849_v38 }
 0x9fc   : > { %1915 = vmatpush.msrb.mxu1 %v2811_v4  ;;  %2150 = vmatpush.msrb.mxu0 %v2078_v51  ;;  %v2076_v4 = vld [vmem:[%s3249_s11] sm:$0xff] }
 0x9fd   : > { %1957 = vmatpush.msrb.mxu2 %v2855_v40 }
 0x9fe   : > { %1916 = vmatpush.msrb.mxu1 %v2817_v6  ;;  %2151 = vmatpush.msrb.mxu0 %v2077_v56 }
 0x9ff   : > { %1958 = vmatpush.msrb.mxu2 %v2862_v45 }
 0xa00   : > { %1917 = vmatpush.msrb.mxu1 %v2823_v22  ;;  %2152 = vmatpush.msrb.mxu0 %v2076_v4 }
 0xa01   : > { %1959 = vmatpush.msrb.mxu2 %v2868_v49 }
 0xa03   : > { %1960 = vmatpush.msrb.mxu2 %v2887_v55 }
 0xa05   : > { %1961 = vmatpush.msrb.mxu2 %v2893_v32 }
 0xa07   : > { %1962 = vmatpush.msrb.mxu2 %v2899_v63 }
 0xa6c   : > { %v1668_v6 = vpop.f32.mrf.mxu0 }
 0xa6d   : > { %2320 = vmatmul.msk.f32.vlgmr.msra.gmra.mxu0 %vm509_vm0, %v1668_v6 }
 0xa76   : > { %v1694_v22 = vpop.f32.mrf.mxu1 }
 0xa77   : > { %2321 = vmatmul.msk.f32.gmra.mxu0 %vm509_vm0, %v1694_v22 }
 0xa7a   : > { %v1720_v37 = vpop.f32.mrf.mxu2 }
 0xa7b   : > { %v1746_v38 = vpop.f32.mrf.mxu3 }
 0xa7f   : > { %2322 = vmatmul.msk.f32.gmra.mxu0 %vm509_vm0, %v1720_v37 }
 0xa87   : > { %2323 = vmatmul.msk.f32.gmra.mxu0 %vm509_vm0, %v1746_v38 }
 0xa8f   : > { %2336 = vmatmul.msk.f32.vlgmr.msrb.gmra.mxu0 %vm509_vm0, %v2961_v19 }
 0xa97   : > { %2337 = vmatmul.msk.f32.gmra.mxu0 %vm509_vm0, %v2973_v14 }
 0xa9f   : > { %2338 = vmatmul.msk.f32.gmra.mxu0 %vm509_vm0, %v2983_v20 }
 0xaa7   : > { %2339 = vmatmul.msk.f32.gmra.mxu0 %vm509_vm0, %v2993_v28 }
 0xaea   : > { %v1778_v40 = vpop.f32.mrf.mxu0 }
 0xaeb   : > { %v1779_v45 = vadd.f32 %v1778_v40, %v2766_v16 }
 0xaed   : > { %v1790_v49 = vadd.f32 %v1779_v45, %v2965_v29 }
 0xaef   : > { %v1794_v55 = vsel %vm509_vm0, %v1790_v49, 0.0 }
 0xaf0   : > { %1795 = vadd.xlane.f32.xlu2 %v1794_v55 }
 0xaf4   : > { %v1781_v32 = vpop.f32.mrf.mxu0 }
 0xaf5   : > { %v1782_v63 = vadd.f32 %v1781_v32, %v2766_v16 }
 0xaf7   : > { %v1791_v19 = vadd.f32 %v1782_v63, %v2977_v50 }
 0xaf9   : > { %v1797_v14 = vsel %vm509_vm0, %v1791_v19, 0.0 }
 0xafa   : > { %1798 = vadd.xlane.f32.xlu0 %v1797_v14 }
 0xafc   : > { %v1784_v20 = vpop.f32.mrf.mxu0 }
 0xafd   : > { %v1785_v0 = vadd.f32 %v1784_v20, %v2766_v16 }
 0xaff   : > { %v1792_v28 = vadd.f32 %v1785_v0, %v2988_v7 }
 0xb01   : > { %v1800_v1 = vsel %vm509_vm0, %v1792_v28, 0.0 }
 0xb02   : > { %1801 = vadd.xlane.f32.xlu1 %v1800_v1 }
 0xb04   : > { %v1787_v29 = vpop.f32.mrf.mxu0 }
 0xb05   : > { %v1788_v62 = vadd.f32 %v1787_v29, %v2766_v16 }
 0xb07   : > { %v1793_v31 = vadd.f32 %v1788_v62, %v2996_v35 }
 0xb09   : > { %v1803_v47 = vsel %vm509_vm0, %v1793_v31, 0.0 }
 0xb0a   : > { %1804 = vadd.xlane.f32.xlu2 %v1803_v47 }
 0xb63   : > { %v1796_v50 = vpop.xlane.xlu2 %1795 }
 0xb64   : > { %v1806_v61 = vmul.f32 %v1796_v50, %v2780_v57 }
 0xb66   : > { %v1810_v2 = vsub.f32 %v1790_v49, %v1806_v61 }
 0xb68   : > { %v1814_v3 = vmul.f32 %v1810_v2, %v1810_v2 }
 0xb6a   : > { %v1818_v25 = vsel %vm509_vm0, %v1814_v3, 0.0 }
 0xb6b   : > { %1819 = vadd.xlane.f32.xlu0 %v1818_v25 }
 0xb6d   : > { %v1799_v7 = vpop.xlane.xlu0 %1798 }
 0xb6e   : > { %v1807_v60 = vmul.f32 %v1799_v7, %v2780_v57 }
 0xb70   : > { %v1811_v13 = vsub.f32 %v1791_v19, %v1807_v60 }
 0xb72   : > { %v1815_v18 = vmul.f32 %v1811_v13, %v1811_v13 }
 0xb74   : > { %v1821_v16 = vsel %vm509_vm0, %v1815_v18, 0.0 }
 0xb75   : > { %v1802_v15 = vpop.xlane.xlu1 %1801  ;;  %1822 = vadd.xlane.f32.xlu1 %v1821_v16 }
 0xb76   : > { %v1808_v35 = vmul.f32 %v1802_v15, %v2780_v57 }
 0xb78   : > { %v3128_v5 = vsub.f32 %v1792_v28, %v1808_v35 }
 0xb7a   : > { %v1816_v10 = vmul.f32 %v3128_v5, %v3128_v5 }
 0xb7c   : > { %v1824_v48 = vsel %vm509_vm0, %v1816_v10, 0.0 }
 0xb7d   : > { %1825 = vadd.xlane.f32.xlu2 %v1824_v48  ;;  %v1805_v34 = vpop.xlane.xlu2 %1804 }
 0xb7e   : > { %v1809_v44 = vmul.f32 %v1805_v34, %v2780_v57 }
 0xb80   : > { %v3134_v46 = vsub.f32 %v1793_v31, %v1809_v44 }
 0xb82   : > { %v1817_v23 = vmul.f32 %v3134_v46, %v3134_v46 }
 0xb84   : > { %v1827_v52 = vsel %vm509_vm0, %v1817_v23, 0.0 }
 0xb85   : > { %1828 = vadd.xlane.f32.xlu0 %v1827_v52 }
 0xbde   : > { %v1820_v17 = vpop.xlane.xlu0 %1819 }
 0xbdf   : > { %v1830_v27 = vmul.f32 %v1820_v17, %v2780_v57 }
 0xbe1   : > { %v1834_v26 = vadd.f32 1e-05, %v1830_v27 }
 0xbe3   : > { %2432 = vrsqrt.f32 %v1834_v26  ;;  %vm1844_vm9 = vweird.f32 %v1834_v26 }
 0xbe8   : > { %v1823_v21 = vpop.xlane.xlu1 %1822 }
 0xbe9   : > { %v2433_v39 = vpop.eup %2432  ;;  %v1831_v36 = vmul.f32 %v1823_v21, %v2780_v57 }
 0xbea   : > { %v1839_v42 = vmul.f32 %v2433_v39, %v1834_v26  ;;  %vm1845_vm2 = vweird.f32 %v2433_v39 }
 0xbeb   : > { %v1835_v8 = vadd.f32 1e-05, %v1831_v36  ;;  %vm1846_vm10 = vmor %vm1844_vm9, %vm1845_vm2 }
 0xbec   : > { %v1840_v54 = vmul.f32 %v2433_v39, %v1839_v42 }
 0xbed   : > { %2434 = vrsqrt.f32 %v1835_v8  ;;  %vm1854_vm12 = vweird.f32 %v1835_v8 }
 0xbee   : > { %v1841_v58 = vmul.f32 0.5, %v1840_v54 }
 0xbf0   : > { %v1842_v59 = vsub.f32 1.5, %v1841_v58  ;;  %v1826_v12 = vpop.xlane.xlu2 %1825 }
 0xbf1   : > { %v1832_v43 = vmul.f32 %v1826_v12, %v2780_v57 }
 0xbf2   : > { %v1843_v24 = vmul.f32 %v2433_v39, %v1842_v59 }
 0xbf3   : > { %v2435_v51 = vpop.eup %2434  ;;  %v1836_v56 = vadd.f32 1e-05, %v1832_v43 }
 0xbf4   : > { %v1847_v4 = vsel %vm1846_vm10, %v2433_v39, %v1843_v24  ;;  %v1849_v6 = vmul.f32 %v2435_v51, %v1835_v8  ;;  %vm1855_vm11 = vweird.f32 %v2435_v51 }
 0xbf5   : > { %v1878_v22 = vmul.f32 %v1847_v4, %v1810_v2  ;;  %2436 = vrsqrt.f32 %v1836_v56  ;;  %vm1856_vm13 = vmor %vm1854_vm12, %vm1855_vm11  ;;  %vm1864_vm15 = vweird.f32 %v1836_v56 }
 0xbf6   : > { %v1850_v37 = vmul.f32 %v2435_v51, %v1849_v6 }
 0xbf7   : > { %v1882_v38 = vmul.f32 %v1878_v22, %v2828_v11 }
 0xbf8   : > { %v1851_v40 = vmul.f32 0.5, %v1850_v37  ;;  %v1829_v45 = vpop.xlane.xlu0 %1828 }
 0xbf9   : > { %v1833_v49 = vmul.f32 %v1829_v45, %v2780_v57  ;;  %v1886_v55 = vadd.f32 %v1882_v38, %v2832_v30 }
 0xbfa   : > { %v1852_v32 = vsub.f32 1.5, %v1851_v40 }
 0xbfb   : > { %v2437_v63 = vpop.eup %2436  ;;  %v1837_v19 = vadd.f32 1e-05, %v1833_v49  ;;  %2324 = vmatmul.msk.f32.vlgmr.msrb.gmra.mxu1 %vm509_vm0, %v1886_v55 }
 0xbfc   : > { %v1853_v14 = vmul.f32 %v2435_v51, %v1852_v32  ;;  %v1859_v20 = vmul.f32 %v2437_v63, %v1836_v56  ;;  %vm1865_vm14 = vweird.f32 %v2437_v63 }
 0xbfd   : > { %2438 = vrsqrt.f32 %v1837_v19  ;;  %vm1866_vm3 = vmor %vm1864_vm15, %vm1865_vm14  ;;  %vm1874_vm5 = vweird.f32 %v1837_v19 }
 0xbfe   : > { %v1857_v0 = vsel %vm1856_vm13, %v2435_v51, %v1853_v14  ;;  %v1860_v28 = vmul.f32 %v2437_v63, %v1859_v20 }
 0xbff   : > { %v1879_v1 = vmul.f32 %v1857_v0, %v1811_v13 }
 0xc00   : > { %v1861_v29 = vmul.f32 0.5, %v1860_v28 }
 0xc01   : > { %v1883_v62 = vmul.f32 %v1879_v1, %v2828_v11 }
 0xc02   : > { %v1862_v31 = vsub.f32 1.5, %v1861_v29 }
 0xc03   : > { %v2439_v47 = vpop.eup %2438  ;;  %v1887_v50 = vadd.f32 %v1883_v62, %v2832_v30 }
 0xc04   : > { %v1863_v61 = vmul.f32 %v2437_v63, %v1862_v31  ;;  %v1869_v2 = vmul.f32 %v2439_v47, %v1837_v19  ;;  %vm1875_vm4 = vweird.f32 %v2439_v47 }
 0xc05   : > { %2325 = vmatmul.msk.f32.gmra.mxu1 %vm509_vm0, %v1887_v50  ;;  %vm1876_vm1 = vmor %vm1874_vm5, %vm1875_vm4 }
 0xc06   : > { %v1867_v3 = vsel %vm1866_vm3, %v2437_v63, %v1863_v61  ;;  %v1870_v25 = vmul.f32 %v2439_v47, %v1869_v2  ;;  %v2083_v2 = vld [vmem:[%s3249_s11 + $0x38] sm:$0xff] }
 0xc07   : > { %v1880_v7 = vmul.f32 %v1867_v3, %v3128_v5  ;;  %2108 = vmatpush.msra.mxu3 %v2083_v2  ;;  %v2082_v3 = vld [vmem:[%s3249_s11 + $0x30] sm:$0xff] }
 0xc08   : > { %v1871_v60 = vmul.f32 0.5, %v1870_v25  ;;  %v2081_v25 = vld [vmem:[%s3249_s11 + $0x28] sm:$0xff] }
 0xc09   : > { %v1884_v13 = vmul.f32 %v1880_v7, %v2828_v11  ;;  %2109 = vmatpush.msra.mxu3 %v2082_v3  ;;  %v2080_v7 = vld [vmem:[%s3249_s11 + $0x20] sm:$0xff] }
 0xc0a   : > { %v1872_v18 = vsub.f32 1.5, %v1871_v60 }
 0xc0b   : > { %v1888_v16 = vadd.f32 %v1884_v13, %v2832_v30  ;;  %2110 = vmatpush.msra.mxu3 %v2081_v25 }
 0xc0c   : > { %v1873_v15 = vmul.f32 %v2439_v47, %v1872_v18 }
 0xc0d   : > { %2326 = vmatmul.msk.f32.gmra.mxu1 %vm509_vm0, %v1888_v16  ;;  %2111 = vmatpush.msra.mxu3 %v2080_v7 }
 0xc0e   : > { %v1877_v35 = vsel %vm1876_vm1, %v2439_v47, %v1873_v15 }
 0xc0f   : > { %v1881_v10 = vmul.f32 %v1877_v35, %v3134_v46 }
 0xc11   : > { %v1885_v48 = vmul.f32 %v1881_v10, %v2828_v11 }
 0xc13   : > { %v1889_v34 = vadd.f32 %v1885_v48, %v2832_v30 }
 0xc15   : > { %2327 = vmatmul.msk.f32.gmra.mxu1 %vm509_vm0, %v1889_v34 }
 0xc78   : > { %v1919_v5 = vpop.f32.mrf.mxu1 }
 0xc79   : > { %v1920_v44 = vadd.f32 %v2905_v33, %v1919_v5 }
 0xc7b   : > { %v1931_v23 = vmax.f32 %v1920_v44, 0.0 }
 0xc7d   : > { %2328 = vmatmul.msk.f32.vlgmr.msrb.gmra.mxu2 %vm1232_vm6, %v1931_v23 }
 0xc82   : > { %v1922_v52 = vpop.f32.mrf.mxu1 }
 0xc83   : > { %v1923_v17 = vadd.f32 %v2905_v33, %v1922_v52 }
 0xc85   : > { %v1932_v27 = vmax.f32 %v1923_v17, 0.0 }
 0xc87   : > { %2329 = vmatmul.msk.f32.gmra.mxu2 %vm1232_vm6, %v1932_v27 }
 0xc8a   : > { %v1925_v26 = vpop.f32.mrf.mxu1 }
 0xc8b   : > { %v1926_v46 = vadd.f32 %v2905_v33, %v1925_v26 }
 0xc8d   : > { %v1933_v11 = vmax.f32 %v1926_v46, 0.0 }
 0xc8f   : > { %2330 = vmatmul.msk.f32.gmra.mxu2 %vm1232_vm6, %v1933_v11 }
 0xc92   : > { %v1928_v30 = vpop.f32.mrf.mxu1 }
 0xc93   : > { %v1929_v21 = vadd.f32 %v2905_v33, %v1928_v30 }
 0xc95   : > { %v1934_v39 = vmax.f32 %v1929_v21, 0.0 }
 0xc97   : > { %2331 = vmatmul.msk.f32.gmra.mxu2 %vm1232_vm6, %v1934_v39 }
 0xd00   : > { %v1964_v36 = vpop.f32.mrf.mxu2 }
 0xd01   : > { %v1965_v42 = vadd.f32 %v1964_v36, %v2916_v53 }
 0xd03   : > { %v1976_v8 = vadd.f32 %v1965_v42, %v1886_v55 }
 0xd05   : > { %v1980_v54 = vsel %vm509_vm0, %v1976_v8, 0.0 }
 0xd06   : > { %1981 = vadd.xlane.f32.xlu1 %v1980_v54 }
 0xd0a   : > { %v1967_v58 = vpop.f32.mrf.mxu2 }
 0xd0b   : > { %v1968_v59 = vadd.f32 %v1967_v58, %v2916_v53 }
 0xd0d   : > { %v1977_v12 = vadd.f32 %v1968_v59, %v1887_v50 }
 0xd0f   : > { %v1983_v43 = vsel %vm509_vm0, %v1977_v12, 0.0 }
 0xd10   : > { %1984 = vadd.xlane.f32.xlu2 %v1983_v43 }
 0xd12   : > { %v1970_v24 = vpop.f32.mrf.mxu2 }
 0xd13   : > { %v1971_v33 = vadd.f32 %v1970_v24, %v2916_v53 }
 0xd15   : > { %v1978_v51 = vadd.f32 %v1971_v33, %v1888_v16 }
 0xd17   : > { %v1986_v56 = vsel %vm509_vm0, %v1978_v51, 0.0 }
 0xd18   : > { %1987 = vadd.xlane.f32.xlu0 %v1986_v56 }
 0xd1a   : > { %v1973_v4 = vpop.f32.mrf.mxu2 }
 0xd1b   : > { %v1974_v6 = vadd.f32 %v1973_v4, %v2916_v53 }
 0xd1d   : > { %v1979_v22 = vadd.f32 %v1974_v6, %v1889_v34 }
 0xd1f   : > { %v1989_v37 = vsel %vm509_vm0, %v1979_v22, 0.0 }
 0xd20   : > { %1990 = vadd.xlane.f32.xlu1 %v1989_v37 }
 0xd79   : > { %v1982_v38 = vpop.xlane.xlu1 %1981 }
 0xd7a   : > { %v1992_v40 = vmul.f32 %v1982_v38, %v2780_v57 }
 0xd7c   : > { %v1996_v45 = vsub.f32 %v1976_v8, %v1992_v40 }
 0xd7e   : > { %v2000_v49 = vmul.f32 %v1996_v45, %v1996_v45 }
 0xd80   : > { %v2004_v55 = vsel %vm509_vm0, %v2000_v49, 0.0 }
 0xd81   : > { %2005 = vadd.xlane.f32.xlu2 %v2004_v55 }
 0xd83   : > { %v1985_v32 = vpop.xlane.xlu2 %1984 }
 0xd84   : > { %v1993_v63 = vmul.f32 %v1985_v32, %v2780_v57 }
 0xd86   : > { %v3176_v19 = vsub.f32 %v1977_v12, %v1993_v63 }
 0xd88   : > { %v2001_v53 = vmul.f32 %v3176_v19, %v3176_v19 }
 0xd8a   : > { %v2007_v14 = vsel %vm509_vm0, %v2001_v53, 0.0 }
 0xd8b   : > { %2008 = vadd.xlane.f32.xlu0 %v2007_v14  ;;  %v1988_v20 = vpop.xlane.xlu0 %1987 }
 0xd8c   : > { %v1994_v0 = vmul.f32 %v1988_v20, %v2780_v57 }
 0xd8e   : > { %v3182_v28 = vsub.f32 %v1978_v51, %v1994_v0 }
 0xd90   : > { %v2002_v1 = vmul.f32 %v3182_v28, %v3182_v28 }
 0xd92   : > { %v2010_v29 = vsel %vm509_vm0, %v2002_v1, 0.0 }
 0xd93   : > { %v1991_v62 = vpop.xlane.xlu1 %1990  ;;  %2011 = vadd.xlane.f32.xlu1 %v2010_v29  ;;  %v2154_v29 = vpop.f32.mrf.mxu0 }
 0xd94   : > { %v1995_v31 = vmul.f32 %v1991_v62, %v2780_v57  ;;  %v2448_v62 = vld [vmem:[%s3250_s12] sm:$0xff] }
 0xd96   : > { %v3188_v47 = vsub.f32 %v1979_v22, %v1995_v31  ;;  %v2166_v31 = vperm.slane %v2448_v62, 6 }
 0xd98   : > { %v2003_v50 = vmul.f32 %v3188_v47, %v3188_v47 }
 0xd9a   : > { %v2013_v61 = vsel %vm509_vm0, %v2003_v50, 0.0 }
 0xd9b   : > { %2014 = vadd.xlane.f32.xlu2 %v2013_v61 }
 0xdf4   : > { %v2006_v60 = vpop.xlane.xlu2 %2005 }
 0xdf5   : > { %v2016_v13 = vmul.f32 %v2006_v60, %v2780_v57 }
 0xdf7   : > { %v2020_v18 = vadd.f32 1e-05, %v2016_v13 }
 0xdf9   : > { %2440 = vrsqrt.f32 %v2020_v18  ;;  %vm2030_vm7 = vweird.f32 %v2020_v18 }
 0xdfe   : > { %v2009_v16 = vpop.xlane.xlu0 %2008 }
 0xdff   : > { %v2441_v15 = vpop.eup %2440  ;;  %v2017_v35 = vmul.f32 %v2009_v16, %v2780_v57 }
 0xe00   : > { %v2025_v10 = vmul.f32 %v2441_v15, %v2020_v18  ;;  %vm2031_vm6 = vweird.f32 %v2441_v15 }
 0xe01   : > { %v2021_v48 = vadd.f32 1e-05, %v2017_v35  ;;  %vm2032_vm8 = vmor %vm2030_vm7, %vm2031_vm6 }
 0xe02   : > { %v2026_v34 = vmul.f32 %v2441_v15, %v2025_v10 }
 0xe03   : > { %2442 = vrsqrt.f32 %v2021_v48  ;;  %vm2040_vm9 = vweird.f32 %v2021_v48 }
 0xe04   : > { %v2027_v5 = vmul.f32 0.5, %v2026_v34 }
 0xe06   : > { %v2028_v44 = vsub.f32 1.5, %v2027_v5  ;;  %v2012_v23 = vpop.xlane.xlu1 %2011 }
 0xe07   : > { %v2018_v52 = vmul.f32 %v2012_v23, %v2780_v57 }
 0xe08   : > { %v2029_v17 = vmul.f32 %v2441_v15, %v2028_v44 }
 0xe09   : > { %v2443_v27 = vpop.eup %2442  ;;  %v2022_v26 = vadd.f32 1e-05, %v2018_v52 }
 0xe0a   : > { %v2033_v46 = vsel %vm2032_vm8, %v2441_v15, %v2029_v17  ;;  %v2035_v11 = vmul.f32 %v2443_v27, %v2021_v48  ;;  %vm2041_vm2 = vweird.f32 %v2443_v27 }
 0xe0b   : > { %v2064_v30 = vmul.f32 %v2033_v46, %v1996_v45  ;;  %2444 = vrsqrt.f32 %v2022_v26  ;;  %vm2042_vm10 = vmor %vm2040_vm9, %vm2041_vm2  ;;  %vm2050_vm12 = vweird.f32 %v2022_v26 }
 0xe0c   : > { %v2036_v21 = vmul.f32 %v2443_v27, %v2035_v11 }
 0xe0d   : > { %v2068_v39 = vmul.f32 %v2064_v30, %v2953_v9 }
 0xe0e   : > { %v2037_v36 = vmul.f32 0.5, %v2036_v21  ;;  %v2015_v42 = vpop.xlane.xlu2 %2014 }
 0xe0f   : > { %v2019_v8 = vmul.f32 %v2015_v42, %v2780_v57  ;;  %v2072_v54 = vadd.f32 %v2068_v39, %v2957_v41 }
 0xe10   : > { %v2038_v58 = vsub.f32 1.5, %v2037_v36 }
 0xe11   : > { %v2445_v59 = vpop.eup %2444  ;;  %v2023_v12 = vadd.f32 1e-05, %v2019_v8  ;;  %2332 = vmatmul.msk.f32.vlgmr.msra.gmra.mxu3 %vm509_vm0, %v2072_v54 }
 0xe12   : > { %v2039_v43 = vmul.f32 %v2443_v27, %v2038_v58  ;;  %v2045_v24 = vmul.f32 %v2445_v59, %v2022_v26  ;;  %vm2051_vm11 = vweird.f32 %v2445_v59 }
 0xe13   : > { %2446 = vrsqrt.f32 %v2023_v12  ;;  %vm2052_vm13 = vmor %vm2050_vm12, %vm2051_vm11  ;;  %vm2060_vm15 = vweird.f32 %v2023_v12 }
 0xe14   : > { %v2043_v33 = vsel %vm2042_vm10, %v2443_v27, %v2039_v43  ;;  %v2046_v51 = vmul.f32 %v2445_v59, %v2045_v24 }
 0xe15   : > { %v2065_v56 = vmul.f32 %v2043_v33, %v3176_v19 }
 0xe16   : > { %v2047_v4 = vmul.f32 0.5, %v2046_v51 }
 0xe17   : > { %v2069_v57 = vmul.f32 %v2065_v56, %v2953_v9 }
 0xe18   : > { %v2048_v6 = vsub.f32 1.5, %v2047_v4 }
 0xe19   : > { %v2447_v22 = vpop.eup %2446  ;;  %v2073_v37 = vadd.f32 %v2069_v57, %v2957_v41 }
 0xe1a   : > { %v2049_v38 = vmul.f32 %v2445_v59, %v2048_v6  ;;  %v2055_v40 = vmul.f32 %v2447_v22, %v2023_v12  ;;  %vm2061_vm14 = vweird.f32 %v2447_v22 }
 0xe1b   : > { %2333 = vmatmul.msk.f32.gmra.mxu3 %vm509_vm0, %v2073_v37  ;;  %vm2062_vm3 = vmor %vm2060_vm15, %vm2061_vm14 }
 0xe1c   : > { %v2053_v45 = vsel %vm2052_vm13, %v2445_v59, %v2049_v38  ;;  %v2056_v49 = vmul.f32 %v2447_v22, %v2055_v40 }
 0xe1d   : > { %v2066_v55 = vmul.f32 %v2053_v45, %v3182_v28 }
 0xe1e   : > { %v2057_v32 = vmul.f32 0.5, %v2056_v49 }
 0xe1f   : > { %v2070_v63 = vmul.f32 %v2066_v55, %v2953_v9 }
 0xe20   : > { %v2058_v19 = vsub.f32 1.5, %v2057_v32 }
 0xe21   : > { %v2074_v53 = vadd.f32 %v2070_v63, %v2957_v41 }
 0xe22   : > { %v2059_v14 = vmul.f32 %v2447_v22, %v2058_v19 }
 0xe23   : > { %2334 = vmatmul.msk.f32.gmra.mxu3 %vm509_vm0, %v2074_v53 }
 0xe24   : > { %v2063_v20 = vsel %vm2062_vm3, %v2447_v22, %v2059_v14 }
 0xe25   : > { %v2067_v0 = vmul.f32 %v2063_v20, %v3188_v47 }
 0xe27   : > { %v2071_v1 = vmul.f32 %v2067_v0, %v2953_v9  ;;  %v2157_v9 = vpop.f32.mrf.mxu0 }
 0xe29   : > { %v2075_v28 = vadd.f32 %v2071_v1, %v2957_v41 }
 0xe2b   : > { %2335 = vmatmul.msk.f32.gmra.mxu3 %vm509_vm0, %v2075_v28 }
 0xe2f   : > { %v2160_v25 = vpop.f32.mrf.mxu0 }
 0xe37   : > { %v2163_v18 = vpop.f32.mrf.mxu0 }
 0xe94   : > { %v2113_v50 = vpop.f32.mrf.mxu3 }
 0xe95   : > { %v2155_v61 = vadd.f32 %v2154_v29, %v2113_v50 }
 0xe97   : > { %v2167_v2 = vadd.f32 %v2166_v31, %v2155_v61 }
 0xe99   : > { %2171 = vst.msk [vmem:[%s486_s18] sm:$0xff] %vm509_vm0, %v2167_v2 }
 0xe9e   : > { %v2116_v47 = vpop.f32.mrf.mxu3 }
 0xe9f   : > { %v2158_v41 = vadd.f32 %v2157_v9, %v2116_v47 }
 0xea1   : > { %v2168_v3 = vadd.f32 %v2166_v31, %v2158_v41 }
 0xea3   : > { %2172 = vst.msk [vmem:[%s486_s18 + $0x8] sm:$0xff] %vm509_vm0, %v2168_v3 }
 0xea6   : > { %v2119_v7 = vpop.f32.mrf.mxu3 }
 0xea7   : > { %v2161_v60 = vadd.f32 %v2160_v25, %v2119_v7 }
 0xea9   : > { %v2169_v13 = vadd.f32 %v2166_v31, %v2161_v60 }
 0xeab   : > { %2173 = vst.msk [vmem:[%s486_s18 + $0x10] sm:$0xff] %vm509_vm0, %v2169_v13 }
 0xeae   : > { %v2122_v16 = vpop.f32.mrf.mxu3 }
 0xeaf   : > { %v2164_v15 = vadd.f32 %v2163_v18, %v2122_v16 }
 0xeb1   : > { %v2170_v35 = vadd.f32 %v2166_v31, %v2164_v15 }
 0xeb3   : > { %2174 = vst.msk [vmem:[%s486_s18 + $0x18] sm:$0xff] %vm509_vm0, %v2170_v35 }
 0xeb4 PF: > { %s23_s25 = sadd.s32 1, %s2455_s25  }
 0xeb5   : > { %p20_p4 = scmp.ge.s32.totalorder %s23_s25, 4  }
 0xeb7   :  { %22 = sbr.rel (!%p20_p4) target bundleno = 1 (0x1), region = 108 }

// kernel: tpu_custom_call.1
= control target key start
LH: loop header
LB: loop body
LE: loop exit
PB: predicated region body
PF: predicated region fallthrough
CT: control target
= control target key end

     0   :  { %s2533_s25 = smov 0   ;;  %s3238_s0 = inlined_call_operand.vmem [shape: f32[64,32], index: 0, kind: input, shape index: {}]   ;;  %s3239_s1 = inlined_call_operand.vmem [shape: f32[64,32], index: 1, kind: input, shape index: {}]   ;;  %s3240_s2 = inlined_call_operand.vmem [shape: f32[64,3], index: 2, kind: input, shape index: {}]   ;;  %s3241_s3 = inlined_call_operand.vmem [shape: f32[8,32], index: 3, kind: input, shape index: {}]   ;;  %s3242_s4 = inlined_call_operand.vmem [shape: f32[64,32], index: 4, kind: input, shape index: {}]   ;;  %s3243_s5 = inlined_call_operand.vmem [shape: f32[32,96], index: 5, kind: input, shape index: {}]   ;;  %s3244_s6 = inlined_call_operand.vmem [shape: f32[1,96], index: 6, kind: input, shape index: {}]   ;;  %s3245_s7 = inlined_call_operand.vmem [shape: f32[32,32], index: 7, kind: input, shape index: {}]   ;;  %s3246_s8 = inlined_call_operand.vmem [shape: f32[32,64], index: 8, kind: input, shape index: {}]   ;;  %s3247_s9 = inlined_call_operand.vmem [shape: f32[1,64], index: 9, kind: input, shape index: {}]   ;;  %s3248_s10 = inlined_call_operand.vmem [shape: f32[64,32], index: 10, kind: input, shape index: {}]   ;;  %s3249_s11 = inlined_call_operand.vmem [shape: f32[64,32], index: 11, kind: input, shape index: {}]   ;;  %s3250_s12 = inlined_call_operand.vmem [shape: f32[8,32], index: 12, kind: input, shape index: {}]   ;;  %s3251_s13 = inlined_call_operand.vmem [shape: f32[64,32], index: 13, kind: output, shape index: {}]  }
   0x1 LB: > { %s2255_s26 = sadd.s32 4294967295, %s2455_s25   ;;  %p2259_p0 = scmp.ge.s32.totalorder %s2455_s25, 1  ;;  %s2455_s25 = sphi %s2533_s25, %s23_s25  }
   0x2   : > { %p410_p1 = scmp.lt.s32.totalorder %s2455_s25, 3 }
   0x4   : > { %p411_p2 = pnand %p2259_p0, %p410_p1 }
   0x5   : > { %s2260_s14 = sshll.u32 (!%p411_p2), %s2255_s26, 2 }
   0x6   : > { %414 = sbr.rel (%p411_p2) target bundleno = 3764 (0xeb4), region = 72  ;;  %p465_p3 = scmp.lt.s32.totalorder (!%p411_p2), %s2260_s14, 7 }
   0xb   : > { %v500_v0 = vld [vmem:[%s3242_s4 + $0x38] sm:$0xff]  ;;  %v499_v1 = vld [vmem:[%s3242_s4 + $0x30] sm:$0xff]  ;;  %v498_v2 = vld [vmem:[%s3242_s4 + $0x28] sm:$0xff]  ;;  %v2457_v3 = vmov 0   ;;  %s3259_s14 = smov (!%p465_p3, %s2260_s14), 7  ;;  %vm509_vm0 = vcmask 261120  }
   0xc   : > { %2342 = vmatpush.msra.mxu1 %v500_v0  ;;  %534 = vmatpush.msra.mxu0 %v500_v0  ;;  %v497_v4 = vld [vmem:[%s3242_s4 + $0x20] sm:$0xff]  ;;  %s2553_s19 = sshll.u32 %s3259_s14, 3  ;;  %v496_v5 = vld [vmem:[%s3242_s4 + $0x18] sm:$0xff]  ;;  %v495_v8 = vld [vmem:[%s3242_s4 + $0x10] sm:$0xff]  ;;  %v2458_v16 = vmov 1   ;;  %vm831_vm2 = vcmask 64512  }
   0xd   : > { %2360 = vset.pattern.permute.xlu0 %v2457_v3  ;;  %2362 = vset.pattern.permute.xlu1 %v2457_v3  ;;  %s474_s22 = scalar_lea.vmem %s3239_s1, %s2553_s19  ;;  %s480_s28 = scalar_lea.vmem %s3240_s2, %s2553_s19  ;;  %v494_v11 = vld [vmem:[%s3242_s4 + $0x8] sm:$0xff]  ;;  %v493_v12 = vld [vmem:[%s3242_s4] sm:$0xff]  ;;  %v2606_v22 = vld [vmem:[%s3243_s5 + $0x18] sm:$0xff] }
   0xe   : > { %2343 = vmatpush.msra.mxu1 %v499_v1  ;;  %535 = vmatpush.msra.mxu0 %v499_v1  ;;  %v507_v6 = vld [vmem:[%s474_s22 + $0x10] sm:$0xff]  ;;  %v505_v7 = vld [vmem:[%s474_s22] sm:$0xff]  ;;  %v2574_v10 = vld [vmem:[%s480_s28 + $0x8] sm:$0xff]  ;;  %s468_s21 = scalar_lea.vmem %s3238_s0, %s2553_s19  ;;  %s486_s18 = scalar_lea.vmem %s3251_s13, %s2553_s19 }
   0xf   : > { %2364 = vset.pattern.permute.xlu2 %v2457_v3  ;;  %v2571_v9 = vld [vmem:[%s480_s28] sm:$0xff]  ;;  %599 = vperm.xlu1 %2362, %v2574_v10   ;;  %v508_v13 = vld [vmem:[%s474_s22 + $0x18] sm:$0xff]  ;;  %v506_v14 = vld [vmem:[%s474_s22 + $0x8] sm:$0xff]  ;;  %s2460_s22 = smov 64  }
  0x10   : > { %2344 = vmatpush.msra.mxu1 %v498_v2  ;;  %536 = vmatpush.msra.mxu0 %v498_v2  ;;  %v2585_v15 = vld [vmem:[%s480_s28 + $0x10] sm:$0xff]  ;;  %v501_v17 = vld [vmem:[%s468_s21] sm:$0xff]  ;;  %v2595_v18 = vld [vmem:[%s480_s28 + $0x18] sm:$0xff] }
  0x11   : > { %594 = vperm.xlu0 %2360, %v2571_v9   ;;  %604 = vperm.xlu2 %2364, %v2585_v15   ;;  %v502_v19 = vld [vmem:[%s468_s21 + $0x8] sm:$0xff]  ;;  %v503_v20 = vld [vmem:[%s468_s21 + $0x10] sm:$0xff]  ;;  %v504_v21 = vld [vmem:[%s468_s21 + $0x18] sm:$0xff]  ;;  %s2459_s21 = smov 96  }
  0x12   : > { %2345 = vmatpush.msra.mxu1 %v497_v4  ;;  %537 = vmatpush.msra.mxu0 %v497_v4  ;;  %v2612_v23 = vld [vmem:[%s3243_s5 + $0x10] sm:$0xff]  ;;  %v2617_v24 = vld [vmem:[%s3243_s5 + $0x8] sm:$0xff]  ;;  %v2624_v25 = vld [vmem:[%s3243_s5] sm:$0xff] }
  0x13   : > { %2270 = vmatmul.msk.f32.vlgmr.msra.gmra.mxu1 %vm509_vm0, %v507_v6  ;;  %2268 = vmatmul.msk.f32.vlgmr.msra.gmra.mxu0 %vm509_vm0, %v505_v7  ;;  %v2630_v28 = vld [vmem:[%s3250_s12] sm:$0xff] }
  0x14   : > { %575 = vmatpush.msrb.mxu1 %v496_v5  ;;  %700 = vmatpush.msra.mxu2 %v2606_v22  ;;  %v612_v31 = vperm.slane %v2630_v28, 7  ;;  %v621_v36 = vld [vmem:[%s3241_s3] sm:$0xff] }
  0x15   : > { %v2655_v1 = vld [vmem:[%s3244_s6] ss:$0 sm:$0xff] }
  0x16   : > { %576 = vmatpush.msrb.mxu1 %v495_v8  ;;  %701 = vmatpush.msra.mxu2 %v2612_v23 }
  0x17   : > { %2363 = vset.pattern.permute.xlu1 %v2458_v16 }
  0x18   : > { %577 = vmatpush.msrb.mxu1 %v494_v11  ;;  %631 = vperm.xlu1 %2363, %v2574_v10  }
  0x19   : > { %2361 = vset.pattern.permute.xlu0 %v2458_v16  ;;  %2365 = vset.pattern.permute.xlu2 %v2458_v16 }
  0x1a   : > { %578 = vmatpush.msrb.mxu1 %v493_v12  ;;  %627 = vperm.xlu0 %2361, %v2571_v9  }
  0x1b   : > { %2271 = vmatmul.msk.f32.gmra.mxu1 %vm509_vm0, %v508_v13  ;;  %2269 = vmatmul.msk.f32.gmra.mxu0 %vm509_vm0, %v506_v14 }
  0x1c   : > { %635 = vperm.xlu2 %2365, %v2585_v15   ;;  %702 = vmatpush.msra.mxu2 %v2617_v24 }
  0x1e   : > { %703 = vmatpush.msra.mxu2 %v2624_v25 }
  0x20   : > { %2366 = vset.pattern.permute.xlu1 %v2457_v3 }
  0x21   : > { %609 = vperm.xlu1 %2366, %v2595_v18  }
  0x23   : > { %2272 = vmatmul.msk.f32.vlgmr.msrb.gmra.mxu1 %vm509_vm0, %v501_v17  ;;  %v646_v17 = vlaneseq }
  0x24   : > { %639 = vperm.xlu2 %2365, %v2595_v18  }
  0x2b   : > { %2273 = vmatmul.msk.f32.gmra.mxu1 %vm509_vm0, %v502_v19  ;;  %v647_v19 = vshrl.u32 %v646_v17, 7 }
  0x33   : > { %2274 = vmatmul.msk.f32.gmra.mxu1 %vm509_vm0, %v503_v20  ;;  %v649_v20 = vand.u32 127, %v646_v17 }
  0x35   : > { %vm2685_vm1 = vcmp.le.s32.totalorder %v649_v20, %v647_v19 }
  0x3b   : > { %2275 = vmatmul.msk.f32.gmra.mxu1 %vm509_vm0, %v504_v21 }
  0x6b   : > { %v605_v43 = vpop.permute.xlu2 %604 }
  0x6c   : > { %v615_v49 = vmul.f32 %v612_v31, %v605_v43 }
  0x76   : > { %v636_v53 = vpop.permute.xlu2 %635 }
  0x7e   : > { %v640_v62 = vpop.permute.xlu2 %639 }
  0x81   : > { %v600_v35 = vpop.permute.xlu1 %599 }
  0x82   : > { %v614_v44 = vmul.f32 %v612_v31, %v600_v35 }
  0x83   : > { %v595_v29 = vpop.permute.xlu0 %594 }
  0x84   : > { %v613_v33 = vmul.f32 %v612_v31, %v595_v29 }
  0x8a   : > { %v632_v47 = vpop.permute.xlu1 %631 }
  0x8c   : > { %v628_v38 = vpop.permute.xlu0 %627 }
  0x90   : > { %v545_v26 = vpop.f32.mrf.mxu1  ;;  %v539_v30 = vpop.f32.mrf.mxu0 }
  0x93   : > { %v610_v55 = vpop.permute.xlu1 %609 }
  0x94   : > { %v616_v58 = vmul.f32 %v612_v31, %v610_v55 }
  0x98   : > { %v548_v27 = vpop.f32.mrf.mxu1  ;;  %v542_v40 = vpop.f32.mrf.mxu0 }
  0xa0   : > { %v580_v32 = vpop.f32.mrf.mxu1 }
  0xa1   : > { %v581_v34 = vadd.f32 %v580_v32, %v539_v30 }
  0xa3   : > { %v617_v37 = vadd.f32 %v613_v33, %v581_v34 }
  0xa5   : > { %v622_v39 = vadd.f32 %v621_v36, %v617_v37 }
  0xa7   : > { %v2636_v41 = vmul.f32 %v628_v38, %v622_v39 }
  0xa8   : > { %v583_v42 = vpop.f32.mrf.mxu1 }
  0xa9   : > { %v584_v45 = vadd.f32 %v583_v42, %v542_v40  ;;  %2276 = vmatmul.msk.f32.vlgmr.msra.gmra.mxu2 %vm509_vm0, %v2636_v41 }
  0xab   : > { %v618_v46 = vadd.f32 %v614_v44, %v584_v45 }
  0xad   : > { %v623_v48 = vadd.f32 %v621_v36, %v618_v46 }
  0xaf   : > { %v2640_v50 = vmul.f32 %v632_v47, %v623_v48 }
  0xb0   : > { %v586_v51 = vpop.f32.mrf.mxu1 }
  0xb1   : > { %v587_v52 = vadd.f32 %v586_v51, %v545_v26  ;;  %2277 = vmatmul.msk.f32.gmra.mxu2 %vm509_vm0, %v2640_v50 }
  0xb3   : > { %v619_v54 = vadd.f32 %v615_v49, %v587_v52 }
  0xb5   : > { %v624_v56 = vadd.f32 %v621_v36, %v619_v54 }
  0xb7   : > { %v2644_v57 = vmul.f32 %v636_v53, %v624_v56 }
  0xb8   : > { %v589_v59 = vpop.f32.mrf.mxu1 }
  0xb9   : > { %v590_v60 = vadd.f32 %v589_v59, %v548_v27  ;;  %2278 = vmatmul.msk.f32.gmra.mxu2 %vm509_vm0, %v2644_v57 }
  0xbb   : > { %v620_v61 = vadd.f32 %v616_v58, %v590_v60 }
  0xbd   : > { %v625_v63 = vadd.f32 %v621_v36, %v620_v61 }
  0xbf   : > { %v2648_v0 = vmul.f32 %v640_v62, %v625_v63 }
  0xc1   : > { %2279 = vmatmul.msk.f32.gmra.mxu2 %vm509_vm0, %v2648_v0 }
 0x12c   : > { %v705_v2 = vpop.f32.mrf.mxu2 }
 0x12d   : > { %v706_v3 = vadd.f32 %v2655_v1, %v705_v2 }
 0x12f   : > { %718 = vrot.lane.b32.xlu0 %v706_v3, %s2459_s21 }
 0x134   : > { %v708_v4 = vpop.f32.mrf.mxu2 }
 0x135   : > { %v2660_v5 = vadd.f32 %v2655_v1, %v708_v4 }
 0x137   : > { %745 = vrot.lane.b32.xlu1 %v2660_v5, %s2459_s21 }
 0x13c   : > { %v711_v6 = vpop.f32.mrf.mxu2 }
 0x13d   : > { %v2665_v7 = vadd.f32 %v2655_v1, %v711_v6 }
 0x13f   : > { %772 = vrot.lane.b32.xlu2 %v2665_v7, %s2459_s21 }
 0x144   : > { %v714_v8 = vpop.f32.mrf.mxu2 }
 0x145   : > { %v2670_v11 = vadd.f32 %v2655_v1, %v714_v8 }
 0x147   : > { %799 = vrot.lane.b32.xlu0 %v2670_v11, %s2459_s21  ;;  %v2367_v63 = vpack.i.bf16 %v2670_v11, %v2665_v7 }
 0x199   : > { %v773_v14 = vpop.permute.xlu2 %772 }
 0x1a1   : > { %v719_v12 = vpop.permute.xlu0 %718 }
 0x1a2   : > { %2280 = vmatpush.xpose.msk.msra.mxu3 %vm509_vm0, %v719_v12 }
 0x1a5   : > { %2281 = vmatmul.msk.f32.vlgmr.msra.gmra.mxu3 %vm509_vm0, %v706_v3 }
 0x1a9   : > { %v746_v13 = vpop.permute.xlu1 %745 }
 0x1aa   : > { %2282 = vmatpush.xpose.msk.msrb.mxu3 %vm509_vm0, %v746_v13 }
 0x1ad   : > { %2283 = vmatmul.msk.f32.vlgmr.msrb.gmra.mxu3 %vm509_vm0, %v2660_v5 }
 0x1ae   : > { %2284 = vmatpush.xpose.msk.msra.mxu3 %vm509_vm0, %v773_v14 }
 0x1b5   : > { %2285 = vmatmul.msk.f32.vlgmr.msra.gmra.mxu3 %vm509_vm0, %v2665_v7 }
 0x1b9   : > { %v800_v16 = vpop.permute.xlu0 %799 }
 0x1ba   : > { %2286 = vmatpush.xpose.msk.msrb.mxu3 %vm509_vm0, %v800_v16 }
 0x1bd   : > { %2287 = vmatmul.msk.f32.vlgmr.msrb.gmra.mxu3 %vm509_vm0, %v2670_v11 }
 0x228   : > { %v741_v26 = vpop.f32.mrf.mxu3 }
 0x229   : > { %v827_v27 = vsel %vm2685_vm1, %v741_v26, -1e+30 }
 0x22a   : > { %v832_v29 = vsel %vm831_vm2, %v827_v27, -inf }
 0x22b   : > { %833 = vmax.xlane.f32.xlu1 %v832_v29 }
 0x230   : > { %v768_v30 = vpop.f32.mrf.mxu3 }
 0x231   : > { %v828_v31 = vsel %vm2685_vm1, %v768_v30, -1e+30 }
 0x232   : > { %v835_v32 = vsel %vm831_vm2, %v828_v31, -inf }
 0x233   : > { %836 = vmax.xlane.f32.xlu2 %v835_v32 }
 0x238   : > { %v795_v33 = vpop.f32.mrf.mxu3 }
 0x239   : > { %v829_v34 = vsel %vm2685_vm1, %v795_v33, -1e+30 }
 0x23a   : > { %v838_v35 = vsel %vm831_vm2, %v829_v34, -inf }
 0x23b   : > { %839 = vmax.xlane.f32.xlu0 %v838_v35 }
 0x240   : > { %v822_v36 = vpop.f32.mrf.mxu3 }
 0x241   : > { %v830_v37 = vsel %vm2685_vm1, %v822_v36, -1e+30 }
 0x242   : > { %v841_v38 = vsel %vm831_vm2, %v830_v37, -inf }
 0x243   : > { %842 = vmax.xlane.f32.xlu2 %v841_v38 }
 0x24f   : > { %928 = vrot.lane.b32.xlu0 %v706_v3, %s2460_s22 }
 0x29e   : > { %v834_v39 = vpop.xlane.xlu1 %833 }
 0x29f   : > { %v844_v40 = vsub.f32 %v827_v27, %v834_v39 }
 0x2a1   : > { %v848_v42 = vmul.f32 1.442695, %v844_v40 }
 0x2a3   : > { %2382 = vpow2.f32 %v848_v42 }
 0x2a6   : > { %v837_v43 = vpop.xlane.xlu2 %836 }
 0x2a7   : > { %v845_v44 = vsub.f32 %v828_v31, %v837_v43 }
 0x2a9   : > { %v2383_v45 = vpop.eup %2382  ;;  %v850_v46 = vmul.f32 1.442695, %v845_v44 }
 0x2aa   : > { %v856_v47 = vsel %vm831_vm2, %v2383_v45, 0.0 }
 0x2ab   : > { %2384 = vpow2.f32 %v850_v46  ;;  %857 = vadd.xlane.f32.xlu1 %v856_v47 }
 0x2ae   : > { %v840_v48 = vpop.xlane.xlu0 %839 }
 0x2af   : > { %v846_v49 = vsub.f32 %v829_v34, %v840_v48 }
 0x2b1   : > { %v2703_v51 = vpop.eup %2384  ;;  %v852_v52 = vmul.f32 1.442695, %v846_v49 }
 0x2b2   : > { %v859_v53 = vsel %vm831_vm2, %v2703_v51, 0.0 }
 0x2b3   : > { %2386 = vpow2.f32 %v852_v52  ;;  %860 = vadd.xlane.f32.xlu2 %v859_v53 }
 0x2b6   : > { %v843_v54 = vpop.xlane.xlu2 %842 }
 0x2b7   : > { %v847_v55 = vsub.f32 %v830_v37, %v843_v54 }
 0x2b9   : > { %v2707_v56 = vpop.eup %2386  ;;  %v854_v58 = vmul.f32 1.442695, %v847_v55 }
 0x2ba   : > { %v862_v59 = vsel %vm831_vm2, %v2707_v56, 0.0 }
 0x2bb   : > { %2388 = vpow2.f32 %v854_v58  ;;  %863 = vadd.xlane.f32.xlu1 %v862_v59 }
 0x2c1   : > { %v2711_v60 = vpop.eup %2388  ;;  %v929_v61 = vpop.permute.xlu0 %928 }
 0x2c2   : > { %949 = vmatpush.msra.mxu3 %v929_v61  ;;  %v865_v62 = vsel %vm831_vm2, %v2711_v60, 0.0 }
 0x2c3   : > { %866 = vadd.xlane.f32.xlu2 %v865_v62 }
 0x2d4   : > { %954 = vrot.lane.b32.xlu1 %v2660_v5, %s2460_s22 }
 0x2db   : > { %2368 = vrot.lane.b32.xlu2 %v2367_v63, %s2460_s22 }
 0x31e   : > { %v858_v2 = vpop.xlane.xlu1 %857 }
 0x31f   : > { %2390 = vrcp.f32 %v858_v2  ;;  %v879_v12 = vand.u32 2147483648, %v858_v2  ;;  %v877_v14 = vand.u32 2147483647, %v858_v2  ;;  %vm873_vm4 = vweird.f32 %v858_v2 }
 0x321   : > { %v880_v5 = vor.u32 1.1754944e-38, %v879_v12  ;;  %vm878_vm6 = vcmp.eq.f32.partialorder %v877_v14, 8.507059e+37  ;;  %v2743_v12 = vld [vmem:[%s3245_s7 + $0x10] sm:$0xff] }
 0x325   : > { %v2391_v3 = vpop.eup %2390 }
 0x326   : > { %v869_v4 = vmul.f32 %v2391_v3, %v858_v2  ;;  %v861_v6 = vpop.xlane.xlu2 %860  ;;  %vm874_vm3 = vweird.f32 %v2391_v3 }
 0x327   : > { %2392 = vrcp.f32 %v861_v6  ;;  %vm875_vm5 = vmor %vm873_vm4, %vm874_vm3  ;;  %vm887_vm10 = vweird.f32 %v861_v6  ;;  %v893_v40 = vand.u32 2147483648, %v861_v6  ;;  %v891_v43 = vand.u32 2147483647, %v861_v6 }
 0x328   : > { %v870_v8 = vsub.f32 1.0, %v869_v4 }
 0x329   : > { %v894_v58 = vor.u32 1.1754944e-38, %v893_v40  ;;  %vm892_vm14 = vcmp.eq.f32.partialorder %v891_v43, 8.507059e+37 }
 0x32a   : > { %v871_v13 = vmul.f32 %v2391_v3, %v870_v8  ;;  %v2735_v8 = vld [vmem:[%s3245_s7 + $0x18] sm:$0xff] }
 0x32c   : > { %v872_v16 = vadd.f32 %v2391_v3, %v871_v13 }
 0x32d   : > { %v2393_v17 = vpop.eup %2392 }
 0x32e   : > { %v876_v19 = vsel %vm875_vm5, %v2391_v3, %v872_v16  ;;  %v864_v7 = vpop.xlane.xlu1 %863  ;;  %v883_v20 = vmul.f32 %v2393_v17, %v861_v6  ;;  %vm888_vm8 = vweird.f32 %v2393_v17  ;;  %v2766_v16 = vperm.slane %v2630_v28, 0 }
 0x32f   : > { %v881_v11 = vsel %vm878_vm6, %v880_v5, %v876_v19  ;;  %2394 = vrcp.f32 %v864_v7  ;;  %v907_v34 = vand.u32 2147483648, %v864_v7  ;;  %v905_v36 = vand.u32 2147483647, %v864_v7  ;;  %vm2721_vm13 = vmor %vm887_vm10, %vm888_vm8 }
 0x330   : > { %v924_v26 = vmul.f32 %v2383_v45, %v881_v11  ;;  %v884_v27 = vsub.f32 1.0, %v883_v20  ;;  %vm901_vm9 = vweird.f32 %v864_v7 }
 0x331   : > { %v908_v42 = vor.u32 1.1754944e-38, %v907_v34  ;;  %vm906_vm12 = vcmp.eq.f32.partialorder %v905_v36, 8.507059e+37 }
 0x332   : > { %2288 = vmatmul.msk.f32.vlgmr.msra.gmra.mxu3 %vm831_vm2, %v924_v26  ;;  %v885_v32 = vmul.f32 %v2393_v17, %v884_v27 }
 0x334   : > { %v886_v37 = vadd.f32 %v2393_v17, %v885_v32 }
 0x335   : > { %v2395_v29 = vpop.eup %2394 }
 0x336   : > { %v897_v30 = vmul.f32 %v2395_v29, %v864_v7  ;;  %v867_v31 = vpop.xlane.xlu2 %866  ;;  %vm902_vm7 = vweird.f32 %v2395_v29  ;;  %v890_v53 = vsel %vm2721_vm13, %v2393_v17, %v886_v37 }
 0x337   : > { %2396 = vrcp.f32 %v867_v31  ;;  %vm903_vm11 = vmor %vm901_vm9, %vm902_vm7  ;;  %v921_v59 = vand.u32 2147483648, %v867_v31  ;;  %v919_v62 = vand.u32 2147483647, %v867_v31  ;;  %v895_v63 = vsel %vm892_vm14, %v894_v58, %v890_v53 }
 0x338   : > { %v898_v33 = vsub.f32 1.0, %v897_v30  ;;  %vm915_vm3 = vweird.f32 %v867_v31  ;;  %v925_v4 = vmul.f32 %v2703_v51, %v895_v63  ;;  %v2758_v51 = vld [vmem:[%s3245_s7] sm:$0xff] }
 0x339   : > { %v922_v3 = vor.u32 1.1754944e-38, %v921_v59  ;;  %vm920_vm5 = vcmp.eq.f32.partialorder %v919_v62, 8.507059e+37 }
 0x33a   : > { %v899_v35 = vmul.f32 %v2395_v29, %v898_v33 }
 0x33c   : > { %v900_v38 = vadd.f32 %v2395_v29, %v899_v35 }
 0x33d   : > { %v2397_v39 = vpop.eup %2396 }
 0x33e   : > { %v904_v44 = vsel %vm903_vm11, %v2395_v29, %v900_v38  ;;  %v911_v45 = vmul.f32 %v2397_v39, %v867_v31  ;;  %v2369_v46 = vpop.permute.xlu2 %2368  ;;  %vm916_vm15 = vweird.f32 %v2397_v39 }
 0x33f   : > { %v909_v48 = vsel %vm906_vm12, %v908_v42, %v904_v44  ;;  %v2370_v49 = vunpack.i.l.bf16 %v2369_v46  ;;  %v2371_v52 = vunpack.i.h.bf16 %v2369_v46  ;;  %vm917_vm4 = vmor %vm915_vm3, %vm916_vm15 }
 0x340   : > { %v912_v54 = vsub.f32 1.0, %v911_v45  ;;  %v926_v55 = vmul.f32 %v2707_v56, %v909_v48 }
 0x341   : > { %1001 = vmatpush.msra.mxu1 %v2370_v49  ;;  %1027 = vmatpush.msrb.mxu2 %v2371_v52 }
 0x342   : > { %v913_v61 = vmul.f32 %v2397_v39, %v912_v54  ;;  %2290 = vmatmul.msk.f32.vlgmr.msra.gmra.mxu1 %vm831_vm2, %v926_v55 }
 0x343   : > { %1420 = vmatpush.msra.mxu2 %v2606_v22 }
 0x344   : > { %v914_v2 = vadd.f32 %v2397_v39, %v913_v61 }
 0x345   : > { %1421 = vmatpush.msra.mxu2 %v2612_v23 }
 0x346   : > { %v955_v56 = vpop.permute.xlu1 %954  ;;  %v918_v6 = vsel %vm917_vm4, %v2397_v39, %v914_v2 }
 0x347   : > { %1422 = vmatpush.msra.mxu2 %v2617_v24  ;;  %975 = vmatpush.msrb.mxu3 %v955_v56  ;;  %v923_v22 = vsel %vm920_vm5, %v922_v3, %v918_v6  ;;  %v2751_v24 = vld [vmem:[%s3245_s7 + $0x8] sm:$0xff]  ;;  %v2805_v56 = vld [vmem:[%s3246_s8 + $0x18] sm:$0xff] }
 0x348   : > { %2289 = vmatmul.msk.f32.vlgmr.msrb.gmra.mxu3 %vm831_vm2, %v925_v4  ;;  %v927_v23 = vmul.f32 %v2711_v60, %v923_v22  ;;  %1210 = vmatpush.msrb.mxu0 %v2805_v56  ;;  %v2811_v4 = vld [vmem:[%s3246_s8 + $0x10] sm:$0xff]  ;;  %v2817_v6 = vld [vmem:[%s3246_s8 + $0x8] sm:$0xff]  ;;  %v2823_v22 = vld [vmem:[%s3246_s8] sm:$0xff] }
 0x349   : > { %1423 = vmatpush.msra.mxu2 %v2624_v25  ;;  %1057 = vmatpush.msra.mxu3 %v2735_v8 }
 0x34a   : > { %2291 = vmatmul.msk.f32.vlgmr.msrb.gmra.mxu2 %vm831_vm2, %v927_v23  ;;  %1211 = vmatpush.msrb.mxu0 %v2811_v4 }
 0x34b   : > { %1058 = vmatpush.msra.mxu3 %v2743_v12 }
 0x34c   : > { %1212 = vmatpush.msrb.mxu0 %v2817_v6 }
 0x34d   : > { %1059 = vmatpush.msra.mxu3 %v2751_v24 }
 0x34e   : > { %1213 = vmatpush.msrb.mxu0 %v2823_v22 }
 0x34f   : > { %1060 = vmatpush.msra.mxu3 %v2758_v51 }
 0x3b5   : > { %v951_v25 = vpop.f32.mrf.mxu3 }
 0x3b6   : > { %2292 = vmatmul.msk.f32.vlgmr.msra.gmra.mxu3 %vm509_vm0, %v951_v25 }
 0x3bf   : > { %v1003_v13 = vpop.f32.mrf.mxu1 }
 0x3cb   : > { %v977_v60 = vpop.f32.mrf.mxu3 }
 0x3cc   : > { %2293 = vmatmul.msk.f32.gmra.mxu3 %vm509_vm0, %v977_v60 }
 0x3cd   : > { %v1029_v14 = vpop.f32.mrf.mxu2 }
 0x3d4   : > { %2294 = vmatmul.msk.f32.gmra.mxu3 %vm509_vm0, %v1003_v13 }
 0x3dc   : > { %2295 = vmatmul.msk.f32.gmra.mxu3 %vm509_vm0, %v1029_v14 }
 0x439   : > { %v1062_v17 = vpop.f32.mrf.mxu3 }
 0x43a   : > { %v1063_v5 = vadd.f32 %v1062_v17, %v2766_v16 }
 0x43c   : > { %v1074_v19 = vadd.f32 %v1063_v5, %v2636_v41 }
 0x43e   : > { %v1078_v7 = vsel %vm509_vm0, %v1074_v19, 0.0 }
 0x43f   : > { %1079 = vadd.xlane.f32.xlu0 %v1078_v7 }
 0x44f   : > { %v1065_v11 = vpop.f32.mrf.mxu3 }
 0x450   : > { %v1066_v20 = vadd.f32 %v1065_v11, %v2766_v16  ;;  %v2828_v11 = vperm.slane %v2630_v28, 2 }
 0x452   : > { %v1075_v26 = vadd.f32 %v1066_v20, %v2640_v50  ;;  %v2461_v50 = vmov 32.0  }
 0x453   : > { %2398 = vrcp.f32 %v2461_v50 }
 0x454   : > { %v1081_v27 = vsel %vm509_vm0, %v1075_v26, 0.0 }
 0x455   : > { %1082 = vadd.xlane.f32.xlu1 %v1081_v27 }
 0x457   : > { %v1068_v29 = vpop.f32.mrf.mxu3 }
 0x458   : > { %v1069_v30 = vadd.f32 %v1068_v29, %v2766_v16 }
 0x459   : > { %v2399_v36 = vpop.eup %2398 }
 0x45a   : > { %v1076_v31 = vadd.f32 %v1069_v30, %v2644_v57  ;;  %v1091_v37 = vmul.f32 32.0, %v2399_v36  ;;  %vm1095_vm6 = vweird.f32 %v2399_v36  ;;  %v2832_v30 = vperm.slane %v2630_v28, 3 }
 0x45c   : > { %v1084_v32 = vsel %vm509_vm0, %v1076_v31, 0.0  ;;  %v1092_v38 = vsub.f32 1.0, %v1091_v37  ;;  %v2844_v37 = vld [vmem:[%s3248_s10 + $0x38] sm:$0xff] }
 0x45d   : > { %1085 = vadd.xlane.f32.xlu2 %v1084_v32  ;;  %1253 = vmatpush.msrb.mxu1 %v2844_v37 }
 0x45e   : > { %v1093_v39 = vmul.f32 %v2399_v36, %v1092_v38  ;;  %v2849_v38 = vld [vmem:[%s3248_s10 + $0x30] sm:$0xff] }
 0x45f   : > { %v1071_v41 = vpop.f32.mrf.mxu3  ;;  %1254 = vmatpush.msrb.mxu1 %v2849_v38 }
 0x460   : > { %v1072_v33 = vadd.f32 %v1071_v41, %v2766_v16  ;;  %v1094_v40 = vadd.f32 %v2399_v36, %v1093_v39 }
 0x462   : > { %v1077_v34 = vadd.f32 %v1072_v33, %v2648_v0  ;;  %v2780_v57 = vsel %vm1095_vm6, %v2399_v36, %v1094_v40  ;;  %v2855_v40 = vld [vmem:[%s3248_s10 + $0x28] sm:$0xff]  ;;  %vm1232_vm6 = vcmask 523264  }
 0x463   : > { %1255 = vmatpush.msrb.mxu1 %v2855_v40 }
 0x464   : > { %v1087_v35 = vsel %vm509_vm0, %v1077_v34, 0.0 }
 0x465   : > { %1088 = vadd.xlane.f32.xlu0 %v1087_v35 }
 0x4b2   : > { %v1080_v42 = vpop.xlane.xlu0 %1079 }
 0x4b3   : > { %v1097_v43 = vmul.f32 %v2780_v57, %v1080_v42 }
 0x4b5   : > { %v1101_v44 = vsub.f32 %v1074_v19, %v1097_v43 }
 0x4b7   : > { %v1105_v45 = vmul.f32 %v1101_v44, %v1101_v44 }
 0x4b9   : > { %v1109_v0 = vsel %vm509_vm0, %v1105_v45, 0.0  ;;  %v2862_v45 = vld [vmem:[%s3248_s10 + $0x20] sm:$0xff] }
 0x4ba   : > { %1110 = vadd.xlane.f32.xlu0 %v1109_v0  ;;  %1256 = vmatpush.msrb.mxu1 %v2862_v45 }
 0x4c8   : > { %v1083_v46 = vpop.xlane.xlu1 %1082 }
 0x4c9   : > { %v1098_v47 = vmul.f32 %v2780_v57, %v1083_v46 }
 0x4cb   : > { %v2785_v48 = vsub.f32 %v1075_v26, %v1098_v47 }
 0x4cd   : > { %v1106_v49 = vmul.f32 %v2785_v48, %v2785_v48 }
 0x4cf   : > { %v1112_v52 = vsel %vm509_vm0, %v1106_v49, 0.0  ;;  %v2868_v49 = vld [vmem:[%s3248_s10 + $0x18] sm:$0xff] }
 0x4d0   : > { %v1086_v53 = vpop.xlane.xlu2 %1085  ;;  %1113 = vadd.xlane.f32.xlu1 %v1112_v52  ;;  %1257 = vmatpush.msrb.mxu1 %v2868_v49 }
 0x4d1   : > { %v1099_v54 = vmul.f32 %v2780_v57, %v1086_v53 }
 0x4d3   : > { %v2791_v55 = vsub.f32 %v1076_v31, %v1099_v54 }
 0x4d5   : > { %v1107_v58 = vmul.f32 %v2791_v55, %v2791_v55 }
 0x4d7   : > { %v1115_v59 = vsel %vm509_vm0, %v1107_v58, 0.0 }
 0x4d8   : > { %1116 = vadd.xlane.f32.xlu0 %v1115_v59  ;;  %v1089_v61 = vpop.xlane.xlu0 %1088 }
 0x4d9   : > { %v1100_v62 = vmul.f32 %v2780_v57, %v1089_v61 }
 0x4db   : > { %v2797_v63 = vsub.f32 %v1077_v34, %v1100_v62 }
 0x4dd   : > { %v1108_v2 = vmul.f32 %v2797_v63, %v2797_v63 }
 0x4df   : > { %v1118_v3 = vsel %vm509_vm0, %v1108_v2, 0.0 }
 0x4e0   : > { %1119 = vadd.xlane.f32.xlu2 %v1118_v3 }
 0x52d   : > { %v1111_v23 = vpop.xlane.xlu0 %1110 }
 0x52e   : > { %v1121_v25 = vmul.f32 %v1111_v23, %v2780_v57 }
 0x530   : > { %v1125_v60 = vadd.f32 1e-05, %v1121_v25 }
 0x532   : > { %2400 = vrsqrt.f32 %v1125_v60  ;;  %vm1135_vm8 = vweird.f32 %v1125_v60 }
 0x538   : > { %v2401_v13 = vpop.eup %2400 }
 0x539   : > { %v1130_v14 = vmul.f32 %v2401_v13, %v1125_v60  ;;  %vm1136_vm7 = vweird.f32 %v2401_v13 }
 0x53a   : > { %vm1137_vm9 = vmor %vm1135_vm8, %vm1136_vm7 }
 0x53b   : > { %v1131_v17 = vmul.f32 %v2401_v13, %v1130_v14 }
 0x53d   : > { %v1132_v5 = vmul.f32 0.5, %v1131_v17 }
 0x53f   : > { %v1133_v19 = vsub.f32 1.5, %v1132_v5 }
 0x541   : > { %v1134_v7 = vmul.f32 %v2401_v13, %v1133_v19 }
 0x543   : > { %v1138_v20 = vsel %vm1137_vm9, %v2401_v13, %v1134_v7  ;;  %v1114_v26 = vpop.xlane.xlu1 %1113 }
 0x544   : > { %v1169_v27 = vmul.f32 %v1138_v20, %v1101_v44  ;;  %v1122_v29 = vmul.f32 %v1114_v26, %v2780_v57 }
 0x546   : > { %v1126_v31 = vadd.f32 1e-05, %v1122_v29  ;;  %v1174_v32 = vmul.f32 %v2828_v11, %v1169_v27 }
 0x548   : > { %2402 = vrsqrt.f32 %v1126_v31  ;;  %v2836_v41 = vadd.f32 %v2832_v30, %v1174_v32  ;;  %vm1145_vm11 = vweird.f32 %v1126_v31  ;;  %v2893_v32 = vld [vmem:[%s3248_s10 + $0x8] sm:$0xff] }
 0x54a   : > { %2296 = vmatmul.msk.f32.vlgmr.msrb.gmra.mxu0 %vm509_vm0, %v2836_v41 }
 0x54b   : > { %v1117_v33 = vpop.xlane.xlu0 %1116 }
 0x54c   : > { %v1123_v34 = vmul.f32 %v1117_v33, %v2780_v57  ;;  %v2905_v33 = vld [vmem:[%s3247_s9] ss:$0 sm:$0xff] }
 0x54e   : > { %v2403_v35 = vpop.eup %2402  ;;  %v1127_v50 = vadd.f32 1e-05, %v1123_v34 }
 0x54f   : > { %v1140_v36 = vmul.f32 %v2403_v35, %v1126_v31  ;;  %vm1146_vm10 = vweird.f32 %v2403_v35 }
 0x550   : > { %2404 = vrsqrt.f32 %v1127_v50  ;;  %vm1147_vm12 = vmor %vm1145_vm11, %vm1146_vm10  ;;  %vm1155_vm14 = vweird.f32 %v1127_v50 }
 0x551   : > { %v1141_v39 = vmul.f32 %v2403_v35, %v1140_v36 }
 0x553   : > { %v1142_v42 = vmul.f32 0.5, %v1141_v39  ;;  %v1120_v43 = vpop.xlane.xlu2 %1119 }
 0x554   : > { %v1124_v44 = vmul.f32 %v1120_v43, %v2780_v57 }
 0x555   : > { %v1143_v0 = vsub.f32 1.5, %v1142_v42 }
 0x556   : > { %v2405_v46 = vpop.eup %2404  ;;  %v1128_v47 = vadd.f32 1e-05, %v1124_v44 }
 0x557   : > { %v1144_v52 = vmul.f32 %v2403_v35, %v1143_v0  ;;  %v1150_v53 = vmul.f32 %v2405_v46, %v1127_v50  ;;  %vm1156_vm13 = vweird.f32 %v2405_v46 }
 0x558   : > { %2406 = vrsqrt.f32 %v1128_v47  ;;  %vm1157_vm15 = vmor %vm1155_vm14, %vm1156_vm13  ;;  %vm1165_vm4 = vweird.f32 %v1128_v47 }
 0x559   : > { %v1148_v54 = vsel %vm1147_vm12, %v2403_v35, %v1144_v52  ;;  %v1151_v58 = vmul.f32 %v2405_v46, %v1150_v53  ;;  %v2916_v53 = vperm.slane %v2630_v28, 1 }
 0x55a   : > { %v1170_v59 = vmul.f32 %v1148_v54, %v2785_v48 }
 0x55b   : > { %v1152_v61 = vmul.f32 0.5, %v1151_v58 }
 0x55c   : > { %v1175_v62 = vmul.f32 %v2828_v11, %v1170_v59 }
 0x55d   : > { %v1153_v2 = vsub.f32 1.5, %v1152_v61 }
 0x55e   : > { %v2407_v3 = vpop.eup %2406  ;;  %v1180_v23 = vadd.f32 %v2832_v30, %v1175_v62 }
 0x55f   : > { %v1154_v25 = vmul.f32 %v2405_v46, %v1153_v2  ;;  %v1160_v60 = vmul.f32 %v2407_v3, %v1128_v47  ;;  %vm1166_vm3 = vweird.f32 %v2407_v3 }
 0x560   : > { %2297 = vmatmul.msk.f32.gmra.mxu0 %vm509_vm0, %v1180_v23  ;;  %vm1167_vm5 = vmor %vm1165_vm4, %vm1166_vm3 }
 0x561   : > { %v1158_v13 = vsel %vm1157_vm15, %v2405_v46, %v1154_v25  ;;  %v1161_v14 = vmul.f32 %v2407_v3, %v1160_v60 }
 0x562   : > { %v1171_v17 = vmul.f32 %v1158_v13, %v2791_v55  ;;  %v2887_v55 = vld [vmem:[%s3248_s10 + $0x10] sm:$0xff] }
 0x563   : > { %v1162_v5 = vmul.f32 0.5, %v1161_v14  ;;  %1258 = vmatpush.msrb.mxu1 %v2887_v55 }
 0x564   : > { %v1176_v48 = vmul.f32 %v2828_v11, %v1171_v17 }
 0x565   : > { %v1163_v19 = vsub.f32 1.5, %v1162_v5  ;;  %1259 = vmatpush.msrb.mxu1 %v2893_v32 }
 0x566   : > { %v1181_v7 = vadd.f32 %v2832_v30, %v1176_v48 }
 0x567   : > { %v1164_v20 = vmul.f32 %v2407_v3, %v1163_v19 }
 0x568   : > { %2298 = vmatmul.msk.f32.gmra.mxu0 %vm509_vm0, %v1181_v7 }
 0x569   : > { %v1168_v26 = vsel %vm1167_vm5, %v2407_v3, %v1164_v20 }
 0x56a   : > { %v1172_v27 = vmul.f32 %v1168_v26, %v2797_v63  ;;  %v2899_v63 = vld [vmem:[%s3248_s10] sm:$0xff] }
 0x56b   : > { %1260 = vmatpush.msrb.mxu1 %v2899_v63 }
 0x56c   : > { %v1177_v29 = vmul.f32 %v2828_v11, %v1172_v27 }
 0x56e   : > { %v1182_v31 = vadd.f32 %v2832_v30, %v1177_v29 }
 0x570   : > { %2299 = vmatmul.msk.f32.gmra.mxu0 %vm509_vm0, %v1182_v31 }
 0x5c7   : > { %v1215_v34 = vpop.f32.mrf.mxu0 }
 0x5c8   : > { %v1216_v35 = vadd.f32 %v2905_v33, %v1215_v34  ;;  %v2462_v34 = vmov 2  }
 0x5c9   : > { %2372 = vset.pattern.permute.xlu2 %v2462_v34  ;;  %2373 = vset.pattern.permute.xlu1 %v2462_v34 }
 0x5ca   : > { %v1227_v50 = vmax.f32 %v1216_v35, 0.0  ;;  %2374 = vset.pattern.permute.xlu0 %v2462_v34 }
 0x5cc   : > { %2300 = vmatmul.msk.f32.vlgmr.msrb.gmra.mxu1 %vm1232_vm6, %v1227_v50 }
 0x5dd   : > { %v1218_v36 = vpop.f32.mrf.mxu0 }
 0x5de   : > { %v1219_v39 = vadd.f32 %v2905_v33, %v1218_v36 }
 0x5e0   : > { %v1228_v42 = vmax.f32 %v1219_v39, 0.0 }
 0x5e2   : > { %2301 = vmatmul.msk.f32.gmra.mxu1 %vm1232_vm6, %v1228_v42 }
 0x5e5   : > { %v1221_v43 = vpop.f32.mrf.mxu0 }
 0x5e6   : > { %v1222_v44 = vadd.f32 %v2905_v33, %v1221_v43 }
 0x5e8   : > { %v1229_v0 = vmax.f32 %v1222_v44, 0.0 }
 0x5ea   : > { %2302 = vmatmul.msk.f32.gmra.mxu1 %vm1232_vm6, %v1229_v0 }
 0x5ed   : > { %v1224_v46 = vpop.f32.mrf.mxu0 }
 0x5ee   : > { %v1225_v47 = vadd.f32 %v2905_v33, %v1224_v46 }
 0x5f0   : > { %v1230_v52 = vmax.f32 %v1225_v47, 0.0 }
 0x5f2   : > { %2303 = vmatmul.msk.f32.gmra.mxu1 %vm1232_vm6, %v1230_v52 }
 0x649   : > { %v1262_v54 = vpop.f32.mrf.mxu1 }
 0x64a   : > { %v1263_v58 = vadd.f32 %v1262_v54, %v2916_v53 }
 0x64c   : > { %v1274_v59 = vadd.f32 %v1263_v58, %v2836_v41 }
 0x64e   : > { %v1278_v61 = vsel %vm509_vm0, %v1274_v59, 0.0 }
 0x64f   : > { %1279 = vadd.xlane.f32.xlu1 %v1278_v61 }
 0x65f   : > { %v1265_v62 = vpop.f32.mrf.mxu1 }
 0x660   : > { %v1266_v2 = vadd.f32 %v1265_v62, %v2916_v53 }
 0x662   : > { %v1275_v3 = vadd.f32 %v1266_v2, %v1180_v23 }
 0x664   : > { %v1281_v25 = vsel %vm509_vm0, %v1275_v3, 0.0 }
 0x665   : > { %1282 = vadd.xlane.f32.xlu0 %v1281_v25 }
 0x667   : > { %v1268_v60 = vpop.f32.mrf.mxu1 }
 0x668   : > { %v1269_v13 = vadd.f32 %v1268_v60, %v2916_v53 }
 0x66a   : > { %v1276_v14 = vadd.f32 %v1269_v13, %v1181_v7 }
 0x66c   : > { %v1284_v17 = vsel %vm509_vm0, %v1276_v14, 0.0 }
 0x66d   : > { %1285 = vadd.xlane.f32.xlu2 %v1284_v17 }
 0x66f   : > { %v1271_v5 = vpop.f32.mrf.mxu1 }
 0x670   : > { %v1272_v41 = vadd.f32 %v1271_v5, %v2916_v53 }
 0x672   : > { %v1277_v48 = vadd.f32 %v1272_v41, %v1182_v31  ;;  %v2957_v41 = vperm.slane %v2630_v28, 5 }
 0x674   : > { %v1287_v19 = vsel %vm509_vm0, %v1277_v48, 0.0 }
 0x675   : > { %1288 = vadd.xlane.f32.xlu1 %v1287_v19 }
 0x6c2   : > { %v1280_v20 = vpop.xlane.xlu1 %1279 }
 0x6c3   : > { %v1290_v23 = vmul.f32 %v1280_v20, %v2780_v57 }
 0x6c5   : > { %v1294_v26 = vsub.f32 %v1274_v59, %v1290_v23 }
 0x6c7   : > { %v1298_v27 = vmul.f32 %v1294_v26, %v1294_v26 }
 0x6c9   : > { %v1302_v29 = vsel %vm509_vm0, %v1298_v27, 0.0 }
 0x6ca   : > { %1303 = vadd.xlane.f32.xlu0 %v1302_v29 }
 0x6d8   : > { %v1283_v7 = vpop.xlane.xlu0 %1282 }
 0x6d9   : > { %v1291_v35 = vmul.f32 %v1283_v7, %v2780_v57 }
 0x6db   : > { %v2930_v50 = vsub.f32 %v1275_v3, %v1291_v35 }
 0x6dd   : > { %v1299_v31 = vmul.f32 %v2930_v50, %v2930_v50 }
 0x6df   : > { %v1305_v36 = vsel %vm509_vm0, %v1299_v31, 0.0 }
 0x6e0   : > { %v1286_v39 = vpop.xlane.xlu2 %1285  ;;  %1306 = vadd.xlane.f32.xlu2 %v1305_v36 }
 0x6e1   : > { %v1292_v42 = vmul.f32 %v1286_v39, %v2780_v57 }
 0x6e3   : > { %v2936_v43 = vsub.f32 %v1276_v14, %v1292_v42 }
 0x6e5   : > { %v1300_v44 = vmul.f32 %v2936_v43, %v2936_v43 }
 0x6e7   : > { %v1308_v0 = vsel %vm509_vm0, %v1300_v44, 0.0 }
 0x6e8   : > { %v1289_v46 = vpop.xlane.xlu1 %1288  ;;  %1309 = vadd.xlane.f32.xlu1 %v1308_v0 }
 0x6e9   : > { %v1293_v47 = vmul.f32 %v1289_v46, %v2780_v57 }
 0x6eb   : > { %v2942_v52 = vsub.f32 %v1277_v48, %v1293_v47 }
 0x6ed   : > { %v1301_v54 = vmul.f32 %v2942_v52, %v2942_v52 }
 0x6ef   : > { %v1311_v58 = vsel %vm509_vm0, %v1301_v54, 0.0 }
 0x6f0   : > { %1312 = vadd.xlane.f32.xlu0 %v1311_v58 }
 0x6f8   : > { %1377 = vperm.xlu2 %2372, %v2571_v9   ;;  %v2953_v9 = vperm.slane %v2630_v28, 4 }
 0x700   : > { %1389 = vperm.xlu2 %2372, %v2595_v18  }
 0x701   : > { %1381 = vperm.xlu1 %2373, %v2574_v10  }
 0x704   : > { %1385 = vperm.xlu0 %2374, %v2585_v15  }
 0x73d   : > { %v1304_v59 = vpop.xlane.xlu0 %1303 }
 0x73e   : > { %v1314_v61 = vmul.f32 %v1304_v59, %v2780_v57 }
 0x740   : > { %v1318_v62 = vadd.f32 1e-05, %v1314_v61 }
 0x742   : > { %2408 = vrsqrt.f32 %v1318_v62  ;;  %vm1328_vm8 = vweird.f32 %v1318_v62 }
 0x748   : > { %v2409_v2 = vpop.eup %2408 }
 0x749   : > { %v1323_v3 = vmul.f32 %v2409_v2, %v1318_v62  ;;  %vm1329_vm7 = vweird.f32 %v2409_v2 }
 0x74a   : > { %vm1330_vm9 = vmor %vm1328_vm8, %vm1329_vm7 }
 0x74b   : > { %v1324_v25 = vmul.f32 %v2409_v2, %v1323_v3 }
 0x74d   : > { %v1325_v60 = vmul.f32 0.5, %v1324_v25 }
 0x74f   : > { %v1326_v13 = vsub.f32 1.5, %v1325_v60 }
 0x751   : > { %v1327_v14 = vmul.f32 %v2409_v2, %v1326_v13 }
 0x753   : > { %v1307_v10 = vpop.xlane.xlu2 %1306  ;;  %v1331_v18 = vsel %vm1330_vm9, %v2409_v2, %v1327_v14 }
 0x754   : > { %v1315_v15 = vmul.f32 %v1307_v10, %v2780_v57  ;;  %v1362_v17 = vmul.f32 %v1331_v18, %v1294_v26 }
 0x756   : > { %v1319_v5 = vadd.f32 1e-05, %v1315_v15  ;;  %v1367_v48 = vmul.f32 %v2953_v9, %v1362_v17 }
 0x758   : > { %2410 = vrsqrt.f32 %v1319_v5  ;;  %v2961_v19 = vadd.f32 %v2957_v41, %v1367_v48  ;;  %vm1338_vm11 = vweird.f32 %v1319_v5 }
 0x75b   : > { %v1310_v20 = vpop.xlane.xlu1 %1309  ;;  %v1378_v23 = vpop.permute.xlu2 %1377 }
 0x75c   : > { %v1316_v27 = vmul.f32 %v1310_v20, %v2780_v57  ;;  %v2965_v29 = vmul.f32 %v1378_v23, %v2961_v19 }
 0x75e   : > { %v2411_v34 = vpop.eup %2410  ;;  %v1320_v7 = vadd.f32 1e-05, %v1316_v27  ;;  %2304 = vmatmul.msk.f32.vlgmr.msra.gmra.mxu2 %vm509_vm0, %v2965_v29 }
 0x75f   : > { %v1333_v28 = vmul.f32 %v2411_v34, %v1319_v5  ;;  %vm1339_vm10 = vweird.f32 %v2411_v34 }
 0x760   : > { %2412 = vrsqrt.f32 %v1320_v7  ;;  %vm1340_vm12 = vmor %vm1338_vm11, %vm1339_vm10  ;;  %vm1348_vm14 = vweird.f32 %v1320_v7 }
 0x761   : > { %v1334_v26 = vmul.f32 %v2411_v34, %v1333_v28 }
 0x763   : > { %v1335_v35 = vmul.f32 0.5, %v1334_v26  ;;  %v1313_v31 = vpop.xlane.xlu0 %1312  ;;  %v1390_v26 = vpop.permute.xlu2 %1389 }
 0x764   : > { %v1317_v36 = vmul.f32 %v1313_v31, %v2780_v57 }
 0x765   : > { %v1336_v39 = vsub.f32 1.5, %v1335_v35 }
 0x766   : > { %v2413_v42 = vpop.eup %2412  ;;  %v1321_v44 = vadd.f32 1e-05, %v1317_v36 }
 0x767   : > { %v1337_v0 = vmul.f32 %v2411_v34, %v1336_v39  ;;  %v1343_v46 = vmul.f32 %v2413_v42, %v1320_v7  ;;  %vm1349_vm13 = vweird.f32 %v2413_v42 }
 0x768   : > { %2414 = vrsqrt.f32 %v1321_v44  ;;  %vm1350_vm15 = vmor %vm1348_vm14, %vm1349_vm13  ;;  %vm1358_vm4 = vweird.f32 %v1321_v44 }
 0x769   : > { %v1344_v47 = vmul.f32 %v2413_v42, %v1343_v46  ;;  %v1341_v54 = vsel %vm1340_vm12, %v2411_v34, %v1337_v0 }
 0x76a   : > { %v1363_v58 = vmul.f32 %v1341_v54, %v2930_v50 }
 0x76b   : > { %v1345_v59 = vmul.f32 0.5, %v1344_v47 }
 0x76c   : > { %v1368_v2 = vmul.f32 %v2953_v9, %v1363_v58 }
 0x76d   : > { %v1346_v61 = vsub.f32 1.5, %v1345_v59 }
 0x76e   : > { %v2415_v62 = vpop.eup %2414  ;;  %v2973_v14 = vadd.f32 %v2957_v41, %v1368_v2 }
 0x76f   : > { %v1347_v3 = vmul.f32 %v2413_v42, %v1346_v61  ;;  %v1353_v25 = vmul.f32 %v2415_v62, %v1321_v44  ;;  %vm1359_vm3 = vweird.f32 %v2415_v62 }
 0x770   : > { %vm1360_vm5 = vmor %vm1358_vm4, %vm1359_vm3 }
 0x771   : > { %v1354_v60 = vmul.f32 %v2415_v62, %v1353_v25  ;;  %v1351_v13 = vsel %vm1350_vm15, %v2413_v42, %v1347_v3 }
 0x772   : > { %v1364_v10 = vmul.f32 %v1351_v13, %v2936_v43 }
 0x773   : > { %v1355_v18 = vmul.f32 0.5, %v1354_v60  ;;  %v1382_v15 = vpop.permute.xlu1 %1381 }
 0x774   : > { %v2977_v50 = vmul.f32 %v1382_v15, %v2973_v14  ;;  %v1369_v17 = vmul.f32 %v2953_v9, %v1364_v10 }
 0x775   : > { %v1356_v5 = vsub.f32 1.5, %v1355_v18 }
 0x776   : > { %2305 = vmatmul.msk.f32.gmra.mxu2 %vm509_vm0, %v2977_v50  ;;  %v2983_v20 = vadd.f32 %v2957_v41, %v1369_v17  ;;  %v1386_v43 = vpop.permute.xlu0 %1385 }
 0x777   : > { %v1357_v48 = vmul.f32 %v2415_v62, %v1356_v5 }
 0x778   : > { %v2988_v7 = vmul.f32 %v1386_v43, %v2983_v20 }
 0x779   : > { %v1361_v23 = vsel %vm1360_vm5, %v2415_v62, %v1357_v48 }
 0x77a   : > { %v1365_v27 = vmul.f32 %v1361_v23, %v2942_v52 }
 0x77c   : > { %v1370_v34 = vmul.f32 %v2953_v9, %v1365_v27 }
 0x77e   : > { %2306 = vmatmul.msk.f32.gmra.mxu2 %vm509_vm0, %v2988_v7  ;;  %v2993_v28 = vadd.f32 %v2957_v41, %v1370_v34 }
 0x780   : > { %v2996_v35 = vmul.f32 %v1390_v26, %v2993_v28 }
 0x786   : > { %2307 = vmatmul.msk.f32.gmra.mxu2 %vm509_vm0, %v2996_v35 }
 0x7e1   : > { %v1425_v31 = vpop.f32.mrf.mxu2 }
 0x7e2   : > { %v3001_v52 = vadd.f32 %v2655_v1, %v1425_v31 }
 0x7e4   : > { %1438 = vrot.lane.b32.xlu1 %v3001_v52, %s2459_s21 }
 0x7f9   : > { %v1428_v36 = vpop.f32.mrf.mxu2 }
 0x7fa   : > { %v3006_v39 = vadd.f32 %v2655_v1, %v1428_v36 }
 0x7fc   : > { %1465 = vrot.lane.b32.xlu1 %v3006_v39, %s2459_s21 }
 0x801   : > { %v1431_v42 = vpop.f32.mrf.mxu2 }
 0x802   : > { %v1432_v44 = vadd.f32 %v2655_v1, %v1431_v42 }
 0x804   : > { %1492 = vrot.lane.b32.xlu2 %v1432_v44, %s2459_s21 }
 0x809   : > { %v1434_v0 = vpop.f32.mrf.mxu2 }
 0x80a   : > { %v1435_v46 = vadd.f32 %v2655_v1, %v1434_v0 }
 0x80c   : > { %1519 = vrot.lane.b32.xlu2 %v1435_v46, %s2459_s21 }
 0x856   : > { %v1439_v47 = vpop.permute.xlu1 %1438 }
 0x857   : > { %2308 = vmatpush.xpose.msk.msrb.mxu3 %vm509_vm0, %v1439_v47 }
 0x85a   : > { %2309 = vmatmul.msk.f32.vlgmr.msrb.gmra.mxu3 %vm509_vm0, %v3001_v52 }
 0x85e   : > { %v1493_v54 = vpop.permute.xlu2 %1492 }
 0x85f   : > { %2312 = vmatpush.xpose.msk.msrb.mxu2 %vm509_vm0, %v1493_v54 }
 0x862   : > { %2313 = vmatmul.msk.f32.vlgmr.msrb.gmra.mxu2 %vm509_vm0, %v1432_v44 }
 0x866   : > { %v1520_v58 = vpop.permute.xlu2 %1519 }
 0x867   : > { %2314 = vmatpush.xpose.msk.msra.mxu3 %vm509_vm0, %v1520_v58 }
 0x86a   : > { %2315 = vmatmul.msk.f32.vlgmr.msra.gmra.mxu3 %vm509_vm0, %v1435_v46 }
 0x86e   : > { %v1466_v59 = vpop.permute.xlu1 %1465 }
 0x86f   : > { %2310 = vmatpush.xpose.msk.msra.mxu0 %vm509_vm0, %v1466_v59 }
 0x872   : > { %2311 = vmatmul.msk.f32.vlgmr.msra.gmra.mxu0 %vm509_vm0, %v3006_v39 }
 0x8dd   : > { %v1461_v1 = vpop.f32.mrf.mxu3 }
 0x8de   : > { %v1545_v61 = vsel %vm2685_vm1, %v1461_v1, -1e+30 }
 0x8df   : > { %v1549_v62 = vsel %vm831_vm2, %v1545_v61, -inf }
 0x8e0   : > { %1550 = vmax.xlane.f32.xlu1 %v1549_v62 }
 0x8e5   : > { %v1515_v2 = vpop.f32.mrf.mxu2 }
 0x8e6   : > { %v1547_v3 = vsel %vm2685_vm1, %v1515_v2, -1e+30 }
 0x8e7   : > { %v1555_v25 = vsel %vm831_vm2, %v1547_v3, -inf }
 0x8e8   : > { %1556 = vmax.xlane.f32.xlu2 %v1555_v25 }
 0x8ed   : > { %v1542_v60 = vpop.f32.mrf.mxu3 }
 0x8ee   : > { %v1548_v13 = vsel %vm2685_vm1, %v1542_v60, -1e+30 }
 0x8ef   : > { %v1488_v10 = vpop.f32.mrf.mxu0  ;;  %v1558_v18 = vsel %vm831_vm2, %v1548_v13, -inf }
 0x8f0   : > { %v1546_v15 = vsel %vm2685_vm1, %v1488_v10, -1e+30  ;;  %1559 = vmax.xlane.f32.xlu1 %v1558_v18 }
 0x8f1   : > { %v1552_v17 = vsel %vm831_vm2, %v1546_v15, -inf }
 0x8f2   : > { %1553 = vmax.xlane.f32.xlu0 %v1552_v17 }
 0x953   : > { %v1551_v5 = vpop.xlane.xlu1 %1550 }
 0x954   : > { %v1561_v48 = vsub.f32 %v1545_v61, %v1551_v5 }
 0x956   : > { %v1565_v23 = vmul.f32 1.442695, %v1561_v48 }
 0x958   : > { %2416 = vpow2.f32 %v1565_v23 }
 0x95b   : > { %v1557_v43 = vpop.xlane.xlu2 %1556 }
 0x95c   : > { %v1563_v27 = vsub.f32 %v1547_v3, %v1557_v43  ;;  %v2375_v3 = vpack.i.bf16 %v1432_v44, %v3006_v39 }
 0x95e   : > { %v3036_v34 = vpop.eup %2416  ;;  %v1569_v26 = vmul.f32 1.442695, %v1563_v27 }
 0x95f   : > { %v1573_v31 = vsel %vm831_vm2, %v3036_v34, 0.0 }
 0x960   : > { %2418 = vpow2.f32 %v1569_v26  ;;  %1574 = vadd.xlane.f32.xlu0 %v1573_v31 }
 0x963   : > { %v1560_v21 = vpop.xlane.xlu1 %1559 }
 0x964   : > { %v1564_v36 = vsub.f32 %v1548_v13, %v1560_v21 }
 0x965   : > { %v1554_v42 = vpop.xlane.xlu0 %1553 }
 0x966   : > { %v3040_v0 = vpop.eup %2418  ;;  %v1571_v47 = vmul.f32 1.442695, %v1564_v36  ;;  %v1562_v54 = vsub.f32 %v1546_v15, %v1554_v42 }
 0x967   : > { %v1579_v58 = vsel %vm831_vm2, %v3040_v0, 0.0 }
 0x968   : > { %2420 = vpow2.f32 %v1571_v47  ;;  %v1567_v59 = vmul.f32 1.442695, %v1562_v54  ;;  %1580 = vadd.xlane.f32.xlu1 %v1579_v58 }
 0x96a   : > { %2422 = vpow2.f32 %v1567_v59 }
 0x96e   : > { %v3044_v1 = vpop.eup %2420 }
 0x96f   : > { %v1582_v61 = vsel %vm831_vm2, %v3044_v1, 0.0 }
 0x970   : > { %v3048_v62 = vpop.eup %2422  ;;  %1583 = vadd.xlane.f32.xlu0 %v1582_v61 }
 0x971   : > { %v1576_v2 = vsel %vm831_vm2, %v3048_v62, 0.0 }
 0x972   : > { %1577 = vadd.xlane.f32.xlu2 %v1576_v2 }
 0x981   : > { %2376 = vrot.lane.b32.xlu1 %v2375_v3, %s2460_s22 }
 0x984   : > { %1723 = vrot.lane.b32.xlu0 %v1435_v46, %s2460_s22 }
 0x98a   : > { %1645 = vrot.lane.b32.xlu2 %v3001_v52, %s2460_s22 }
 0x9d3   : > { %v1575_v25 = vpop.xlane.xlu0 %1574 }
 0x9d4   : > { %2424 = vrcp.f32 %v1575_v25  ;;  %v1596_v44 = vand.u32 2147483648, %v1575_v25  ;;  %vm1590_vm7 = vweird.f32 %v1575_v25  ;;  %v1594_v46 = vand.u32 2147483647, %v1575_v25 }
 0x9d6   : > { %v1597_v26 = vor.u32 1.1754944e-38, %v1596_v44  ;;  %vm1595_vm9 = vcmp.eq.f32.partialorder %v1594_v46, 8.507059e+37 }
 0x9da   : > { %v2425_v60 = vpop.eup %2424 }
 0x9db   : > { %v1586_v13 = vmul.f32 %v2425_v60, %v1575_v25  ;;  %v1581_v10 = vpop.xlane.xlu1 %1580  ;;  %vm1591_vm1 = vweird.f32 %v2425_v60 }
 0x9dc   : > { %2426 = vrcp.f32 %v1581_v10  ;;  %vm1592_vm8 = vmor %vm1590_vm7, %vm1591_vm1  ;;  %v1622_v54 = vand.u32 2147483647, %v1581_v10  ;;  %v1624_v58 = vand.u32 2147483648, %v1581_v10  ;;  %vm1618_vm11 = vweird.f32 %v1581_v10 }
 0x9dd   : > { %v1587_v18 = vsub.f32 1.0, %v1586_v13 }
 0x9de   : > { %vm1623_vm14 = vcmp.eq.f32.partialorder %v1622_v54, 8.507059e+37 }
 0x9df   : > { %v1588_v15 = vmul.f32 %v2425_v60, %v1587_v18 }
 0x9e1   : > { %v1589_v5 = vadd.f32 %v2425_v60, %v1588_v15 }
 0x9e2   : > { %v2427_v17 = vpop.eup %2426 }
 0x9e3   : > { %v1614_v48 = vmul.f32 %v2427_v17, %v1581_v10  ;;  %v1584_v39 = vpop.xlane.xlu0 %1583  ;;  %v1593_v52 = vsel %vm1592_vm8, %v2425_v60, %v1589_v5  ;;  %vm1619_vm10 = vweird.f32 %v2427_v17  ;;  %v1625_v10 = vor.u32 1.1754944e-38, %v1624_v58 }
 0x9e4   : > { %2428 = vrcp.f32 %v1584_v39  ;;  %v1598_v21 = vsel %vm1595_vm9, %v1597_v26, %v1593_v52  ;;  %vm3058_vm12 = vmor %vm1618_vm11, %vm1619_vm10  ;;  %v1636_v60 = vand.u32 2147483647, %v1584_v39  ;;  %v1638_v13 = vand.u32 2147483648, %v1584_v39 }
 0x9e5   : > { %v1615_v23 = vsub.f32 1.0, %v1614_v48  ;;  %v1578_v43 = vpop.xlane.xlu2 %1577  ;;  %v1641_v3 = vmul.f32 %v3036_v34, %v1598_v21  ;;  %vm1632_vm15 = vweird.f32 %v1584_v39 }
 0x9e6   : > { %2430 = vrcp.f32 %v1578_v43  ;;  %v1610_v48 = vand.u32 2147483648, %v1578_v43  ;;  %v1608_v46 = vand.u32 2147483647, %v1578_v43  ;;  %v1639_v52 = vor.u32 1.1754944e-38, %v1638_v13 }
 0x9e7   : > { %v1616_v27 = vmul.f32 %v2427_v17, %v1615_v23  ;;  %vm1637_vm5 = vcmp.eq.f32.partialorder %v1636_v60, 8.507059e+37  ;;  %vm1604_vm1 = vweird.f32 %v1578_v43 }
 0x9e8   : > { %vm1609_vm8 = vcmp.eq.f32.partialorder %v1608_v46, 8.507059e+37 }
 0x9e9   : > { %v1617_v36 = vadd.f32 %v2427_v17, %v1616_v27 }
 0x9ea   : > { %v2429_v31 = vpop.eup %2428 }
 0x9eb   : > { %v1628_v42 = vmul.f32 %v2429_v31, %v1584_v39  ;;  %v1621_v18 = vsel %vm3058_vm12, %v2427_v17, %v1617_v36  ;;  %vm1633_vm13 = vweird.f32 %v2429_v31  ;;  %v1611_v39 = vor.u32 1.1754944e-38, %v1610_v48 }
 0x9ec   : > { %v2431_v47 = vpop.eup %2430  ;;  %v1626_v23 = vsel %vm1623_vm14, %v1625_v10, %v1621_v18  ;;  %vm1634_vm4 = vmor %vm1632_vm15, %vm1633_vm13 }
 0x9ed   : > { %v1629_v59 = vsub.f32 1.0, %v1628_v42  ;;  %v1600_v61 = vmul.f32 %v2431_v47, %v1578_v43  ;;  %v1646_v2 = vpop.permute.xlu2 %1645  ;;  %vm1605_vm3 = vweird.f32 %v2431_v47  ;;  %v1643_v54 = vmul.f32 %v3040_v0, %v1626_v23 }
 0x9ee   : > { %1666 = vmatpush.msrb.mxu0 %v1646_v2  ;;  %vm1606_vm7 = vmor %vm1604_vm1, %vm1605_vm3 }
 0x9ef   : > { %v1630_v15 = vmul.f32 %v2429_v31, %v1629_v59  ;;  %v1601_v5 = vsub.f32 1.0, %v1600_v61  ;;  %2316 = vmatmul.msk.f32.vlgmr.msrb.gmra.mxu0 %vm831_vm2, %v1641_v3 }
 0x9f0   : > { %1773 = vmatpush.msra.mxu0 %v2735_v8 }
 0x9f1   : > { %v1631_v34 = vadd.f32 %v2429_v31, %v1630_v15  ;;  %v1602_v44 = vmul.f32 %v2431_v47, %v1601_v5 }
 0x9f2   : > { %1774 = vmatpush.msra.mxu0 %v2743_v12 }
 0x9f3   : > { %v1635_v17 = vsel %vm1634_vm4, %v2429_v31, %v1631_v34  ;;  %v1603_v27 = vadd.f32 %v2431_v47, %v1602_v44  ;;  %v2377_v26 = vpop.permute.xlu1 %2376 }
 0x9f4   : > { %v1640_v21 = vsel %vm1637_vm5, %v1639_v52, %v1635_v17  ;;  %v2379_v36 = vunpack.i.h.bf16 %v2377_v26  ;;  %v2378_v42 = vunpack.i.l.bf16 %v2377_v26  ;;  %1775 = vmatpush.msra.mxu0 %v2751_v24  ;;  %v2079_v24 = vld [vmem:[%s3249_s11 + $0x18] sm:$0xff] }
 0x9f5   : > { %v1607_v8 = vsel %vm1606_vm7, %v2431_v47, %v1603_v27  ;;  %v1644_v58 = vmul.f32 %v3044_v1, %v1640_v21 }
 0x9f6   : > { %v1612_v59 = vsel %vm1609_vm8, %v1611_v39, %v1607_v8  ;;  %1692 = vmatpush.msra.mxu1 %v2378_v42  ;;  %1718 = vmatpush.msra.mxu2 %v2379_v36  ;;  %v1724_v12 = vpop.permute.xlu0 %1723 }
 0x9f7   : > { %2318 = vmatmul.msk.f32.vlgmr.msra.gmra.mxu2 %vm831_vm2, %v1643_v54  ;;  %1744 = vmatpush.msrb.mxu3 %v1724_v12  ;;  %v1642_v43 = vmul.f32 %v3048_v62, %v1612_v59 }
 0x9f8   : > { %2319 = vmatmul.msk.f32.vlgmr.msrb.gmra.mxu3 %vm831_vm2, %v1644_v58  ;;  %1776 = vmatpush.msra.mxu0 %v2758_v51  ;;  %v2078_v51 = vld [vmem:[%s3249_s11 + $0x10] sm:$0xff] }
 0x9f9   : > { %2317 = vmatmul.msk.f32.vlgmr.msra.gmra.mxu1 %vm831_vm2, %v1642_v43  ;;  %1955 = vmatpush.msrb.mxu2 %v2844_v37 }
 0x9fa   : > { %1914 = vmatpush.msrb.mxu1 %v2805_v56  ;;  %2149 = vmatpush.msrb.mxu0 %v2079_v24  ;;  %v2077_v56 = vld [vmem:[%s3249_s11 + $0x8] sm:$0xff] }
 0x9fb   : > { %1956 = vmatpush.msrb.mxu2 %v2849_v38 }
 0x9fc   : > { %1915 = vmatpush.msrb.mxu1 %v2811_v4  ;;  %2150 = vmatpush.msrb.mxu0 %v2078_v51  ;;  %v2076_v4 = vld [vmem:[%s3249_s11] sm:$0xff] }
 0x9fd   : > { %1957 = vmatpush.msrb.mxu2 %v2855_v40 }
 0x9fe   : > { %1916 = vmatpush.msrb.mxu1 %v2817_v6  ;;  %2151 = vmatpush.msrb.mxu0 %v2077_v56 }
 0x9ff   : > { %1958 = vmatpush.msrb.mxu2 %v2862_v45 }
 0xa00   : > { %1917 = vmatpush.msrb.mxu1 %v2823_v22  ;;  %2152 = vmatpush.msrb.mxu0 %v2076_v4 }
 0xa01   : > { %1959 = vmatpush.msrb.mxu2 %v2868_v49 }
 0xa03   : > { %1960 = vmatpush.msrb.mxu2 %v2887_v55 }
 0xa05   : > { %1961 = vmatpush.msrb.mxu2 %v2893_v32 }
 0xa07   : > { %1962 = vmatpush.msrb.mxu2 %v2899_v63 }
 0xa6c   : > { %v1668_v6 = vpop.f32.mrf.mxu0 }
 0xa6d   : > { %2320 = vmatmul.msk.f32.vlgmr.msra.gmra.mxu0 %vm509_vm0, %v1668_v6 }
 0xa76   : > { %v1694_v22 = vpop.f32.mrf.mxu1 }
 0xa77   : > { %2321 = vmatmul.msk.f32.gmra.mxu0 %vm509_vm0, %v1694_v22 }
 0xa7a   : > { %v1720_v37 = vpop.f32.mrf.mxu2 }
 0xa7b   : > { %v1746_v38 = vpop.f32.mrf.mxu3 }
 0xa7f   : > { %2322 = vmatmul.msk.f32.gmra.mxu0 %vm509_vm0, %v1720_v37 }
 0xa87   : > { %2323 = vmatmul.msk.f32.gmra.mxu0 %vm509_vm0, %v1746_v38 }
 0xa8f   : > { %2336 = vmatmul.msk.f32.vlgmr.msrb.gmra.mxu0 %vm509_vm0, %v2961_v19 }
 0xa97   : > { %2337 = vmatmul.msk.f32.gmra.mxu0 %vm509_vm0, %v2973_v14 }
 0xa9f   : > { %2338 = vmatmul.msk.f32.gmra.mxu0 %vm509_vm0, %v2983_v20 }
 0xaa7   : > { %2339 = vmatmul.msk.f32.gmra.mxu0 %vm509_vm0, %v2993_v28 }
 0xaea   : > { %v1778_v40 = vpop.f32.mrf.mxu0 }
 0xaeb   : > { %v1779_v45 = vadd.f32 %v1778_v40, %v2766_v16 }
 0xaed   : > { %v1790_v49 = vadd.f32 %v1779_v45, %v2965_v29 }
 0xaef   : > { %v1794_v55 = vsel %vm509_vm0, %v1790_v49, 0.0 }
 0xaf0   : > { %1795 = vadd.xlane.f32.xlu2 %v1794_v55 }
 0xaf4   : > { %v1781_v32 = vpop.f32.mrf.mxu0 }
 0xaf5   : > { %v1782_v63 = vadd.f32 %v1781_v32, %v2766_v16 }
 0xaf7   : > { %v1791_v19 = vadd.f32 %v1782_v63, %v2977_v50 }
 0xaf9   : > { %v1797_v14 = vsel %vm509_vm0, %v1791_v19, 0.0 }
 0xafa   : > { %1798 = vadd.xlane.f32.xlu0 %v1797_v14 }
 0xafc   : > { %v1784_v20 = vpop.f32.mrf.mxu0 }
 0xafd   : > { %v1785_v0 = vadd.f32 %v1784_v20, %v2766_v16 }
 0xaff   : > { %v1792_v28 = vadd.f32 %v1785_v0, %v2988_v7 }
 0xb01   : > { %v1800_v1 = vsel %vm509_vm0, %v1792_v28, 0.0 }
 0xb02   : > { %1801 = vadd.xlane.f32.xlu1 %v1800_v1 }
 0xb04   : > { %v1787_v29 = vpop.f32.mrf.mxu0 }
 0xb05   : > { %v1788_v62 = vadd.f32 %v1787_v29, %v2766_v16 }
 0xb07   : > { %v1793_v31 = vadd.f32 %v1788_v62, %v2996_v35 }
 0xb09   : > { %v1803_v47 = vsel %vm509_vm0, %v1793_v31, 0.0 }
 0xb0a   : > { %1804 = vadd.xlane.f32.xlu2 %v1803_v47 }
 0xb63   : > { %v1796_v50 = vpop.xlane.xlu2 %1795 }
 0xb64   : > { %v1806_v61 = vmul.f32 %v1796_v50, %v2780_v57 }
 0xb66   : > { %v1810_v2 = vsub.f32 %v1790_v49, %v1806_v61 }
 0xb68   : > { %v1814_v3 = vmul.f32 %v1810_v2, %v1810_v2 }
 0xb6a   : > { %v1818_v25 = vsel %vm509_vm0, %v1814_v3, 0.0 }
 0xb6b   : > { %1819 = vadd.xlane.f32.xlu0 %v1818_v25 }
 0xb6d   : > { %v1799_v7 = vpop.xlane.xlu0 %1798 }
 0xb6e   : > { %v1807_v60 = vmul.f32 %v1799_v7, %v2780_v57 }
 0xb70   : > { %v1811_v13 = vsub.f32 %v1791_v19, %v1807_v60 }
 0xb72   : > { %v1815_v18 = vmul.f32 %v1811_v13, %v1811_v13 }
 0xb74   : > { %v1821_v16 = vsel %vm509_vm0, %v1815_v18, 0.0 }
 0xb75   : > { %v1802_v15 = vpop.xlane.xlu1 %1801  ;;  %1822 = vadd.xlane.f32.xlu1 %v1821_v16 }
 0xb76   : > { %v1808_v35 = vmul.f32 %v1802_v15, %v2780_v57 }
 0xb78   : > { %v3128_v5 = vsub.f32 %v1792_v28, %v1808_v35 }
 0xb7a   : > { %v1816_v10 = vmul.f32 %v3128_v5, %v3128_v5 }
 0xb7c   : > { %v1824_v48 = vsel %vm509_vm0, %v1816_v10, 0.0 }
 0xb7d   : > { %1825 = vadd.xlane.f32.xlu2 %v1824_v48  ;;  %v1805_v34 = vpop.xlane.xlu2 %1804 }
 0xb7e   : > { %v1809_v44 = vmul.f32 %v1805_v34, %v2780_v57 }
 0xb80   : > { %v3134_v46 = vsub.f32 %v1793_v31, %v1809_v44 }
 0xb82   : > { %v1817_v23 = vmul.f32 %v3134_v46, %v3134_v46 }
 0xb84   : > { %v1827_v52 = vsel %vm509_vm0, %v1817_v23, 0.0 }
 0xb85   : > { %1828 = vadd.xlane.f32.xlu0 %v1827_v52 }
 0xbde   : > { %v1820_v17 = vpop.xlane.xlu0 %1819 }
 0xbdf   : > { %v1830_v27 = vmul.f32 %v1820_v17, %v2780_v57 }
 0xbe1   : > { %v1834_v26 = vadd.f32 1e-05, %v1830_v27 }
 0xbe3   : > { %2432 = vrsqrt.f32 %v1834_v26  ;;  %vm1844_vm9 = vweird.f32 %v1834_v26 }
 0xbe8   : > { %v1823_v21 = vpop.xlane.xlu1 %1822 }
 0xbe9   : > { %v2433_v39 = vpop.eup %2432  ;;  %v1831_v36 = vmul.f32 %v1823_v21, %v2780_v57 }
 0xbea   : > { %v1839_v42 = vmul.f32 %v2433_v39, %v1834_v26  ;;  %vm1845_vm2 = vweird.f32 %v2433_v39 }
 0xbeb   : > { %v1835_v8 = vadd.f32 1e-05, %v1831_v36  ;;  %vm1846_vm10 = vmor %vm1844_vm9, %vm1845_vm2 }
 0xbec   : > { %v1840_v54 = vmul.f32 %v2433_v39, %v1839_v42 }
 0xbed   : > { %2434 = vrsqrt.f32 %v1835_v8  ;;  %vm1854_vm12 = vweird.f32 %v1835_v8 }
 0xbee   : > { %v1841_v58 = vmul.f32 0.5, %v1840_v54 }
 0xbf0   : > { %v1842_v59 = vsub.f32 1.5, %v1841_v58  ;;  %v1826_v12 = vpop.xlane.xlu2 %1825 }
 0xbf1   : > { %v1832_v43 = vmul.f32 %v1826_v12, %v2780_v57 }
 0xbf2   : > { %v1843_v24 = vmul.f32 %v2433_v39, %v1842_v59 }
 0xbf3   : > { %v2435_v51 = vpop.eup %2434  ;;  %v1836_v56 = vadd.f32 1e-05, %v1832_v43 }
 0xbf4   : > { %v1847_v4 = vsel %vm1846_vm10, %v2433_v39, %v1843_v24  ;;  %v1849_v6 = vmul.f32 %v2435_v51, %v1835_v8  ;;  %vm1855_vm11 = vweird.f32 %v2435_v51 }
 0xbf5   : > { %v1878_v22 = vmul.f32 %v1847_v4, %v1810_v2  ;;  %2436 = vrsqrt.f32 %v1836_v56  ;;  %vm1856_vm13 = vmor %vm1854_vm12, %vm1855_vm11  ;;  %vm1864_vm15 = vweird.f32 %v1836_v56 }
 0xbf6   : > { %v1850_v37 = vmul.f32 %v2435_v51, %v1849_v6 }
 0xbf7   : > { %v1882_v38 = vmul.f32 %v1878_v22, %v2828_v11 }
 0xbf8   : > { %v1851_v40 = vmul.f32 0.5, %v1850_v37  ;;  %v1829_v45 = vpop.xlane.xlu0 %1828 }
 0xbf9   : > { %v1833_v49 = vmul.f32 %v1829_v45, %v2780_v57  ;;  %v1886_v55 = vadd.f32 %v1882_v38, %v2832_v30 }
 0xbfa   : > { %v1852_v32 = vsub.f32 1.5, %v1851_v40 }
 0xbfb   : > { %v2437_v63 = vpop.eup %2436  ;;  %v1837_v19 = vadd.f32 1e-05, %v1833_v49  ;;  %2324 = vmatmul.msk.f32.vlgmr.msrb.gmra.mxu1 %vm509_vm0, %v1886_v55 }
 0xbfc   : > { %v1853_v14 = vmul.f32 %v2435_v51, %v1852_v32  ;;  %v1859_v20 = vmul.f32 %v2437_v63, %v1836_v56  ;;  %vm1865_vm14 = vweird.f32 %v2437_v63 }
 0xbfd   : > { %2438 = vrsqrt.f32 %v1837_v19  ;;  %vm1866_vm3 = vmor %vm1864_vm15, %vm1865_vm14  ;;  %vm1874_vm5 = vweird.f32 %v1837_v19 }
 0xbfe   : > { %v1857_v0 = vsel %vm1856_vm13, %v2435_v51, %v1853_v14  ;;  %v1860_v28 = vmul.f32 %v2437_v63, %v1859_v20 }
 0xbff   : > { %v1879_v1 = vmul.f32 %v1857_v0, %v1811_v13 }
 0xc00   : > { %v1861_v29 = vmul.f32 0.5, %v1860_v28 }
 0xc01   : > { %v1883_v62 = vmul.f32 %v1879_v1, %v2828_v11 }
 0xc02   : > { %v1862_v31 = vsub.f32 1.5, %v1861_v29 }
 0xc03   : > { %v2439_v47 = vpop.eup %2438  ;;  %v1887_v50 = vadd.f32 %v1883_v62, %v2832_v30 }
 0xc04   : > { %v1863_v61 = vmul.f32 %v2437_v63, %v1862_v31  ;;  %v1869_v2 = vmul.f32 %v2439_v47, %v1837_v19  ;;  %vm1875_vm4 = vweird.f32 %v2439_v47 }
 0xc05   : > { %2325 = vmatmul.msk.f32.gmra.mxu1 %vm509_vm0, %v1887_v50  ;;  %vm1876_vm1 = vmor %vm1874_vm5, %vm1875_vm4 }
 0xc06   : > { %v1867_v3 = vsel %vm1866_vm3, %v2437_v63, %v1863_v61  ;;  %v1870_v25 = vmul.f32 %v2439_v47, %v1869_v2  ;;  %v2083_v2 = vld [vmem:[%s3249_s11 + $0x38] sm:$0xff] }
 0xc07   : > { %v1880_v7 = vmul.f32 %v1867_v3, %v3128_v5  ;;  %2108 = vmatpush.msra.mxu3 %v2083_v2  ;;  %v2082_v3 = vld [vmem:[%s3249_s11 + $0x30] sm:$0xff] }
 0xc08   : > { %v1871_v60 = vmul.f32 0.5, %v1870_v25  ;;  %v2081_v25 = vld [vmem:[%s3249_s11 + $0x28] sm:$0xff] }
 0xc09   : > { %v1884_v13 = vmul.f32 %v1880_v7, %v2828_v11  ;;  %2109 = vmatpush.msra.mxu3 %v2082_v3  ;;  %v2080_v7 = vld [vmem:[%s3249_s11 + $0x20] sm:$0xff] }
 0xc0a   : > { %v1872_v18 = vsub.f32 1.5, %v1871_v60 }
 0xc0b   : > { %v1888_v16 = vadd.f32 %v1884_v13, %v2832_v30  ;;  %2110 = vmatpush.msra.mxu3 %v2081_v25 }
 0xc0c   : > { %v1873_v15 = vmul.f32 %v2439_v47, %v1872_v18 }
 0xc0d   : > { %2326 = vmatmul.msk.f32.gmra.mxu1 %vm509_vm0, %v1888_v16  ;;  %2111 = vmatpush.msra.mxu3 %v2080_v7 }
 0xc0e   : > { %v1877_v35 = vsel %vm1876_vm1, %v2439_v47, %v1873_v15 }
 0xc0f   : > { %v1881_v10 = vmul.f32 %v1877_v35, %v3134_v46 }
 0xc11   : > { %v1885_v48 = vmul.f32 %v1881_v10, %v2828_v11 }
 0xc13   : > { %v1889_v34 = vadd.f32 %v1885_v48, %v2832_v30 }
 0xc15   : > { %2327 = vmatmul.msk.f32.gmra.mxu1 %vm509_vm0, %v1889_v34 }
 0xc78   : > { %v1919_v5 = vpop.f32.mrf.mxu1 }
 0xc79   : > { %v1920_v44 = vadd.f32 %v2905_v33, %v1919_v5 }
 0xc7b   : > { %v1931_v23 = vmax.f32 %v1920_v44, 0.0 }
 0xc7d   : > { %2328 = vmatmul.msk.f32.vlgmr.msrb.gmra.mxu2 %vm1232_vm6, %v1931_v23 }
 0xc82   : > { %v1922_v52 = vpop.f32.mrf.mxu1 }
 0xc83   : > { %v1923_v17 = vadd.f32 %v2905_v33, %v1922_v52 }
 0xc85   : > { %v1932_v27 = vmax.f32 %v1923_v17, 0.0 }
 0xc87   : > { %2329 = vmatmul.msk.f32.gmra.mxu2 %vm1232_vm6, %v1932_v27 }
 0xc8a   : > { %v1925_v26 = vpop.f32.mrf.mxu1 }
 0xc8b   : > { %v1926_v46 = vadd.f32 %v2905_v33, %v1925_v26 }
 0xc8d   : > { %v1933_v11 = vmax.f32 %v1926_v46, 0.0 }
 0xc8f   : > { %2330 = vmatmul.msk.f32.gmra.mxu2 %vm1232_vm6, %v1933_v11 }
 0xc92   : > { %v1928_v30 = vpop.f32.mrf.mxu1 }
 0xc93   : > { %v1929_v21 = vadd.f32 %v2905_v33, %v1928_v30 }
 0xc95   : > { %v1934_v39 = vmax.f32 %v1929_v21, 0.0 }
 0xc97   : > { %2331 = vmatmul.msk.f32.gmra.mxu2 %vm1232_vm6, %v1934_v39 }
 0xd00   : > { %v1964_v36 = vpop.f32.mrf.mxu2 }
 0xd01   : > { %v1965_v42 = vadd.f32 %v1964_v36, %v2916_v53 }
 0xd03   : > { %v1976_v8 = vadd.f32 %v1965_v42, %v1886_v55 }
 0xd05   : > { %v1980_v54 = vsel %vm509_vm0, %v1976_v8, 0.0 }
 0xd06   : > { %1981 = vadd.xlane.f32.xlu1 %v1980_v54 }
 0xd0a   : > { %v1967_v58 = vpop.f32.mrf.mxu2 }
 0xd0b   : > { %v1968_v59 = vadd.f32 %v1967_v58, %v2916_v53 }
 0xd0d   : > { %v1977_v12 = vadd.f32 %v1968_v59, %v1887_v50 }
 0xd0f   : > { %v1983_v43 = vsel %vm509_vm0, %v1977_v12, 0.0 }
 0xd10   : > { %1984 = vadd.xlane.f32.xlu2 %v1983_v43 }
 0xd12   : > { %v1970_v24 = vpop.f32.mrf.mxu2 }
 0xd13   : > { %v1971_v33 = vadd.f32 %v1970_v24, %v2916_v53 }
 0xd15   : > { %v1978_v51 = vadd.f32 %v1971_v33, %v1888_v16 }
 0xd17   : > { %v1986_v56 = vsel %vm509_vm0, %v1978_v51, 0.0 }
 0xd18   : > { %1987 = vadd.xlane.f32.xlu0 %v1986_v56 }
 0xd1a   : > { %v1973_v4 = vpop.f32.mrf.mxu2 }
 0xd1b   : > { %v1974_v6 = vadd.f32 %v1973_v4, %v2916_v53 }
 0xd1d   : > { %v1979_v22 = vadd.f32 %v1974_v6, %v1889_v34 }
 0xd1f   : > { %v1989_v37 = vsel %vm509_vm0, %v1979_v22, 0.0 }
 0xd20   : > { %1990 = vadd.xlane.f32.xlu1 %v1989_v37 }
 0xd79   : > { %v1982_v38 = vpop.xlane.xlu1 %1981 }
 0xd7a   : > { %v1992_v40 = vmul.f32 %v1982_v38, %v2780_v57 }
 0xd7c   : > { %v1996_v45 = vsub.f32 %v1976_v8, %v1992_v40 }
 0xd7e   : > { %v2000_v49 = vmul.f32 %v1996_v45, %v1996_v45 }
 0xd80   : > { %v2004_v55 = vsel %vm509_vm0, %v2000_v49, 0.0 }
 0xd81   : > { %2005 = vadd.xlane.f32.xlu2 %v2004_v55 }
 0xd83   : > { %v1985_v32 = vpop.xlane.xlu2 %1984 }
 0xd84   : > { %v1993_v63 = vmul.f32 %v1985_v32, %v2780_v57 }
 0xd86   : > { %v3176_v19 = vsub.f32 %v1977_v12, %v1993_v63 }
 0xd88   : > { %v2001_v53 = vmul.f32 %v3176_v19, %v3176_v19 }
 0xd8a   : > { %v2007_v14 = vsel %vm509_vm0, %v2001_v53, 0.0 }
 0xd8b   : > { %2008 = vadd.xlane.f32.xlu0 %v2007_v14  ;;  %v1988_v20 = vpop.xlane.xlu0 %1987 }
 0xd8c   : > { %v1994_v0 = vmul.f32 %v1988_v20, %v2780_v57 }
 0xd8e   : > { %v3182_v28 = vsub.f32 %v1978_v51, %v1994_v0 }
 0xd90   : > { %v2002_v1 = vmul.f32 %v3182_v28, %v3182_v28 }
 0xd92   : > { %v2010_v29 = vsel %vm509_vm0, %v2002_v1, 0.0 }
 0xd93   : > { %v1991_v62 = vpop.xlane.xlu1 %1990  ;;  %2011 = vadd.xlane.f32.xlu1 %v2010_v29  ;;  %v2154_v29 = vpop.f32.mrf.mxu0 }
 0xd94   : > { %v1995_v31 = vmul.f32 %v1991_v62, %v2780_v57  ;;  %v2448_v62 = vld [vmem:[%s3250_s12] sm:$0xff] }
 0xd96   : > { %v3188_v47 = vsub.f32 %v1979_v22, %v1995_v31  ;;  %v2166_v31 = vperm.slane %v2448_v62, 6 }
 0xd98   : > { %v2003_v50 = vmul.f32 %v3188_v47, %v3188_v47 }
 0xd9a   : > { %v2013_v61 = vsel %vm509_vm0, %v2003_v50, 0.0 }
 0xd9b   : > { %2014 = vadd.xlane.f32.xlu2 %v2013_v61 }
 0xdf4   : > { %v2006_v60 = vpop.xlane.xlu2 %2005 }
 0xdf5   : > { %v2016_v13 = vmul.f32 %v2006_v60, %v2780_v57 }
 0xdf7   : > { %v2020_v18 = vadd.f32 1e-05, %v2016_v13 }
 0xdf9   : > { %2440 = vrsqrt.f32 %v2020_v18  ;;  %vm2030_vm7 = vweird.f32 %v2020_v18 }
 0xdfe   : > { %v2009_v16 = vpop.xlane.xlu0 %2008 }
 0xdff   : > { %v2441_v15 = vpop.eup %2440  ;;  %v2017_v35 = vmul.f32 %v2009_v16, %v2780_v57 }
 0xe00   : > { %v2025_v10 = vmul.f32 %v2441_v15, %v2020_v18  ;;  %vm2031_vm6 = vweird.f32 %v2441_v15 }
 0xe01   : > { %v2021_v48 = vadd.f32 1e-05, %v2017_v35  ;;  %vm2032_vm8 = vmor %vm2030_vm7, %vm2031_vm6 }
 0xe02   : > { %v2026_v34 = vmul.f32 %v2441_v15, %v2025_v10 }
 0xe03   : > { %2442 = vrsqrt.f32 %v2021_v48  ;;  %vm2040_vm9 = vweird.f32 %v2021_v48 }
 0xe04   : > { %v2027_v5 = vmul.f32 0.5, %v2026_v34 }
 0xe06   : > { %v2028_v44 = vsub.f32 1.5, %v2027_v5  ;;  %v2012_v23 = vpop.xlane.xlu1 %2011 }
 0xe07   : > { %v2018_v52 = vmul.f32 %v2012_v23, %v2780_v57 }
 0xe08   : > { %v2029_v17 = vmul.f32 %v2441_v15, %v2028_v44 }
 0xe09   : > { %v2443_v27 = vpop.eup %2442  ;;  %v2022_v26 = vadd.f32 1e-05, %v2018_v52 }
 0xe0a   : > { %v2033_v46 = vsel %vm2032_vm8, %v2441_v15, %v2029_v17  ;;  %v2035_v11 = vmul.f32 %v2443_v27, %v2021_v48  ;;  %vm2041_vm2 = vweird.f32 %v2443_v27 }
 0xe0b   : > { %v2064_v30 = vmul.f32 %v2033_v46, %v1996_v45  ;;  %2444 = vrsqrt.f32 %v2022_v26  ;;  %vm2042_vm10 = vmor %vm2040_vm9, %vm2041_vm2  ;;  %vm2050_vm12 = vweird.f32 %v2022_v26 }
 0xe0c   : > { %v2036_v21 = vmul.f32 %v2443_v27, %v2035_v11 }
 0xe0d   : > { %v2068_v39 = vmul.f32 %v2064_v30, %v2953_v9 }
 0xe0e   : > { %v2037_v36 = vmul.f32 0.5, %v2036_v21  ;;  %v2015_v42 = vpop.xlane.xlu2 %2014 }
 0xe0f   : > { %v2019_v8 = vmul.f32 %v2015_v42, %v2780_v57  ;;  %v2072_v54 = vadd.f32 %v2068_v39, %v2957_v41 }
 0xe10   : > { %v2038_v58 = vsub.f32 1.5, %v2037_v36 }
 0xe11   : > { %v2445_v59 = vpop.eup %2444  ;;  %v2023_v12 = vadd.f32 1e-05, %v2019_v8  ;;  %2332 = vmatmul.msk.f32.vlgmr.msra.gmra.mxu3 %vm509_vm0, %v2072_v54 }
 0xe12   : > { %v2039_v43 = vmul.f32 %v2443_v27, %v2038_v58  ;;  %v2045_v24 = vmul.f32 %v2445_v59, %v2022_v26  ;;  %vm2051_vm11 = vweird.f32 %v2445_v59 }
 0xe13   : > { %2446 = vrsqrt.f32 %v2023_v12  ;;  %vm2052_vm13 = vmor %vm2050_vm12, %vm2051_vm11  ;;  %vm2060_vm15 = vweird.f32 %v2023_v12 }
 0xe14   : > { %v2043_v33 = vsel %vm2042_vm10, %v2443_v27, %v2039_v43  ;;  %v2046_v51 = vmul.f32 %v2445_v59, %v2045_v24 }
 0xe15   : > { %v2065_v56 = vmul.f32 %v2043_v33, %v3176_v19 }
 0xe16   : > { %v2047_v4 = vmul.f32 0.5, %v2046_v51 }
 0xe17   : > { %v2069_v57 = vmul.f32 %v2065_v56, %v2953_v9 }
 0xe18   : > { %v2048_v6 = vsub.f32 1.5, %v2047_v4 }
 0xe19   : > { %v2447_v22 = vpop.eup %2446  ;;  %v2073_v37 = vadd.f32 %v2069_v57, %v2957_v41 }
 0xe1a   : > { %v2049_v38 = vmul.f32 %v2445_v59, %v2048_v6  ;;  %v2055_v40 = vmul.f32 %v2447_v22, %v2023_v12  ;;  %vm2061_vm14 = vweird.f32 %v2447_v22 }
 0xe1b   : > { %2333 = vmatmul.msk.f32.gmra.mxu3 %vm509_vm0, %v2073_v37  ;;  %vm2062_vm3 = vmor %vm2060_vm15, %vm2061_vm14 }
 0xe1c   : > { %v2053_v45 = vsel %vm2052_vm13, %v2445_v59, %v2049_v38  ;;  %v2056_v49 = vmul.f32 %v2447_v22, %v2055_v40 }
 0xe1d   : > { %v2066_v55 = vmul.f32 %v2053_v45, %v3182_v28 }
 0xe1e   : > { %v2057_v32 = vmul.f32 0.5, %v2056_v49 }
 0xe1f   : > { %v2070_v63 = vmul.f32 %v2066_v55, %v2953_v9 }
 0xe20   : > { %v2058_v19 = vsub.f32 1.5, %v2057_v32 }
 0xe21   : > { %v2074_v53 = vadd.f32 %v2070_v63, %v2957_v41 }
 0xe22   : > { %v2059_v14 = vmul.f32 %v2447_v22, %v2058_v19 }
 0xe23   : > { %2334 = vmatmul.msk.f32.gmra.mxu3 %vm509_vm0, %v2074_v53 }
 0xe24   : > { %v2063_v20 = vsel %vm2062_vm3, %v2447_v22, %v2059_v14 }
 0xe25   : > { %v2067_v0 = vmul.f32 %v2063_v20, %v3188_v47 }
 0xe27   : > { %v2071_v1 = vmul.f32 %v2067_v0, %v2953_v9  ;;  %v2157_v9 = vpop.f32.mrf.mxu0 }
 0xe29   : > { %v2075_v28 = vadd.f32 %v2071_v1, %v2957_v41 }
 0xe2b   : > { %2335 = vmatmul.msk.f32.gmra.mxu3 %vm509_vm0, %v2075_v28 }
 0xe2f   : > { %v2160_v25 = vpop.f32.mrf.mxu0 }
 0xe37   : > { %v2163_v18 = vpop.f32.mrf.mxu0 }
 0xe94   : > { %v2113_v50 = vpop.f32.mrf.mxu3 }
 0xe95   : > { %v2155_v61 = vadd.f32 %v2154_v29, %v2113_v50 }
 0xe97   : > { %v2167_v2 = vadd.f32 %v2166_v31, %v2155_v61 }
 0xe99   : > { %2171 = vst.msk [vmem:[%s486_s18] sm:$0xff] %vm509_vm0, %v2167_v2 }
 0xe9e   : > { %v2116_v47 = vpop.f32.mrf.mxu3 }
 0xe9f   : > { %v2158_v41 = vadd.f32 %v2157_v9, %v2116_v47 }
 0xea1   : > { %v2168_v3 = vadd.f32 %v2166_v31, %v2158_v41 }
 0xea3   : > { %2172 = vst.msk [vmem:[%s486_s18 + $0x8] sm:$0xff] %vm509_vm0, %v2168_v3 }
 0xea6   : > { %v2119_v7 = vpop.f32.mrf.mxu3 }
 0xea7   : > { %v2161_v60 = vadd.f32 %v2160_v25, %v2119_v7 }
 0xea9   : > { %v2169_v13 = vadd.f32 %v2166_v31, %v2161_v60 }
 0xeab   : > { %2173 = vst.msk [vmem:[%s486_s18 + $0x10] sm:$0xff] %vm509_vm0, %v2169_v13 }
 0xeae   : > { %v2122_v16 = vpop.f32.mrf.mxu3 }
 0xeaf   : > { %v2164_v15 = vadd.f32 %v2163_v18, %v2122_v16 }
 0xeb1   : > { %v2170_v35 = vadd.f32 %v2166_v31, %v2164_v15 }
 0xeb3   : > { %2174 = vst.msk [vmem:[%s486_s18 + $0x18] sm:$0xff] %vm509_vm0, %v2170_v35 }
 0xeb4 PF: > { %s23_s25 = sadd.s32 1, %s2455_s25  }
 0xeb5   : > { %p20_p4 = scmp.ge.s32.totalorder %s23_s25, 4  }
 0xeb7   :  { %22 = sbr.rel (!%p20_p4) target bundleno = 1 (0x1), region = 108 }

</bundles_post_ra>
